<compile_context>
chip_gen: v6e
topology: v6e:2x2x1
jax: 0.10.0
libtpu: 0.0.40
codegen_flags: <defaults>
</compile_context>

<pallas_src>
import functools

import jax
import jax.numpy as jnp
from jax.experimental import pallas as pl
from jax.experimental.pallas import tpu as pltpu

N_MELS = 80                      # as in the PyTorch module
HIDDEN = 256                     # GRU hidden size
Z_DIM = 64                       # latent dim (module default)
D_IN = 128 * (N_MELS // 8)       # GRU input size = 1280
BN_EPS = 1e-5

TILE_M = 256                     # M-tile for the gridded matmuls (multiple of 256 for v6e/v7x MXU)
VMEM_LIMIT = 32 * 1024 * 1024    # fits comfortably on v5e/v6e and v7x (64 MiB physical)
VMEM_SPEC = pl.BlockSpec(memory_space=pltpu.MemorySpace.VMEM)


# ----------------------------- Pallas kernels ------------------------------

def _matmul_affine_kernel(x_ref, w_ref, s_ref, b_ref, o_ref, *, relu):
    """o = maybe_relu((x @ w) * s + b); bf16 operands, f32 accumulation."""
    acc = jnp.dot(x_ref[...], w_ref[...], preferred_element_type=jnp.float32)
    y = acc * s_ref[...] + b_ref[...]
    if relu:
        y = jnp.maximum(y, 0.0)
    o_ref[...] = y.astype(o_ref.dtype)


def _gru_head_kernel(gi_ref, whh_ref, bhh_ref, wmu_ref, bmu_ref,
                     wlv_ref, blv_ref, mu_ref, lv_ref):
    """PyTorch-semantics GRU (gate order r, z, n) with the input projection
    gi = x @ W_ih + b_ih precomputed outside, then the mu / logvar Linears.

    gi_ref : (T, B, 3H) f32   whh_ref : (H, 3H) bf16   bhh_ref : (1, 3H) f32
    wmu/wlv: (H, Z) f32       bmu/blv : (1, Z) f32
    """
    T, B, _ = gi_ref.shape
    H = whh_ref.shape[0]

    def step(t, h):
        gi = gi_ref[t]                                               # (B, 3H)
        gh = jnp.dot(h.astype(jnp.bfloat16), whh_ref[...],
                     preferred_element_type=jnp.float32) + bhh_ref[...]
        r = jax.nn.sigmoid(gi[:, 0 * H:1 * H] + gh[:, 0 * H:1 * H])
        z = jax.nn.sigmoid(gi[:, 1 * H:2 * H] + gh[:, 1 * H:2 * H])
        n = jnp.tanh(gi[:, 2 * H:3 * H] + r * gh[:, 2 * H:3 * H])
        return (1.0 - z) * n + z * h

    h = jax.lax.fori_loop(0, T, step, jnp.zeros((B, H), jnp.float32), unroll=4)
    mu_ref[...] = jnp.dot(h, wmu_ref[...],
                          preferred_element_type=jnp.float32) + bmu_ref[...]
    lv_ref[...] = jnp.dot(h, wlv_ref[...],
                          preferred_element_type=jnp.float32) + blv_ref[...]


def _round_up(x, m):
    return (x + m - 1) // m * m


def matmul_affine(x, w, scale, bias, *, relu, out_dtype, tile_m=TILE_M):
    """Pallas matmul with fused per-column scale/bias (+ optional ReLU),
    gridded over M so BlockSpec pipelining double-buffers the HBM traffic."""
    m, k = x.shape
    n = w.shape[1]
    m_pad = _round_up(m, 8)
    tm = min(tile_m, m_pad)
    m_pad = _round_up(m_pad, tm)
    if m_pad != m:
        x = jnp.pad(x, ((0, m_pad - m), (0, 0)))
    out = pl.pallas_call(
        functools.partial(_matmul_affine_kernel, relu=relu),
        out_shape=jax.ShapeDtypeStruct((m_pad, n), out_dtype),
        grid=(m_pad // tm,),
        in_specs=[pl.BlockSpec((tm, k), lambda i: (i, 0)),
                  pl.BlockSpec((k, n), lambda i: (0, 0)),
                  pl.BlockSpec((1, n), lambda i: (0, 0)),
                  pl.BlockSpec((1, n), lambda i: (0, 0))],
        out_specs=pl.BlockSpec((tm, n), lambda i: (i, 0)),
        compiler_params=pltpu.CompilerParams(
            dimension_semantics=("parallel",),
            vmem_limit_bytes=VMEM_LIMIT),
    )(x, w, scale, bias)
    return out[:m] if m_pad != m else out


# --------------------------------- glue ------------------------------------

def im2col_s2p1k3(x, row_order="bhw"):
    """x: (B, H, W, C) -> (rows, 9*C) patches for conv k=3, s=2, p=1.

    row_order "bhw": rows ordered (B, Ho, Wo).  "wbh": rows ordered (Wo, B, Ho)
    — used for the last conv so its output lands directly in (T, B, F*C).
    """
    # TODO(synk): fuse im2col into the conv kernel (overlapping-window reads)
    # to avoid materializing the ~9x-amplified patches in HBM (matters on v5e).
    bsz, h, w, c = x.shape
    ho = (h + 2 - 3) // 2 + 1
    wo = (w + 2 - 3) // 2 + 1
    xp = jnp.pad(x, ((0, 0), (1, 1), (1, 1), (0, 0)))
    cols = []
    for kh in range(3):
        for kw in range(3):
            cols.append(xp[:, kh:kh + 2 * ho:2, kw:kw + 2 * wo:2, :])
    patches = jnp.stack(cols, axis=3)                  # (B, Ho, Wo, 9, C)
    if row_order == "wbh":
        patches = jnp.transpose(patches, (2, 0, 1, 3, 4))
    return patches.reshape(-1, 9 * c), (bsz, ho, wo)


def folded_bn(layer):
    inv_std = 1.0 / jnp.sqrt(layer["rvar"] + BN_EPS)
    scale = layer["gamma"] * inv_std
    bias = layer["beta"] + (layer["b"] - layer["rmean"]) * scale
    return scale[None, :], bias[None, :]


def reference_encoder_forward(mel, params):
    """mel: (B, N_MELS, T) float32 -> (mu, logvar), each (B, Z_DIM)."""
    x = mel[:, :, :, None].astype(jnp.bfloat16)        # NHWC (B, F, T, 1)
    n_conv = len(params["conv"])
    feat_seq = None
    for li, layer in enumerate(params["conv"]):
        last = li == n_conv - 1
        patches, (bsz, ho, wo) = im2col_s2p1k3(
            x, row_order="wbh" if last else "bhw")
        cin, cout = layer["w"].shape[2], layer["w"].shape[3]
        w_flat = layer["w"].reshape(9 * cin, cout).astype(jnp.bfloat16)
        scale, bias = folded_bn(layer)
        y = matmul_affine(patches, w_flat, scale, bias,
                          relu=True, out_dtype=jnp.bfloat16)
        if not last:
            x = y.reshape(bsz, ho, wo, cout)
        else:
            # rows were (Wo=T3, B, Ho=F3) -> (T3, B, F3*C3); feature idx f*C3+c
            feat_seq = y.reshape(wo, bsz, ho * cout)

    T3, B_, D = feat_seq.shape
    C3 = params["conv"][-1]["w"].shape[3]
    F3 = D // C3
    # PyTorch feature order is c*F3 + f; ours is f*C3 + c -> permute W_ih rows
    # once (cheap, T-independent) instead of transposing the activation.
    wih_p = jnp.transpose(params["wih"].reshape(C3, F3, -1),
                          (1, 0, 2)).reshape(D, -1)
    ones = jnp.ones((1, wih_p.shape[1]), jnp.float32)

    # Hoisted GRU input projection: one big (T*B, 1280) x (1280, 768) matmul.
    gi = matmul_affine(feat_seq.reshape(T3 * B_, D), wih_p.astype(jnp.bfloat16),
                       ones, params["bih"], relu=False, out_dtype=jnp.float32)
    gi = gi.reshape(T3, B_, 3 * HIDDEN)

    mu, logvar = pl.pallas_call(
        _gru_head_kernel,
        out_shape=(jax.ShapeDtypeStruct((B_, Z_DIM), jnp.float32),
                   jax.ShapeDtypeStruct((B_, Z_DIM), jnp.float32)),
        in_specs=[VMEM_SPEC] * 7,
        out_specs=(VMEM_SPEC, VMEM_SPEC),
        compiler_params=pltpu.CompilerParams(vmem_limit_bytes=VMEM_LIMIT),
    )(gi, params["whh"].astype(jnp.bfloat16), params["bhh"],
      params["wmu"], params["bmu"], params["wlv"], params["blv"])
    return mu, logvar


# --------------------------- pure-JAX reference -----------------------------

def reference_encoder_forward_ref(mel, params):
    """Pure-JAX reference with matching bf16-operand / f32-accumulate math,
    using the original PyTorch activation layout + unpermuted W_ih (so it
    independently checks the layout/permutation plumbing of the Pallas path)."""
    x = mel[:, :, :, None].astype(jnp.bfloat16)
    for layer in params["conv"]:
        patches, (bsz, ho, wo) = im2col_s2p1k3(x)
        cin, cout = layer["w"].shape[2], layer["w"].shape[3]
        w_flat = layer["w"].reshape(9 * cin, cout).astype(jnp.bfloat16)
        scale, bias = folded_bn(layer)
        acc = jnp.dot(patches, w_flat, preferred_element_type=jnp.float32)
        y = jnp.maximum(acc * scale + bias, 0.0).astype(jnp.bfloat16)
        x = y.reshape(bsz, ho, wo, cout)
    b_, f3, t3, c3 = x.shape
    # matches PyTorch: x.permute(0, 3, 1, 2).view(b, t, c*f)
    feat = jnp.transpose(x, (0, 2, 3, 1)).reshape(b_, t3, c3 * f3)
    gi_all = (jnp.dot(feat.reshape(b_ * t3, -1),
                      params["wih"].astype(jnp.bfloat16),
                      preferred_element_type=jnp.float32)
              + params["bih"]).reshape(b_, t3, -1)
    whh = params["whh"].astype(jnp.bfloat16)
    H = HIDDEN
    h = jnp.zeros((b_, H), jnp.float32)
    for t in range(t3):
        gi = gi_all[:, t, :]
        gh = jnp.dot(h.astype(jnp.bfloat16), whh,
                     preferred_element_type=jnp.float32) + params["bhh"]
        r = jax.nn.sigmoid(gi[:, :H] + gh[:, :H])
        z = jax.nn.sigmoid(gi[:, H:2 * H] + gh[:, H:2 * H])
        n = jnp.tanh(gi[:, 2 * H:] + r * gh[:, 2 * H:])
        h = (1.0 - z) * n + z * h
    hi = jax.lax.Precision.HIGHEST
    mu = jnp.dot(h, params["wmu"], precision=hi) + params["bmu"]
    lv = jnp.dot(h, params["wlv"], precision=hi) + params["blv"]
    return mu, lv


# ------------------------------ parameters ----------------------------------

def init_params(key):
    ks = list(jax.random.split(key, 32))
    nxt = iter(ks)
    params = {"conv": []}
    for cin, cout in zip([1, 32, 64], [32, 64, 128]):
        params["conv"].append(dict(
            w=0.05 * jax.random.normal(next(nxt), (3, 3, cin, cout), jnp.float32),
            b=0.05 * jax.random.normal(next(nxt), (cout,), jnp.float32),
            gamma=1.0 + 0.05 * jax.random.normal(next(nxt), (cout,), jnp.float32),
            beta=0.05 * jax.random.normal(next(nxt), (cout,), jnp.float32),
            rmean=0.05 * jax.random.normal(next(nxt), (cout,), jnp.float32),
            rvar=1.0 + 0.1 * jnp.abs(jax.random.normal(next(nxt), (cout,), jnp.float32)),
        ))
    params["wih"] = 0.02 * jax.random.normal(next(nxt), (D_IN, 3 * HIDDEN), jnp.float32)
    params["whh"] = 0.05 * jax.random.normal(next(nxt), (HIDDEN, 3 * HIDDEN), jnp.float32)
    params["bih"] = 0.02 * jax.random.normal(next(nxt), (1, 3 * HIDDEN), jnp.float32)
    params["bhh"] = 0.02 * jax.random.normal(next(nxt), (1, 3 * HIDDEN), jnp.float32)
    params["wmu"] = 0.05 * jax.random.normal(next(nxt), (HIDDEN, Z_DIM), jnp.float32)
    params["bmu"] = 0.02 * jax.random.normal(next(nxt), (1, Z_DIM), jnp.float32)
    params["wlv"] = 0.05 * jax.random.normal(next(nxt), (HIDDEN, Z_DIM), jnp.float32)
    params["blv"] = 0.02 * jax.random.normal(next(nxt), (1, Z_DIM), jnp.float32)
    return params


# --------------------------------- main --------------------------------------

if __name__ == "__main__":
    B, T = 2, 32                               # small time axis; N_MELS fixed at 80
    mel = jax.random.normal(jax.random.PRNGKey(0), (B, N_MELS, T), jnp.float32)
    params = init_params(jax.random.PRNGKey(42))

    fwd = jax.jit(reference_encoder_forward)
    mu, logvar = fwd(mel, params)
    jax.block_until_ready((mu, logvar))

    assert mu.shape == (B, Z_DIM) and logvar.shape == (B, Z_DIM)
    mu_ref, lv_ref = reference_encoder_forward_ref(mel, params)
    assert jnp.allclose(mu, mu_ref, atol=2e-2, rtol=2e-2), \
        float(jnp.max(jnp.abs(mu - mu_ref)))
    assert jnp.allclose(logvar, lv_ref, atol=2e-2, rtol=2e-2), \
        float(jnp.max(jnp.abs(logvar - lv_ref)))

    print("KERNEL_OK")
</pallas_src>

<mosaic_0001>
module attributes {stable_mosaic.version = 11 : i64} {
  func.func @_matmul_affine_kernel(%arg0: i32, %arg1: memref<256x9xbf16, #tpu.memory_space<vmem>>, %arg2: memref<9x32xbf16, #tpu.memory_space<vmem>>, %arg3: memref<1x32xf32, #tpu.memory_space<vmem>>, %arg4: memref<1x32xf32, #tpu.memory_space<vmem>>, %arg5: memref<256x32xbf16, #tpu.memory_space<vmem>>) attributes {dimension_semantics = [#tpu.dimension_semantics<parallel>], iteration_bounds = array<i64: 5>, scalar_prefetch = 0 : i64, scratch_operands = 0 : i64, tpu.core_type = #tpu.core_type<tc>, window_params = [{transform_indices = @transform_0, window_bounds = array<i64: 256, 9>}, {pipeline_mode = #tpu.pipeline_mode<synchronous>, transform_indices = @transform_1, window_bounds = array<i64: 9, 32>}, {pipeline_mode = #tpu.pipeline_mode<synchronous>, transform_indices = @transform_2, window_bounds = array<i64: 1, 32>}, {pipeline_mode = #tpu.pipeline_mode<synchronous>, transform_indices = @transform_3, window_bounds = array<i64: 1, 32>}, {transform_indices = @transform_4, window_bounds = array<i64: 256, 32>}]} {
    %c0 = arith.constant 0 : index
    %c0_0 = arith.constant 0 : index
    %0 = vector.load %arg1[%c0, %c0_0] : memref<256x9xbf16, #tpu.memory_space<vmem>>, vector<256x9xbf16>
    %c0_1 = arith.constant 0 : index
    %c0_2 = arith.constant 0 : index
    %1 = vector.load %arg2[%c0_1, %c0_2] : memref<9x32xbf16, #tpu.memory_space<vmem>>, vector<9x32xbf16>
    %cst = arith.constant dense<0.000000e+00> : vector<256x32xf32>
    %2 = tpu.matmul %0, %1, %cst {dimension_numbers = #tpu.dot_dimension_numbers<[1], [0], [0], [1], [0, 0, 1, 1], [], []>} : vector<256x9xbf16>, vector<9x32xbf16>, vector<256x32xf32> -> vector<256x32xf32>
    %c0_3 = arith.constant 0 : index
    %c0_4 = arith.constant 0 : index
    %3 = vector.load %arg3[%c0_3, %c0_4] : memref<1x32xf32, #tpu.memory_space<vmem>>, vector<1x32xf32>
    %4 = vector.broadcast %3 : vector<1x32xf32> to vector<256x32xf32>
    %5 = arith.mulf %2, %4 : vector<256x32xf32>
    %c0_5 = arith.constant 0 : index
    %c0_6 = arith.constant 0 : index
    %6 = vector.load %arg4[%c0_5, %c0_6] : memref<1x32xf32, #tpu.memory_space<vmem>>, vector<1x32xf32>
    %7 = vector.broadcast %6 : vector<1x32xf32> to vector<256x32xf32>
    %8 = arith.addf %5, %7 : vector<256x32xf32>
    %cst_7 = arith.constant 0.000000e+00 : f32
    %9 = vector.broadcast %cst_7 : f32 to vector<256x32xf32>
    %10 = arith.maximumf %8, %9 : vector<256x32xf32>
    %11 = arith.truncf %10 : vector<256x32xf32> to vector<256x32xbf16>
    %c0_8 = arith.constant 0 : index
    %c0_9 = arith.constant 0 : index
    %12 = vector.load %arg5[%c0_8, %c0_9] : memref<256x32xbf16, #tpu.memory_space<vmem>>, vector<256x32xbf16>
    tpu.vector_store %arg5[%c0_8, %c0_9], %11 {strides = array<i32>} : memref<256x32xbf16, #tpu.memory_space<vmem>>, vector<256x32xbf16>,
    return
  }
  func.func @transform_0(%arg0: i32) -> (i32, i32) {
    %c0_i32 = arith.constant 0 : i32
    %c0_i32_0 = arith.constant 0 : i32
    return %arg0, %c0_i32 : i32, i32
  }
  func.func @transform_1(%arg0: i32) -> (i32, i32) {
    %c0_i32 = arith.constant 0 : i32
    %c0_i32_0 = arith.constant 0 : i32
    %c0_i32_1 = arith.constant 0 : i32
    return %c0_i32, %c0_i32_0 : i32, i32
  }
  func.func @transform_2(%arg0: i32) -> (i32, i32) {
    %c0_i32 = arith.constant 0 : i32
    %c0_i32_0 = arith.constant 0 : i32
    %c0_i32_1 = arith.constant 0 : i32
    return %c0_i32, %c0_i32_0 : i32, i32
  }
  func.func @transform_3(%arg0: i32) -> (i32, i32) {
    %c0_i32 = arith.constant 0 : i32
    %c0_i32_0 = arith.constant 0 : i32
    %c0_i32_1 = arith.constant 0 : i32
    return %c0_i32, %c0_i32_0 : i32, i32
  }
  func.func @transform_4(%arg0: i32) -> (i32, i32) {
    %c0_i32 = arith.constant 0 : i32
    %c0_i32_0 = arith.constant 0 : i32
    return %arg0, %c0_i32 : i32, i32
  }
}

module attributes {stable_mosaic.version = 11 : i64} {
  func.func @_matmul_affine_kernel(%arg0: i32, %arg1: memref<256x288xbf16, #tpu.memory_space<vmem>>, %arg2: memref<288x64xbf16, #tpu.memory_space<vmem>>, %arg3: memref<1x64xf32, #tpu.memory_space<vmem>>, %arg4: memref<1x64xf32, #tpu.memory_space<vmem>>, %arg5: memref<256x64xbf16, #tpu.memory_space<vmem>>) attributes {dimension_semantics = [#tpu.dimension_semantics<parallel>], iteration_bounds = array<i64: 2>, scalar_prefetch = 0 : i64, scratch_operands = 0 : i64, tpu.core_type = #tpu.core_type<tc>, window_params = [{transform_indices = @transform_0, window_bounds = array<i64: 256, 288>}, {pipeline_mode = #tpu.pipeline_mode<synchronous>, transform_indices = @transform_1, window_bounds = array<i64: 288, 64>}, {pipeline_mode = #tpu.pipeline_mode<synchronous>, transform_indices = @transform_2, window_bounds = array<i64: 1, 64>}, {pipeline_mode = #tpu.pipeline_mode<synchronous>, transform_indices = @transform_3, window_bounds = array<i64: 1, 64>}, {transform_indices = @transform_4, window_bounds = array<i64: 256, 64>}]} {
    %c0 = arith.constant 0 : index
    %c0_0 = arith.constant 0 : index
    %0 = vector.load %arg1[%c0, %c0_0] : memref<256x288xbf16, #tpu.memory_space<vmem>>, vector<256x288xbf16>
    %c0_1 = arith.constant 0 : index
    %c0_2 = arith.constant 0 : index
    %1 = vector.load %arg2[%c0_1, %c0_2] : memref<288x64xbf16, #tpu.memory_space<vmem>>, vector<288x64xbf16>
    %cst = arith.constant dense<0.000000e+00> : vector<256x64xf32>
    %2 = tpu.matmul %0, %1, %cst {dimension_numbers = #tpu.dot_dimension_numbers<[1], [0], [0], [1], [0, 0, 1, 1], [], []>} : vector<256x288xbf16>, vector<288x64xbf16>, vector<256x64xf32> -> vector<256x64xf32>
    %c0_3 = arith.constant 0 : index
    %c0_4 = arith.constant 0 : index
    %3 = vector.load %arg3[%c0_3, %c0_4] : memref<1x64xf32, #tpu.memory_space<vmem>>, vector<1x64xf32>
    %4 = vector.broadcast %3 : vector<1x64xf32> to vector<256x64xf32>
    %5 = arith.mulf %2, %4 : vector<256x64xf32>
    %c0_5 = arith.constant 0 : index
    %c0_6 = arith.constant 0 : index
    %6 = vector.load %arg4[%c0_5, %c0_6] : memref<1x64xf32, #tpu.memory_space<vmem>>, vector<1x64xf32>
    %7 = vector.broadcast %6 : vector<1x64xf32> to vector<256x64xf32>
    %8 = arith.addf %5, %7 : vector<256x64xf32>
    %cst_7 = arith.constant 0.000000e+00 : f32
    %9 = vector.broadcast %cst_7 : f32 to vector<256x64xf32>
    %10 = arith.maximumf %8, %9 : vector<256x64xf32>
    %11 = arith.truncf %10 : vector<256x64xf32> to vector<256x64xbf16>
    %c0_8 = arith.constant 0 : index
    %c0_9 = arith.constant 0 : index
    %12 = vector.load %arg5[%c0_8, %c0_9] : memref<256x64xbf16, #tpu.memory_space<vmem>>, vector<256x64xbf16>
    tpu.vector_store %arg5[%c0_8, %c0_9], %11 {strides = array<i32>} : memref<256x64xbf16, #tpu.memory_space<vmem>>, vector<256x64xbf16>,
    return
  }
  func.func @transform_0(%arg0: i32) -> (i32, i32) {
    %c0_i32 = arith.constant 0 : i32
    %c0_i32_0 = arith.constant 0 : i32
    return %arg0, %c0_i32 : i32, i32
  }
  func.func @transform_1(%arg0: i32) -> (i32, i32) {
    %c0_i32 = arith.constant 0 : i32
    %c0_i32_0 = arith.constant 0 : i32
    %c0_i32_1 = arith.constant 0 : i32
    return %c0_i32, %c0_i32_0 : i32, i32
  }
  func.func @transform_2(%arg0: i32) -> (i32, i32) {
    %c0_i32 = arith.constant 0 : i32
    %c0_i32_0 = arith.constant 0 : i32
    %c0_i32_1 = arith.constant 0 : i32
    return %c0_i32, %c0_i32_0 : i32, i32
  }
  func.func @transform_3(%arg0: i32) -> (i32, i32) {
    %c0_i32 = arith.constant 0 : i32
    %c0_i32_0 = arith.constant 0 : i32
    %c0_i32_1 = arith.constant 0 : i32
    return %c0_i32, %c0_i32_0 : i32, i32
  }
  func.func @transform_4(%arg0: i32) -> (i32, i32) {
    %c0_i32 = arith.constant 0 : i32
    %c0_i32_0 = arith.constant 0 : i32
    return %arg0, %c0_i32 : i32, i32
  }
}

module attributes {stable_mosaic.version = 11 : i64} {
  func.func @_matmul_affine_kernel(%arg0: i32, %arg1: memref<80x576xbf16, #tpu.memory_space<vmem>>, %arg2: memref<576x128xbf16, #tpu.memory_space<vmem>>, %arg3: memref<1x128xf32, #tpu.memory_space<vmem>>, %arg4: memref<1x128xf32, #tpu.memory_space<vmem>>, %arg5: memref<80x128xbf16, #tpu.memory_space<vmem>>) attributes {dimension_semantics = [#tpu.dimension_semantics<parallel>], iteration_bounds = array<i64: 1>, scalar_prefetch = 0 : i64, scratch_operands = 0 : i64, tpu.core_type = #tpu.core_type<tc>, window_params = [{transform_indices = @transform_0, window_bounds = array<i64: 80, 576>}, {pipeline_mode = #tpu.pipeline_mode<synchronous>, transform_indices = @transform_1, window_bounds = array<i64: 576, 128>}, {pipeline_mode = #tpu.pipeline_mode<synchronous>, transform_indices = @transform_2, window_bounds = array<i64: 1, 128>}, {pipeline_mode = #tpu.pipeline_mode<synchronous>, transform_indices = @transform_3, window_bounds = array<i64: 1, 128>}, {transform_indices = @transform_4, window_bounds = array<i64: 80, 128>}]} {
    %c0 = arith.constant 0 : index
    %c0_0 = arith.constant 0 : index
    %0 = vector.load %arg1[%c0, %c0_0] : memref<80x576xbf16, #tpu.memory_space<vmem>>, vector<80x576xbf16>
    %c0_1 = arith.constant 0 : index
    %c0_2 = arith.constant 0 : index
    %1 = vector.load %arg2[%c0_1, %c0_2] : memref<576x128xbf16, #tpu.memory_space<vmem>>, vector<576x128xbf16>
    %cst = arith.constant dense<0.000000e+00> : vector<80x128xf32>
    %2 = tpu.matmul %0, %1, %cst {dimension_numbers = #tpu.dot_dimension_numbers<[1], [0], [0], [1], [0, 0, 1, 1], [], []>} : vector<80x576xbf16>, vector<576x128xbf16>, vector<80x128xf32> -> vector<80x128xf32>
    %c0_3 = arith.constant 0 : index
    %c0_4 = arith.constant 0 : index
    %3 = vector.load %arg3[%c0_3, %c0_4] : memref<1x128xf32, #tpu.memory_space<vmem>>, vector<1x128xf32>
    %4 = vector.broadcast %3 : vector<1x128xf32> to vector<80x128xf32>
    %5 = arith.mulf %2, %4 : vector<80x128xf32>
    %c0_5 = arith.constant 0 : index
    %c0_6 = arith.constant 0 : index
    %6 = vector.load %arg4[%c0_5, %c0_6] : memref<1x128xf32, #tpu.memory_space<vmem>>, vector<1x128xf32>
    %7 = vector.broadcast %6 : vector<1x128xf32> to vector<80x128xf32>
    %8 = arith.addf %5, %7 : vector<80x128xf32>
    %cst_7 = arith.constant 0.000000e+00 : f32
    %9 = vector.broadcast %cst_7 : f32 to vector<80x128xf32>
    %10 = arith.maximumf %8, %9 : vector<80x128xf32>
    %11 = arith.truncf %10 : vector<80x128xf32> to vector<80x128xbf16>
    %c0_8 = arith.constant 0 : index
    %c0_9 = arith.constant 0 : index
    %12 = vector.load %arg5[%c0_8, %c0_9] : memref<80x128xbf16, #tpu.memory_space<vmem>>, vector<80x128xbf16>
    tpu.vector_store %arg5[%c0_8, %c0_9], %11 {strides = array<i32>} : memref<80x128xbf16, #tpu.memory_space<vmem>>, vector<80x128xbf16>,
    return
  }
  func.func @transform_0(%arg0: i32) -> (i32, i32) {
    %c0_i32 = arith.constant 0 : i32
    %c0_i32_0 = arith.constant 0 : i32
    return %arg0, %c0_i32 : i32, i32
  }
  func.func @transform_1(%arg0: i32) -> (i32, i32) {
    %c0_i32 = arith.constant 0 : i32
    %c0_i32_0 = arith.constant 0 : i32
    %c0_i32_1 = arith.constant 0 : i32
    return %c0_i32, %c0_i32_0 : i32, i32
  }
  func.func @transform_2(%arg0: i32) -> (i32, i32) {
    %c0_i32 = arith.constant 0 : i32
    %c0_i32_0 = arith.constant 0 : i32
    %c0_i32_1 = arith.constant 0 : i32
    return %c0_i32, %c0_i32_0 : i32, i32
  }
  func.func @transform_3(%arg0: i32) -> (i32, i32) {
    %c0_i32 = arith.constant 0 : i32
    %c0_i32_0 = arith.constant 0 : i32
    %c0_i32_1 = arith.constant 0 : i32
    return %c0_i32, %c0_i32_0 : i32, i32
  }
  func.func @transform_4(%arg0: i32) -> (i32, i32) {
    %c0_i32 = arith.constant 0 : i32
    %c0_i32_0 = arith.constant 0 : i32
    return %arg0, %c0_i32 : i32, i32
  }
}

module attributes {stable_mosaic.version = 11 : i64} {
  func.func @_matmul_affine_kernel(%arg0: i32, %arg1: memref<8x1280xbf16, #tpu.memory_space<vmem>>, %arg2: memref<1280x768xbf16, #tpu.memory_space<vmem>>, %arg3: memref<1x768xf32, #tpu.memory_space<vmem>>, %arg4: memref<1x768xf32, #tpu.memory_space<vmem>>, %arg5: memref<8x768xf32, #tpu.memory_space<vmem>>) attributes {dimension_semantics = [#tpu.dimension_semantics<parallel>], iteration_bounds = array<i64: 1>, scalar_prefetch = 0 : i64, scratch_operands = 0 : i64, tpu.core_type = #tpu.core_type<tc>, window_params = [{transform_indices = @transform_0, window_bounds = array<i64: 8, 1280>}, {pipeline_mode = #tpu.pipeline_mode<synchronous>, transform_indices = @transform_1, window_bounds = array<i64: 1280, 768>}, {pipeline_mode = #tpu.pipeline_mode<synchronous>, transform_indices = @transform_2, window_bounds = array<i64: 1, 768>}, {pipeline_mode = #tpu.pipeline_mode<synchronous>, transform_indices = @transform_3, window_bounds = array<i64: 1, 768>}, {transform_indices = @transform_4, window_bounds = array<i64: 8, 768>}]} {
    %c0 = arith.constant 0 : index
    %c0_0 = arith.constant 0 : index
    %0 = vector.load %arg1[%c0, %c0_0] : memref<8x1280xbf16, #tpu.memory_space<vmem>>, vector<8x1280xbf16>
    %c0_1 = arith.constant 0 : index
    %c0_2 = arith.constant 0 : index
    %1 = vector.load %arg2[%c0_1, %c0_2] : memref<1280x768xbf16, #tpu.memory_space<vmem>>, vector<1280x768xbf16>
    %cst = arith.constant dense<0.000000e+00> : vector<8x768xf32>
    %2 = tpu.matmul %0, %1, %cst {dimension_numbers = #tpu.dot_dimension_numbers<[1], [0], [0], [1], [0, 0, 1, 1], [], []>} : vector<8x1280xbf16>, vector<1280x768xbf16>, vector<8x768xf32> -> vector<8x768xf32>
    %c0_3 = arith.constant 0 : index
    %c0_4 = arith.constant 0 : index
    %3 = vector.load %arg3[%c0_3, %c0_4] : memref<1x768xf32, #tpu.memory_space<vmem>>, vector<1x768xf32>
    %4 = vector.broadcast %3 : vector<1x768xf32> to vector<8x768xf32>
    %5 = arith.mulf %2, %4 : vector<8x768xf32>
    %c0_5 = arith.constant 0 : index
    %c0_6 = arith.constant 0 : index
    %6 = vector.load %arg4[%c0_5, %c0_6] : memref<1x768xf32, #tpu.memory_space<vmem>>, vector<1x768xf32>
    %7 = vector.broadcast %6 : vector<1x768xf32> to vector<8x768xf32>
    %8 = arith.addf %5, %7 : vector<8x768xf32>
    %c0_7 = arith.constant 0 : index
    %c0_8 = arith.constant 0 : index
    %9 = vector.load %arg5[%c0_7, %c0_8] : memref<8x768xf32, #tpu.memory_space<vmem>>, vector<8x768xf32>
    tpu.vector_store %arg5[%c0_7, %c0_8], %8 {strides = array<i32>} : memref<8x768xf32, #tpu.memory_space<vmem>>, vector<8x768xf32>,
    return
  }
  func.func @transform_0(%arg0: i32) -> (i32, i32) {
    %c0_i32 = arith.constant 0 : i32
    %c0_i32_0 = arith.constant 0 : i32
    return %arg0, %c0_i32 : i32, i32
  }
  func.func @transform_1(%arg0: i32) -> (i32, i32) {
    %c0_i32 = arith.constant 0 : i32
    %c0_i32_0 = arith.constant 0 : i32
    %c0_i32_1 = arith.constant 0 : i32
    return %c0_i32, %c0_i32_0 : i32, i32
  }
  func.func @transform_2(%arg0: i32) -> (i32, i32) {
    %c0_i32 = arith.constant 0 : i32
    %c0_i32_0 = arith.constant 0 : i32
    %c0_i32_1 = arith.constant 0 : i32
    return %c0_i32, %c0_i32_0 : i32, i32
  }
  func.func @transform_3(%arg0: i32) -> (i32, i32) {
    %c0_i32 = arith.constant 0 : i32
    %c0_i32_0 = arith.constant 0 : i32
    %c0_i32_1 = arith.constant 0 : i32
    return %c0_i32, %c0_i32_0 : i32, i32
  }
  func.func @transform_4(%arg0: i32) -> (i32, i32) {
    %c0_i32 = arith.constant 0 : i32
    %c0_i32_0 = arith.constant 0 : i32
    return %arg0, %c0_i32 : i32, i32
  }
}

module attributes {stable_mosaic.version = 11 : i64} {
  func.func @_gru_head_kernel(%arg0: memref<4x2x768xf32, #tpu.memory_space<vmem>>, %arg1: memref<256x768xbf16, #tpu.memory_space<vmem>>, %arg2: memref<1x768xf32, #tpu.memory_space<vmem>>, %arg3: memref<256x64xf32, #tpu.memory_space<vmem>>, %arg4: memref<1x64xf32, #tpu.memory_space<vmem>>, %arg5: memref<256x64xf32, #tpu.memory_space<vmem>>, %arg6: memref<1x64xf32, #tpu.memory_space<vmem>>, %arg7: memref<2x64xf32, #tpu.memory_space<vmem>>, %arg8: memref<2x64xf32, #tpu.memory_space<vmem>>) attributes {dimension_semantics = [], scalar_prefetch = 0 : i64, scratch_operands = 0 : i64, tpu.core_type = #tpu.core_type<tc>} {
    %cst = arith.constant 0.000000e+00 : f32
    %0 = vector.broadcast %cst : f32 to vector<2x256xf32>
    %c0_i32 = arith.constant 0 : i32
    %1 = arith.index_cast %c0_i32 : i32 to index
    %c0 = arith.constant 0 : index
    %c0_0 = arith.constant 0 : index
    %2 = vector.load %arg0[%1, %c0, %c0_0] : memref<4x2x768xf32, #tpu.memory_space<vmem>>, vector<1x2x768xf32>
    %3 = vector.shape_cast %2 : vector<1x2x768xf32> to vector<2x768xf32>
    %4 = arith.truncf %0 : vector<2x256xf32> to vector<2x256xbf16>
    %c0_1 = arith.constant 0 : index
    %c0_2 = arith.constant 0 : index
    %5 = vector.load %arg1[%c0_1, %c0_2] : memref<256x768xbf16, #tpu.memory_space<vmem>>, vector<256x768xbf16>
    %cst_3 = arith.constant dense<0.000000e+00> : vector<2x768xf32>
    %6 = tpu.matmul %4, %5, %cst_3 {dimension_numbers = #tpu.dot_dimension_numbers<[1], [0], [0], [1], [0, 0, 1, 1], [], []>} : vector<2x256xbf16>, vector<256x768xbf16>, vector<2x768xf32> -> vector<2x768xf32>
    %c0_4 = arith.constant 0 : index
    %c0_5 = arith.constant 0 : index
    %7 = vector.load %arg2[%c0_4, %c0_5] : memref<1x768xf32, #tpu.memory_space<vmem>>, vector<1x768xf32>
    %8 = vector.broadcast %7 : vector<1x768xf32> to vector<2x768xf32>
    %9 = arith.addf %6, %8 : vector<2x768xf32>
    %10 = vector.extract_strided_slice %3 {offsets = [0, 0], sizes = [2, 256], strides = [1, 1]} : vector<2x768xf32> to vector<2x256xf32>
    %11 = vector.extract_strided_slice %9 {offsets = [0, 0], sizes = [2, 256], strides = [1, 1]} : vector<2x768xf32> to vector<2x256xf32>
    %12 = arith.addf %10, %11 : vector<2x256xf32>
    %13 = arith.negf %12 : vector<2x256xf32>
    %14 = math.exp %13 : vector<2x256xf32>
    %cst_6 = arith.constant 1.000000e+00 : f32
    %15 = vector.broadcast %cst_6 : f32 to vector<2x256xf32>
    %16 = arith.addf %15, %14 : vector<2x256xf32>
    %17 = arith.divf %15, %16 : vector<2x256xf32>
    %18 = vector.extract_strided_slice %3 {offsets = [0, 256], sizes = [2, 256], strides = [1, 1]} : vector<2x768xf32> to vector<2x256xf32>
    %19 = vector.extract_strided_slice %9 {offsets = [0, 256], sizes = [2, 256], strides = [1, 1]} : vector<2x768xf32> to vector<2x256xf32>
    %20 = arith.addf %18, %19 : vector<2x256xf32>
    %21 = arith.negf %20 : vector<2x256xf32>
    %22 = math.exp %21 : vector<2x256xf32>
    %cst_7 = arith.constant 1.000000e+00 : f32
    %23 = vector.broadcast %cst_7 : f32 to vector<2x256xf32>
    %24 = arith.addf %23, %22 : vector<2x256xf32>
    %25 = arith.divf %23, %24 : vector<2x256xf32>
    %26 = vector.extract_strided_slice %3 {offsets = [0, 512], sizes = [2, 256], strides = [1, 1]} : vector<2x768xf32> to vector<2x256xf32>
    %27 = vector.extract_strided_slice %9 {offsets = [0, 512], sizes = [2, 256], strides = [1, 1]} : vector<2x768xf32> to vector<2x256xf32>
    %28 = arith.mulf %17, %27 : vector<2x256xf32>
    %29 = arith.addf %26, %28 : vector<2x256xf32>
    %30 = math.tanh %29 : vector<2x256xf32>
    %cst_8 = arith.constant 1.000000e+00 : f32
    %31 = vector.broadcast %cst_8 : f32 to vector<2x256xf32>
    %32 = arith.subf %31, %25 : vector<2x256xf32>
    %33 = arith.mulf %32, %30 : vector<2x256xf32>
    %34 = arith.mulf %25, %0 : vector<2x256xf32>
    %35 = arith.addf %33, %34 : vector<2x256xf32>
    %c1_i32 = arith.constant 1 : i32
    %36 = arith.index_cast %c1_i32 : i32 to index
    %c0_9 = arith.constant 0 : index
    %c0_10 = arith.constant 0 : index
    %37 = vector.load %arg0[%36, %c0_9, %c0_10] : memref<4x2x768xf32, #tpu.memory_space<vmem>>, vector<1x2x768xf32>
    %38 = vector.shape_cast %37 : vector<1x2x768xf32> to vector<2x768xf32>
    %39 = arith.truncf %35 : vector<2x256xf32> to vector<2x256xbf16>
    %c0_11 = arith.constant 0 : index
    %c0_12 = arith.constant 0 : index
    %40 = vector.load %arg1[%c0_11, %c0_12] : memref<256x768xbf16, #tpu.memory_space<vmem>>, vector<256x768xbf16>
    %cst_13 = arith.constant dense<0.000000e+00> : vector<2x768xf32>
    %41 = tpu.matmul %39, %40, %cst_13 {dimension_numbers = #tpu.dot_dimension_numbers<[1], [0], [0], [1], [0, 0, 1, 1], [], []>} : vector<2x256xbf16>, vector<256x768xbf16>, vector<2x768xf32> -> vector<2x768xf32>
    %c0_14 = arith.constant 0 : index
    %c0_15 = arith.constant 0 : index
    %42 = vector.load %arg2[%c0_14, %c0_15] : memref<1x768xf32, #tpu.memory_space<vmem>>, vector<1x768xf32>
    %43 = vector.broadcast %42 : vector<1x768xf32> to vector<2x768xf32>
    %44 = arith.addf %41, %43 : vector<2x768xf32>
    %45 = vector.extract_strided_slice %38 {offsets = [0, 0], sizes = [2, 256], strides = [1, 1]} : vector<2x768xf32> to vector<2x256xf32>
    %46 = vector.extract_strided_slice %44 {offsets = [0, 0], sizes = [2, 256], strides = [1, 1]} : vector<2x768xf32> to vector<2x256xf32>
    %47 = arith.addf %45, %46 : vector<2x256xf32>
    %48 = arith.negf %47 : vector<2x256xf32>
    %49 = math.exp %48 : vector<2x256xf32>
    %cst_16 = arith.constant 1.000000e+00 : f32
    %50 = vector.broadcast %cst_16 : f32 to vector<2x256xf32>
    %51 = arith.addf %50, %49 : vector<2x256xf32>
    %52 = arith.divf %50, %51 : vector<2x256xf32>
    %53 = vector.extract_strided_slice %38 {offsets = [0, 256], sizes = [2, 256], strides = [1, 1]} : vector<2x768xf32> to vector<2x256xf32>
    %54 = vector.extract_strided_slice %44 {offsets = [0, 256], sizes = [2, 256], strides = [1, 1]} : vector<2x768xf32> to vector<2x256xf32>
    %55 = arith.addf %53, %54 : vector<2x256xf32>
    %56 = arith.negf %55 : vector<2x256xf32>
    %57 = math.exp %56 : vector<2x256xf32>
    %cst_17 = arith.constant 1.000000e+00 : f32
    %58 = vector.broadcast %cst_17 : f32 to vector<2x256xf32>
    %59 = arith.addf %58, %57 : vector<2x256xf32>
    %60 = arith.divf %58, %59 : vector<2x256xf32>
    %61 = vector.extract_strided_slice %38 {offsets = [0, 512], sizes = [2, 256], strides = [1, 1]} : vector<2x768xf32> to vector<2x256xf32>
    %62 = vector.extract_strided_slice %44 {offsets = [0, 512], sizes = [2, 256], strides = [1, 1]} : vector<2x768xf32> to vector<2x256xf32>
    %63 = arith.mulf %52, %62 : vector<2x256xf32>
    %64 = arith.addf %61, %63 : vector<2x256xf32>
    %65 = math.tanh %64 : vector<2x256xf32>
    %cst_18 = arith.constant 1.000000e+00 : f32
    %66 = vector.broadcast %cst_18 : f32 to vector<2x256xf32>
    %67 = arith.subf %66, %60 : vector<2x256xf32>
    %68 = arith.mulf %67, %65 : vector<2x256xf32>
    %69 = arith.mulf %60, %35 : vector<2x256xf32>
    %70 = arith.addf %68, %69 : vector<2x256xf32>
    %c2_i32 = arith.constant 2 : i32
    %71 = arith.index_cast %c2_i32 : i32 to index
    %c0_19 = arith.constant 0 : index
    %c0_20 = arith.constant 0 : index
    %72 = vector.load %arg0[%71, %c0_19, %c0_20] : memref<4x2x768xf32, #tpu.memory_space<vmem>>, vector<1x2x768xf32>
    %73 = vector.shape_cast %72 : vector<1x2x768xf32> to vector<2x768xf32>
    %74 = arith.truncf %70 : vector<2x256xf32> to vector<2x256xbf16>
    %c0_21 = arith.constant 0 : index
    %c0_22 = arith.constant 0 : index
    %75 = vector.load %arg1[%c0_21, %c0_22] : memref<256x768xbf16, #tpu.memory_space<vmem>>, vector<256x768xbf16>
    %cst_23 = arith.constant dense<0.000000e+00> : vector<2x768xf32>
    %76 = tpu.matmul %74, %75, %cst_23 {dimension_numbers = #tpu.dot_dimension_numbers<[1], [0], [0], [1], [0, 0, 1, 1], [], []>} : vector<2x256xbf16>, vector<256x768xbf16>, vector<2x768xf32> -> vector<2x768xf32>
    %c0_24 = arith.constant 0 : index
    %c0_25 = arith.constant 0 : index
    %77 = vector.load %arg2[%c0_24, %c0_25] : memref<1x768xf32, #tpu.memory_space<vmem>>, vector<1x768xf32>
    %78 = vector.broadcast %77 : vector<1x768xf32> to vector<2x768xf32>
    %79 = arith.addf %76, %78 : vector<2x768xf32>
    %80 = vector.extract_strided_slice %73 {offsets = [0, 0], sizes = [2, 256], strides = [1, 1]} : vector<2x768xf32> to vector<2x256xf32>
    %81 = vector.extract_strided_slice %79 {offsets = [0, 0], sizes = [2, 256], strides = [1, 1]} : vector<2x768xf32> to vector<2x256xf32>
    %82 = arith.addf %80, %81 : vector<2x256xf32>
    %83 = arith.negf %82 : vector<2x256xf32>
    %84 = math.exp %83 : vector<2x256xf32>
    %cst_26 = arith.constant 1.000000e+00 : f32
    %85 = vector.broadcast %cst_26 : f32 to vector<2x256xf32>
    %86 = arith.addf %85, %84 : vector<2x256xf32>
    %87 = arith.divf %85, %86 : vector<2x256xf32>
    %88 = vector.extract_strided_slice %73 {offsets = [0, 256], sizes = [2, 256], strides = [1, 1]} : vector<2x768xf32> to vector<2x256xf32>
    %89 = vector.extract_strided_slice %79 {offsets = [0, 256], sizes = [2, 256], strides = [1, 1]} : vector<2x768xf32> to vector<2x256xf32>
    %90 = arith.addf %88, %89 : vector<2x256xf32>
    %91 = arith.negf %90 : vector<2x256xf32>
    %92 = math.exp %91 : vector<2x256xf32>
    %cst_27 = arith.constant 1.000000e+00 : f32
    %93 = vector.broadcast %cst_27 : f32 to vector<2x256xf32>
    %94 = arith.addf %93, %92 : vector<2x256xf32>
    %95 = arith.divf %93, %94 : vector<2x256xf32>
    %96 = vector.extract_strided_slice %73 {offsets = [0, 512], sizes = [2, 256], strides = [1, 1]} : vector<2x768xf32> to vector<2x256xf32>
    %97 = vector.extract_strided_slice %79 {offsets = [0, 512], sizes = [2, 256], strides = [1, 1]} : vector<2x768xf32> to vector<2x256xf32>
    %98 = arith.mulf %87, %97 : vector<2x256xf32>
    %99 = arith.addf %96, %98 : vector<2x256xf32>
    %100 = math.tanh %99 : vector<2x256xf32>
    %cst_28 = arith.constant 1.000000e+00 : f32
    %101 = vector.broadcast %cst_28 : f32 to vector<2x256xf32>
    %102 = arith.subf %101, %95 : vector<2x256xf32>
    %103 = arith.mulf %102, %100 : vector<2x256xf32>
    %104 = arith.mulf %95, %70 : vector<2x256xf32>
    %105 = arith.addf %103, %104 : vector<2x256xf32>
    %c3_i32 = arith.constant 3 : i32
    %106 = arith.index_cast %c3_i32 : i32 to index
    %c0_29 = arith.constant 0 : index
    %c0_30 = arith.constant 0 : index
    %107 = vector.load %arg0[%106, %c0_29, %c0_30] : memref<4x2x768xf32, #tpu.memory_space<vmem>>, vector<1x2x768xf32>
    %108 = vector.shape_cast %107 : vector<1x2x768xf32> to vector<2x768xf32>
    %109 = arith.truncf %105 : vector<2x256xf32> to vector<2x256xbf16>
    %c0_31 = arith.constant 0 : index
    %c0_32 = arith.constant 0 : index
    %110 = vector.load %arg1[%c0_31, %c0_32] : memref<256x768xbf16, #tpu.memory_space<vmem>>, vector<256x768xbf16>
    %cst_33 = arith.constant dense<0.000000e+00> : vector<2x768xf32>
    %111 = tpu.matmul %109, %110, %cst_33 {dimension_numbers = #tpu.dot_dimension_numbers<[1], [0], [0], [1], [0, 0, 1, 1], [], []>} : vector<2x256xbf16>, vector<256x768xbf16>, vector<2x768xf32> -> vector<2x768xf32>
    %c0_34 = arith.constant 0 : index
    %c0_35 = arith.constant 0 : index
    %112 = vector.load %arg2[%c0_34, %c0_35] : memref<1x768xf32, #tpu.memory_space<vmem>>, vector<1x768xf32>
    %113 = vector.broadcast %112 : vector<1x768xf32> to vector<2x768xf32>
    %114 = arith.addf %111, %113 : vector<2x768xf32>
    %115 = vector.extract_strided_slice %108 {offsets = [0, 0], sizes = [2, 256], strides = [1, 1]} : vector<2x768xf32> to vector<2x256xf32>
    %116 = vector.extract_strided_slice %114 {offsets = [0, 0], sizes = [2, 256], strides = [1, 1]} : vector<2x768xf32> to vector<2x256xf32>
    %117 = arith.addf %115, %116 : vector<2x256xf32>
    %118 = arith.negf %117 : vector<2x256xf32>
    %119 = math.exp %118 : vector<2x256xf32>
    %cst_36 = arith.constant 1.000000e+00 : f32
    %120 = vector.broadcast %cst_36 : f32 to vector<2x256xf32>
    %121 = arith.addf %120, %119 : vector<2x256xf32>
    %122 = arith.divf %120, %121 : vector<2x256xf32>
    %123 = vector.extract_strided_slice %108 {offsets = [0, 256], sizes = [2, 256], strides = [1, 1]} : vector<2x768xf32> to vector<2x256xf32>
    %124 = vector.extract_strided_slice %114 {offsets = [0, 256], sizes = [2, 256], strides = [1, 1]} : vector<2x768xf32> to vector<2x256xf32>
    %125 = arith.addf %123, %124 : vector<2x256xf32>
    %126 = arith.negf %125 : vector<2x256xf32>
    %127 = math.exp %126 : vector<2x256xf32>
    %cst_37 = arith.constant 1.000000e+00 : f32
    %128 = vector.broadcast %cst_37 : f32 to vector<2x256xf32>
    %129 = arith.addf %128, %127 : vector<2x256xf32>
    %130 = arith.divf %128, %129 : vector<2x256xf32>
    %131 = vector.extract_strided_slice %108 {offsets = [0, 512], sizes = [2, 256], strides = [1, 1]} : vector<2x768xf32> to vector<2x256xf32>
    %132 = vector.extract_strided_slice %114 {offsets = [0, 512], sizes = [2, 256], strides = [1, 1]} : vector<2x768xf32> to vector<2x256xf32>
    %133 = arith.mulf %122, %132 : vector<2x256xf32>
    %134 = arith.addf %131, %133 : vector<2x256xf32>
    %135 = math.tanh %134 : vector<2x256xf32>
    %cst_38 = arith.constant 1.000000e+00 : f32
    %136 = vector.broadcast %cst_38 : f32 to vector<2x256xf32>
    %137 = arith.subf %136, %130 : vector<2x256xf32>
    %138 = arith.mulf %137, %135 : vector<2x256xf32>
    %139 = arith.mulf %130, %105 : vector<2x256xf32>
    %140 = arith.addf %138, %139 : vector<2x256xf32>
    %c4_i32 = arith.constant 4 : i32
    %c0_39 = arith.constant 0 : index
    %c0_40 = arith.constant 0 : index
    %141 = vector.load %arg3[%c0_39, %c0_40] : memref<256x64xf32, #tpu.memory_space<vmem>>, vector<256x64xf32>
    %cst_41 = arith.constant dense<0.000000e+00> : vector<2x64xf32>
    %142 = tpu.matmul %140, %141, %cst_41 {dimension_numbers = #tpu.dot_dimension_numbers<[1], [0], [0], [1], [0, 0, 1, 1], [], []>} : vector<2x256xf32>, vector<256x64xf32>, vector<2x64xf32> -> vector<2x64xf32>
    %c0_42 = arith.constant 0 : index
    %c0_43 = arith.constant 0 : index
    %143 = vector.load %arg4[%c0_42, %c0_43] : memref<1x64xf32, #tpu.memory_space<vmem>>, vector<1x64xf32>
    %144 = vector.broadcast %143 : vector<1x64xf32> to vector<2x64xf32>
    %145 = arith.addf %142, %144 : vector<2x64xf32>
    %c0_44 = arith.constant 0 : index
    %c0_45 = arith.constant 0 : index
    %146 = vector.load %arg7[%c0_44, %c0_45] : memref<2x64xf32, #tpu.memory_space<vmem>>, vector<2x64xf32>
    tpu.vector_store %arg7[%c0_44, %c0_45], %145 {strides = array<i32>} : memref<2x64xf32, #tpu.memory_space<vmem>>, vector<2x64xf32>,
    %c0_46 = arith.constant 0 : index
    %c0_47 = arith.constant 0 : index
    %147 = vector.load %arg5[%c0_46, %c0_47] : memref<256x64xf32, #tpu.memory_space<vmem>>, vector<256x64xf32>
    %cst_48 = arith.constant dense<0.000000e+00> : vector<2x64xf32>
    %148 = tpu.matmul %140, %147, %cst_48 {dimension_numbers = #tpu.dot_dimension_numbers<[1], [0], [0], [1], [0, 0, 1, 1], [], []>} : vector<2x256xf32>, vector<256x64xf32>, vector<2x64xf32> -> vector<2x64xf32>
    %c0_49 = arith.constant 0 : index
    %c0_50 = arith.constant 0 : index
    %149 = vector.load %arg6[%c0_49, %c0_50] : memref<1x64xf32, #tpu.memory_space<vmem>>, vector<1x64xf32>
    %150 = vector.broadcast %149 : vector<1x64xf32> to vector<2x64xf32>
    %151 = arith.addf %148, %150 : vector<2x64xf32>
    %c0_51 = arith.constant 0 : index
    %c0_52 = arith.constant 0 : index
    %152 = vector.load %arg8[%c0_51, %c0_52] : memref<2x64xf32, #tpu.memory_space<vmem>>, vector<2x64xf32>
    tpu.vector_store %arg8[%c0_51, %c0_52], %151 {strides = array<i32>} : memref<2x64xf32, #tpu.memory_space<vmem>>, vector<2x64xf32>,
    return
  }
}

</mosaic_0001>

<bundles_post_ra>
// kernel: reference_encoder_forward.5
= control target key start
LH: loop header
LB: loop body
LE: loop exit
PB: predicated region body
PF: predicated region fallthrough
CT: control target
= control target key end

     0   :  { %s1088_s15 = smov 0   ;;  %s1289_s0 = inlined_call_operand.vmem [shape: bf16[1280,9], index: 0, kind: input, shape index: {}]   ;;  %s1290_s1 = inlined_call_operand.vmem [shape: bf16[9,32], index: 1, kind: input, shape index: {}]   ;;  %s1291_s2 = inlined_call_operand.vmem [shape: f32[1,32], index: 2, kind: input, shape index: {}]   ;;  %s1292_s3 = inlined_call_operand.vmem [shape: f32[1,32], index: 3, kind: input, shape index: {}]   ;;  %s1293_s4 = inlined_call_operand.vmem [shape: bf16[1280,32], index: 4, kind: output, shape index: {}]  }
   0x1 LB: > { %s865_s16 = sadd.s32 4294967295, %s1060_s15   ;;  %p869_p0 = scmp.ge.s32.totalorder %s1060_s15, 1  ;;  %s1060_s15 = sphi %s1088_s15, %s14_s15  }
   0x2   : > { %p163_p1 = scmp.lt.s32.totalorder %s1060_s15, 6 }
   0x4   : > { %p164_p2 = pnand %p869_p0, %p163_p1 }
   0x5   : > { %s870_s19 = sshll.u32 (!%p164_p2), %s865_s16, 5 }
   0x6   : > { %167 = sbr.rel (%p164_p2) target bundleno = 253 (0xfd), region = 36  ;;  %p190_p3 = scmp.lt.s32.totalorder (!%p164_p2), %s870_s19, 159 }
   0xb   : > { %v1037_v0 = vld [vmem:[%s1290_s1] sm:$0x1f]   ;;  %vm370_vm0 = vcmask 1043456   ;;  %vm371_vm1 = vcmask 1044480   ;;  %v1062_v1 = vmov 65535   ;;  %s1295_s19 = smov (!%p190_p3, %s870_s19), 159 }
   0xc   : > { %v372_v2 = vsel %vm370_vm0, 4294967295, %v1062_v1  ;;  %s871_s20 = sshll.u32 %s1295_s19, 2  ;;  %vm321_vm2 = vcmask 72704   ;;  %v1144_v21 = vld [vmem:[%s1291_s2] ss:$0 sm:$0xff]  ;;  %vm776_vm3 = vcmask 257024  }
   0xd   : > { %v373_v3 = vsel %vm371_vm1, %v372_v2, 0  ;;  %s1107_s23 = scalar_lea.vmem %s1289_s0, %s871_s20  ;;  %v1149_v23 = vld [vmem:[%s1292_s3] ss:$0 sm:$0xff]  ;;  %s1164_s30 = scalar_lea.vmem %s1293_s4, %s871_s20 }
   0xe   : > { %v375_v4 = vand.u32 %v1037_v0, %v373_v3  ;;  %v1038_v5 = vld [vmem:[%s1107_s23] sm:$0xff]   ;;  %v1040_v7 = vld [vmem:[%s1107_s23 + $0x8] sm:$0xff]   ;;  %v1042_v9 = vld [vmem:[%s1107_s23 + $0x10] sm:$0xff]  }
   0xf   : > { %v1039_v6 = vld [vmem:[%s1107_s23 + $0x40] sm:$0xff]   ;;  %994 = vmatprep.mubr.msk.bf16.mxu0 %vm321_vm2, %v1038_v5  ;;  %v1041_v8 = vld [vmem:[%s1107_s23 + $0x48] sm:$0xff]   ;;  %v1043_v10 = vld [vmem:[%s1107_s23 + $0x50] sm:$0xff]  }
  0x10   : > { %992 = vmatprep.subr.bf16.mxu0 %v375_v4  ;;  %1026 = vmatprep.subr.bf16.mxu1 %v375_v4  ;;  %v1044_v11 = vld [vmem:[%s1107_s23 + $0x18] sm:$0xff]   ;;  %v1046_v13 = vld [vmem:[%s1107_s23 + $0x20] sm:$0xff]   ;;  %v1048_v15 = vld [vmem:[%s1107_s23 + $0x28] sm:$0xff]  }
  0x11   : > { %993 = vmatpush3.bf16.msra.mxu0 %v375_v4  ;;  %1027 = vmatpush3.bf16.msra.mxu1 %v375_v4  ;;  %v1045_v12 = vld [vmem:[%s1107_s23 + $0x58] sm:$0xff]   ;;  %v1047_v14 = vld [vmem:[%s1107_s23 + $0x60] sm:$0xff]   ;;  %v1049_v16 = vld [vmem:[%s1107_s23 + $0x68] sm:$0xff]  }
  0x12   : > { %1010 = vmatprep.mubr.msk.bf16.mxu1 %vm321_vm2, %v1039_v6  ;;  %v1050_v17 = vld [vmem:[%s1107_s23 + $0x30] sm:$0xff]   ;;  %v1052_v19 = vld [vmem:[%s1107_s23 + $0x38] sm:$0xff]  }
  0x13   : > { %v1051_v18 = vld [vmem:[%s1107_s23 + $0x70] sm:$0xff]   ;;  %v1053_v20 = vld [vmem:[%s1107_s23 + $0x78] sm:$0xff]  }
  0x14   : > { %995 = vmatmul.mubr.msk.bf16.vlgmr.msra.gmra.mxu0 %vm321_vm2, %v1040_v7  ;;  %1011 = vmatmul.mubr.msk.bf16.vlgmr.msra.gmra.mxu1 %vm321_vm2, %v1041_v8 }
  0x15   : > { %998 = vmatprep.mubr.msk.bf16.mxu0 %vm321_vm2, %v1042_v9  ;;  %1014 = vmatprep.mubr.msk.bf16.mxu1 %vm321_vm2, %v1043_v10 }
  0x1c   : > { %999 = vmatmul.mubr.msk.bf16.gmra.mxu0 %vm321_vm2, %v1044_v11  ;;  %1015 = vmatmul.mubr.msk.bf16.gmra.mxu1 %vm321_vm2, %v1045_v12 }
  0x1d   : > { %1002 = vmatprep.mubr.msk.bf16.mxu0 %vm321_vm2, %v1046_v13  ;;  %1018 = vmatprep.mubr.msk.bf16.mxu1 %vm321_vm2, %v1047_v14 }
  0x24   : > { %1003 = vmatmul.mubr.msk.bf16.gmra.mxu0 %vm321_vm2, %v1048_v15  ;;  %1019 = vmatmul.mubr.msk.bf16.gmra.mxu1 %vm321_vm2, %v1049_v16 }
  0x25   : > { %1006 = vmatprep.mubr.msk.bf16.mxu0 %vm321_vm2, %v1050_v17  ;;  %1022 = vmatprep.mubr.msk.bf16.mxu1 %vm321_vm2, %v1051_v18 }
  0x2c   : > { %1007 = vmatmul.mubr.msk.bf16.gmra.mxu0 %vm321_vm2, %v1052_v19  ;;  %1023 = vmatmul.mubr.msk.bf16.gmra.mxu1 %vm321_vm2, %v1053_v20 }
  0xd4   : > { %v996_v22 = vpop.f32.mrf.mxu0  ;;  %v1012_v25 = vpop.f32.mrf.mxu1 }
  0xd5   : > { %v547_v24 = vmul.f32 %v996_v22, %v1144_v21  ;;  %v563_v26 = vmul.f32 %v1012_v25, %v1144_v21 }
  0xd6   : > { %v411_v27 = vpop.f32.mrf.mxu0  ;;  %v475_v30 = vpop.f32.mrf.mxu1 }
  0xd7   : > { %v586_v28 = vadd.f32 %v1149_v23, %v547_v24  ;;  %v545_v29 = vmul.f32 %v1144_v21, %v411_v27  ;;  %v602_v31 = vadd.f32 %v1149_v23, %v563_v26  ;;  %v561_v32 = vmul.f32 %v1144_v21, %v475_v30 }
  0xd8   : > { %v997_v33 = vpop.f32.mrf.mxu0  ;;  %v1013_v37 = vpop.f32.mrf.mxu1 }
  0xd9   : > { %v618_v34 = vmax.f32 %v586_v28, 0.0  ;;  %v584_v35 = vadd.f32 %v1149_v23, %v545_v29  ;;  %v548_v36 = vmul.f32 %v997_v33, %v1144_v21  ;;  %v634_v38 = vmax.f32 %v602_v31, 0.0 }
  0xda   : > { %v600_v39 = vadd.f32 %v1149_v23, %v561_v32  ;;  %v564_v40 = vmul.f32 %v1013_v37, %v1144_v21  ;;  %v414_v41 = vpop.f32.mrf.mxu0  ;;  %v478_v46 = vpop.f32.mrf.mxu1 }
  0xdb   : > { %v945_v42 = vpack.c.bf16 %v618_v34, %v618_v34  ;;  %v616_v43 = vmax.f32 %v584_v35, 0.0  ;;  %v587_v44 = vadd.f32 %v1149_v23, %v548_v36  ;;  %v546_v45 = vmul.f32 %v1144_v21, %v414_v41 }
  0xdc   : > { %v961_v47 = vpack.c.bf16 %v634_v38, %v634_v38  ;;  %v632_v48 = vmax.f32 %v600_v39, 0.0  ;;  %v603_v49 = vadd.f32 %v1149_v23, %v564_v40  ;;  %v562_v50 = vmul.f32 %v1144_v21, %v478_v46  ;;  %v1000_v51 = vpop.f32.mrf.mxu0  ;;  %v1016_v56 = vpop.f32.mrf.mxu1 }
  0xdd   : > { %779 = vst.msk [vmem:[%s1164_s30 + $0x8] sm:$0xf] %vm776_vm3, %v945_v42  ;;  %v943_v52 = vpack.c.bf16 %v616_v43, %v616_v43  ;;  %v619_v53 = vmax.f32 %v587_v44, 0.0  ;;  %v585_v54 = vadd.f32 %v1149_v23, %v546_v45  ;;  %v551_v55 = vmul.f32 %v1000_v51, %v1144_v21 }
  0xde   : > { %795 = vst.msk [vmem:[%s1164_s30 + $0x48] sm:$0xf] %vm776_vm3, %v961_v47  ;;  %v959_v57 = vpack.c.bf16 %v632_v48, %v632_v48  ;;  %v635_v58 = vmax.f32 %v603_v49, 0.0  ;;  %v601_v59 = vadd.f32 %v1149_v23, %v562_v50  ;;  %v567_v60 = vmul.f32 %v1016_v56, %v1144_v21  ;;  %v427_v61 = vpop.f32.mrf.mxu0  ;;  %v491_v2 = vpop.f32.mrf.mxu1 }
  0xdf   : > { %777 = vst.msk [vmem:[%s1164_s30] sm:$0xf] %vm776_vm3, %v943_v52  ;;  %v946_v62 = vpack.c.bf16 %v619_v53, %v619_v53  ;;  %v617_v63 = vmax.f32 %v585_v54, 0.0  ;;  %v590_v0 = vadd.f32 %v1149_v23, %v551_v55  ;;  %v549_v1 = vmul.f32 %v1144_v21, %v427_v61 }
  0xe0   : > { %793 = vst.msk [vmem:[%s1164_s30 + $0x40] sm:$0xf] %vm776_vm3, %v959_v57  ;;  %v962_v3 = vpack.c.bf16 %v635_v58, %v635_v58  ;;  %v633_v4 = vmax.f32 %v601_v59, 0.0  ;;  %v606_v5 = vadd.f32 %v1149_v23, %v567_v60  ;;  %v565_v6 = vmul.f32 %v1144_v21, %v491_v2  ;;  %v1001_v7 = vpop.f32.mrf.mxu0  ;;  %v1017_v12 = vpop.f32.mrf.mxu1 }
  0xe1   : > { %780 = vst.msk [vmem:[%s1164_s30 + $0xc] sm:$0xf] %vm776_vm3, %v946_v62  ;;  %v944_v8 = vpack.c.bf16 %v617_v63, %v617_v63  ;;  %v622_v9 = vmax.f32 %v590_v0, 0.0  ;;  %v588_v10 = vadd.f32 %v1149_v23, %v549_v1  ;;  %v552_v11 = vmul.f32 %v1001_v7, %v1144_v21 }
  0xe2   : > { %796 = vst.msk [vmem:[%s1164_s30 + $0x4c] sm:$0xf] %vm776_vm3, %v962_v3  ;;  %v960_v13 = vpack.c.bf16 %v633_v4, %v633_v4  ;;  %v638_v14 = vmax.f32 %v606_v5, 0.0  ;;  %v604_v15 = vadd.f32 %v1149_v23, %v565_v6  ;;  %v568_v16 = vmul.f32 %v1017_v12, %v1144_v21  ;;  %v430_v17 = vpop.f32.mrf.mxu0  ;;  %v494_v24 = vpop.f32.mrf.mxu1 }
  0xe3   : > { %778 = vst.msk [vmem:[%s1164_s30 + $0x4] sm:$0xf] %vm776_vm3, %v944_v8  ;;  %v949_v18 = vpack.c.bf16 %v622_v9, %v622_v9  ;;  %v620_v19 = vmax.f32 %v588_v10, 0.0  ;;  %v591_v20 = vadd.f32 %v1149_v23, %v552_v11  ;;  %v550_v22 = vmul.f32 %v1144_v21, %v430_v17 }
  0xe4   : > { %794 = vst.msk [vmem:[%s1164_s30 + $0x44] sm:$0xf] %vm776_vm3, %v960_v13  ;;  %v965_v25 = vpack.c.bf16 %v638_v14, %v638_v14  ;;  %v636_v26 = vmax.f32 %v604_v15, 0.0  ;;  %v607_v27 = vadd.f32 %v1149_v23, %v568_v16  ;;  %v566_v28 = vmul.f32 %v1144_v21, %v494_v24  ;;  %v1004_v29 = vpop.f32.mrf.mxu0  ;;  %v1020_v34 = vpop.f32.mrf.mxu1 }
  0xe5   : > { %783 = vst.msk [vmem:[%s1164_s30 + $0x18] sm:$0xf] %vm776_vm3, %v949_v18  ;;  %v947_v30 = vpack.c.bf16 %v620_v19, %v620_v19  ;;  %v623_v31 = vmax.f32 %v591_v20, 0.0  ;;  %v589_v32 = vadd.f32 %v1149_v23, %v550_v22  ;;  %v555_v33 = vmul.f32 %v1004_v29, %v1144_v21 }
  0xe6   : > { %799 = vst.msk [vmem:[%s1164_s30 + $0x58] sm:$0xf] %vm776_vm3, %v965_v25  ;;  %v963_v35 = vpack.c.bf16 %v636_v26, %v636_v26  ;;  %v639_v36 = vmax.f32 %v607_v27, 0.0  ;;  %v605_v37 = vadd.f32 %v1149_v23, %v566_v28  ;;  %v571_v38 = vmul.f32 %v1020_v34, %v1144_v21  ;;  %v443_v39 = vpop.f32.mrf.mxu0  ;;  %v507_v44 = vpop.f32.mrf.mxu1 }
  0xe7   : > { %781 = vst.msk [vmem:[%s1164_s30 + $0x10] sm:$0xf] %vm776_vm3, %v947_v30  ;;  %v950_v40 = vpack.c.bf16 %v623_v31, %v623_v31  ;;  %v621_v41 = vmax.f32 %v589_v32, 0.0  ;;  %v594_v42 = vadd.f32 %v1149_v23, %v555_v33  ;;  %v553_v43 = vmul.f32 %v1144_v21, %v443_v39 }
  0xe8   : > { %797 = vst.msk [vmem:[%s1164_s30 + $0x50] sm:$0xf] %vm776_vm3, %v963_v35  ;;  %v966_v45 = vpack.c.bf16 %v639_v36, %v639_v36  ;;  %v637_v46 = vmax.f32 %v605_v37, 0.0  ;;  %v610_v47 = vadd.f32 %v1149_v23, %v571_v38  ;;  %v569_v48 = vmul.f32 %v1144_v21, %v507_v44  ;;  %v1005_v49 = vpop.f32.mrf.mxu0  ;;  %v1021_v54 = vpop.f32.mrf.mxu1 }
  0xe9   : > { %784 = vst.msk [vmem:[%s1164_s30 + $0x1c] sm:$0xf] %vm776_vm3, %v950_v40  ;;  %v948_v50 = vpack.c.bf16 %v621_v41, %v621_v41  ;;  %v626_v51 = vmax.f32 %v594_v42, 0.0  ;;  %v592_v52 = vadd.f32 %v1149_v23, %v553_v43  ;;  %v556_v53 = vmul.f32 %v1005_v49, %v1144_v21 }
  0xea   : > { %800 = vst.msk [vmem:[%s1164_s30 + $0x5c] sm:$0xf] %vm776_vm3, %v966_v45  ;;  %v964_v55 = vpack.c.bf16 %v637_v46, %v637_v46  ;;  %v642_v56 = vmax.f32 %v610_v47, 0.0  ;;  %v608_v57 = vadd.f32 %v1149_v23, %v569_v48  ;;  %v572_v58 = vmul.f32 %v1021_v54, %v1144_v21  ;;  %v446_v59 = vpop.f32.mrf.mxu0  ;;  %v510_v0 = vpop.f32.mrf.mxu1 }
  0xeb   : > { %782 = vst.msk [vmem:[%s1164_s30 + $0x14] sm:$0xf] %vm776_vm3, %v948_v50  ;;  %v953_v60 = vpack.c.bf16 %v626_v51, %v626_v51  ;;  %v624_v61 = vmax.f32 %v592_v52, 0.0  ;;  %v595_v62 = vadd.f32 %v1149_v23, %v556_v53  ;;  %v554_v63 = vmul.f32 %v1144_v21, %v446_v59 }
  0xec   : > { %798 = vst.msk [vmem:[%s1164_s30 + $0x54] sm:$0xf] %vm776_vm3, %v964_v55  ;;  %v969_v1 = vpack.c.bf16 %v642_v56, %v642_v56  ;;  %v640_v2 = vmax.f32 %v608_v57, 0.0  ;;  %v611_v3 = vadd.f32 %v1149_v23, %v572_v58  ;;  %v570_v4 = vmul.f32 %v1144_v21, %v510_v0  ;;  %v1008_v5 = vpop.f32.mrf.mxu0  ;;  %v1024_v10 = vpop.f32.mrf.mxu1 }
  0xed   : > { %787 = vst.msk [vmem:[%s1164_s30 + $0x28] sm:$0xf] %vm776_vm3, %v953_v60  ;;  %v951_v6 = vpack.c.bf16 %v624_v61, %v624_v61  ;;  %v627_v7 = vmax.f32 %v595_v62, 0.0  ;;  %v593_v8 = vadd.f32 %v1149_v23, %v554_v63  ;;  %v559_v9 = vmul.f32 %v1008_v5, %v1144_v21 }
  0xee   : > { %803 = vst.msk [vmem:[%s1164_s30 + $0x68] sm:$0xf] %vm776_vm3, %v969_v1  ;;  %v967_v11 = vpack.c.bf16 %v640_v2, %v640_v2  ;;  %v643_v12 = vmax.f32 %v611_v3, 0.0  ;;  %v609_v13 = vadd.f32 %v1149_v23, %v570_v4  ;;  %v575_v14 = vmul.f32 %v1024_v10, %v1144_v21  ;;  %v459_v15 = vpop.f32.mrf.mxu0  ;;  %v523_v20 = vpop.f32.mrf.mxu1 }
  0xef   : > { %785 = vst.msk [vmem:[%s1164_s30 + $0x20] sm:$0xf] %vm776_vm3, %v951_v6  ;;  %v954_v16 = vpack.c.bf16 %v627_v7, %v627_v7  ;;  %v625_v17 = vmax.f32 %v593_v8, 0.0  ;;  %v598_v18 = vadd.f32 %v1149_v23, %v559_v9  ;;  %v557_v19 = vmul.f32 %v1144_v21, %v459_v15 }
  0xf0   : > { %801 = vst.msk [vmem:[%s1164_s30 + $0x60] sm:$0xf] %vm776_vm3, %v967_v11  ;;  %v970_v22 = vpack.c.bf16 %v643_v12, %v643_v12  ;;  %v641_v24 = vmax.f32 %v609_v13, 0.0  ;;  %v614_v25 = vadd.f32 %v1149_v23, %v575_v14  ;;  %v573_v26 = vmul.f32 %v1144_v21, %v523_v20  ;;  %v1009_v27 = vpop.f32.mrf.mxu0  ;;  %v1025_v32 = vpop.f32.mrf.mxu1 }
  0xf1   : > { %788 = vst.msk [vmem:[%s1164_s30 + $0x2c] sm:$0xf] %vm776_vm3, %v954_v16  ;;  %v952_v28 = vpack.c.bf16 %v625_v17, %v625_v17  ;;  %v630_v29 = vmax.f32 %v598_v18, 0.0  ;;  %v596_v30 = vadd.f32 %v1149_v23, %v557_v19  ;;  %v560_v31 = vmul.f32 %v1009_v27, %v1144_v21 }
  0xf2   : > { %804 = vst.msk [vmem:[%s1164_s30 + $0x6c] sm:$0xf] %vm776_vm3, %v970_v22  ;;  %v968_v33 = vpack.c.bf16 %v641_v24, %v641_v24  ;;  %v646_v34 = vmax.f32 %v614_v25, 0.0  ;;  %v612_v35 = vadd.f32 %v1149_v23, %v573_v26  ;;  %v576_v36 = vmul.f32 %v1025_v32, %v1144_v21  ;;  %v462_v37 = vpop.f32.mrf.mxu0  ;;  %v526_v42 = vpop.f32.mrf.mxu1 }
  0xf3   : > { %786 = vst.msk [vmem:[%s1164_s30 + $0x24] sm:$0xf] %vm776_vm3, %v952_v28  ;;  %v957_v38 = vpack.c.bf16 %v630_v29, %v630_v29  ;;  %v628_v39 = vmax.f32 %v596_v30, 0.0  ;;  %v599_v40 = vadd.f32 %v1149_v23, %v560_v31  ;;  %v558_v41 = vmul.f32 %v1144_v21, %v462_v37 }
  0xf4   : > { %802 = vst.msk [vmem:[%s1164_s30 + $0x64] sm:$0xf] %vm776_vm3, %v968_v33  ;;  %v973_v43 = vpack.c.bf16 %v646_v34, %v646_v34  ;;  %v644_v44 = vmax.f32 %v612_v35, 0.0  ;;  %v615_v45 = vadd.f32 %v1149_v23, %v576_v36  ;;  %v574_v46 = vmul.f32 %v1144_v21, %v526_v42 }
  0xf5   : > { %791 = vst.msk [vmem:[%s1164_s30 + $0x38] sm:$0xf] %vm776_vm3, %v957_v38  ;;  %v955_v47 = vpack.c.bf16 %v628_v39, %v628_v39  ;;  %v631_v48 = vmax.f32 %v599_v40, 0.0  ;;  %v597_v49 = vadd.f32 %v1149_v23, %v558_v41 }
  0xf6   : > { %807 = vst.msk [vmem:[%s1164_s30 + $0x78] sm:$0xf] %vm776_vm3, %v973_v43  ;;  %v971_v50 = vpack.c.bf16 %v644_v44, %v644_v44  ;;  %v647_v51 = vmax.f32 %v615_v45, 0.0  ;;  %v613_v52 = vadd.f32 %v1149_v23, %v574_v46 }
  0xf7   : > { %789 = vst.msk [vmem:[%s1164_s30 + $0x30] sm:$0xf] %vm776_vm3, %v955_v47  ;;  %v958_v53 = vpack.c.bf16 %v631_v48, %v631_v48  ;;  %v629_v54 = vmax.f32 %v597_v49, 0.0 }
  0xf8   : > { %805 = vst.msk [vmem:[%s1164_s30 + $0x70] sm:$0xf] %vm776_vm3, %v971_v50  ;;  %v974_v21 = vpack.c.bf16 %v647_v51, %v647_v51  ;;  %v645_v55 = vmax.f32 %v613_v52, 0.0 }
  0xf9   : > { %792 = vst.msk [vmem:[%s1164_s30 + $0x3c] sm:$0xf] %vm776_vm3, %v958_v53  ;;  %v956_v56 = vpack.c.bf16 %v629_v54, %v629_v54 }
  0xfa   : > { %808 = vst.msk [vmem:[%s1164_s30 + $0x7c] sm:$0xf] %vm776_vm3, %v974_v21  ;;  %v972_v57 = vpack.c.bf16 %v645_v55, %v645_v55 }
  0xfb   : > { %790 = vst.msk [vmem:[%s1164_s30 + $0x34] sm:$0xf] %vm776_vm3, %v956_v56 }
  0xfc   : > { %806 = vst.msk [vmem:[%s1164_s30 + $0x74] sm:$0xf] %vm776_vm3, %v972_v57 }
  0xfd PF: > { %s14_s15 = sadd.s32 1, %s1060_s15  }
  0xfe   : > { %p11_p4 = scmp.ge.s32.totalorder %s14_s15, 7  }
 0x100   :  { %13 = sbr.rel (!%p11_p4) target bundleno = 1 (0x1), region = 66 }

// kernel: reference_encoder_forward.6
= control target key start
LH: loop header
LB: loop body
LE: loop exit
PB: predicated region body
PF: predicated region fallthrough
CT: control target
= control target key end

     0   :  { %s1816_s15 = smov 0   ;;  %s2142_s0 = inlined_call_operand.vmem [shape: bf16[512,288], index: 0, kind: input, shape index: {}]   ;;  %s2143_s1 = inlined_call_operand.vmem [shape: bf16[288,64], index: 1, kind: input, shape index: {}]   ;;  %s2144_s2 = inlined_call_operand.vmem [shape: f32[1,64], index: 2, kind: input, shape index: {}]   ;;  %s2145_s3 = inlined_call_operand.vmem [shape: f32[1,64], index: 3, kind: input, shape index: {}]   ;;  %s2146_s4 = inlined_call_operand.vmem [shape: bf16[512,64], index: 4, kind: output, shape index: {}]  }
   0x1 LB: > { %s1351_s16 = sadd.s32 4294967295, %s1789_s15   ;;  %p1355_p0 = scmp.ge.s32.totalorder %s1789_s15, 1  ;;  %s1789_s15 = sphi %s1816_s15, %s14_s15  }
   0x2   : > { %p164_p1 = scmp.lt.s32.totalorder %s1789_s15, 3 }
   0x4   : > { %p165_p2 = pnand %p1355_p0, %p164_p1 }
   0x5   : > { %s1356_s19 = sshll.u32 (!%p165_p2), %s1351_s16, 5 }
   0x6   : > { %168 = sbr.rel (%p165_p2) target bundleno = 344 (0x158), region = 36  ;;  %p192_p3 = scmp.lt.s32.totalorder (!%p165_p2), %s1356_s19, 63 }
   0xb   : > { %v1701_v0 = vld [vmem:[%s2143_s1 + $0x78] sm:$0xff]   ;;  %v1703_v2 = vld [vmem:[%s2143_s1 + $0x70] sm:$0xff]   ;;  %v1705_v4 = vld [vmem:[%s2143_s1 + $0x68] sm:$0xff]   ;;  %s2148_s19 = smov (!%p192_p3, %s1356_s19), 63  ;;  %vm653_vm0 = vcmask 261120   ;;  %vm1262_vm1 = vcmask 519168  }
   0xc   : > { %v1702_v1 = vld [vmem:[%s2143_s1 + $0x38] sm:$0xff]   ;;  %1510 = vmatprep.subr.bf16.mxu0 %v1701_v0  ;;  %1676 = vmatprep.subr.bf16.mxu1 %v1701_v0  ;;  %v1704_v3 = vld [vmem:[%s2143_s1 + $0x30] sm:$0xff]   ;;  %v1706_v5 = vld [vmem:[%s2143_s1 + $0x28] sm:$0xff]   ;;  %s1692_s6 = smul.u32 12, %s2148_s19  ;;  %s1359_s12 = sshll.u32 %s2148_s19, 2 }
   0xd   : > { %1511 = vmatpush3.bf16.msra.mxu0 %v1702_v1  ;;  %1684 = vmatpush3.bf16.msra.mxu1 %v1702_v1  ;;  %v1707_v6 = vld [vmem:[%s2143_s1 + $0x60] sm:$0xff]   ;;  %v1709_v8 = vld [vmem:[%s2143_s1 + $0x58] sm:$0xff]   ;;  %v1711_v10 = vld [vmem:[%s2143_s1 + $0x50] sm:$0xff]   ;;  %s1995_s16 = scalar_lea.vmem %s2146_s4, %s1359_s12 }
   0xe   : > { %1512 = vmatprep.subr.bf16.mxu0 %v1703_v2  ;;  %1677 = vmatprep.subr.bf16.mxu1 %v1703_v2  ;;  %v1708_v7 = vld [vmem:[%s2143_s1 + $0x20] sm:$0xff]   ;;  %s1857_s13 = scalar_lea.vmem %s2142_s0, %s1692_s6  ;;  %v1710_v9 = vld [vmem:[%s2143_s1 + $0x18] sm:$0xff]   ;;  %v1712_v13 = vld [vmem:[%s2143_s1 + $0x10] sm:$0xff]  }
   0xf   : > { %v1719_v11 = vld [vmem:[%s1857_s13 + $0x4] ss:$12 sps:$4 sm:$0xff]   ;;  %v1713_v14 = vld [vmem:[%s2143_s1 + $0x48] sm:$0xff]   ;;  %v1730_v26 = vld [vmem:[%s1857_s13 + $0x34] ss:$12 sps:$4 sm:$0xff]  }
  0x10   : > { %v1722_v12 = vld [vmem:[%s1857_s13 + $0x124] ss:$12 sps:$4 sm:$0xff]   ;;  %734 = vmatprep.mubr.bf16.mxu0 %v1719_v11  ;;  %v1714_v15 = vld [vmem:[%s2143_s1 + $0x8] sm:$0xff]   ;;  %v1732_v27 = vld [vmem:[%s1857_s13 + $0x154] ss:$12 sps:$4 sm:$0xff]  }
  0x11   : > { %1513 = vmatpush3.bf16.msra.mxu0 %v1704_v3  ;;  %1685 = vmatpush3.bf16.msra.mxu1 %v1704_v3  ;;  %v1715_v16 = vld [vmem:[%s2143_s1 + $0x40] sm:$0xff]   ;;  %v1723_v18 = vld [vmem:[%s2143_s1 + $0x88] sm:$0xff]   ;;  %v1734_v28 = vld [vmem:[%s1857_s13 + $0x30] ss:$12 sps:$4 sm:$0xff]  }
  0x12   : > { %1514 = vmatprep.subr.bf16.mxu0 %v1705_v4  ;;  %1678 = vmatprep.subr.bf16.mxu1 %v1705_v4  ;;  %v1716_v17 = vld [vmem:[%s2143_s1] sm:$0xff]   ;;  %v1724_v21 = vld [vmem:[%s1857_s13 + $0x1c] ss:$12 sps:$4 sm:$0xff]   ;;  %v1737_v30 = vld [vmem:[%s1857_s13 + $0x4c] ss:$12 sps:$4 sm:$0xff]  }
  0x13   : > { %830 = vmatprep.mubr.bf16.mxu1 %v1722_v12  ;;  %v1717_v19 = vld [vmem:[%s1857_s13] ss:$12 sps:$4 sm:$0xff]   ;;  %v1726_v22 = vld [vmem:[%s1857_s13 + $0x13c] ss:$12 sps:$4 sm:$0xff]   ;;  %v1728_v24 = vld [vmem:[%s1857_s13 + $0x18] ss:$12 sps:$4 sm:$0xff]  }
  0x14   : > { %v1720_v20 = vld [vmem:[%s1857_s13 + $0x120] ss:$12 sps:$4 sm:$0xff]   ;;  %v1729_v25 = vld [vmem:[%s1857_s13 + $0x138] ss:$12 sps:$4 sm:$0xff]   ;;  %v1735_v29 = vld [vmem:[%s1857_s13 + $0x150] ss:$12 sps:$4 sm:$0xff]  }
  0x15   : > { %1515 = vmatpush3.bf16.msra.mxu0 %v1706_v5  ;;  %1686 = vmatpush3.bf16.msra.mxu1 %v1706_v5  ;;  %v1736_v23 = vld [vmem:[%s2143_s1 + $0x80] sm:$0xff]   ;;  %v1739_v31 = vld [vmem:[%s1857_s13 + $0x16c] ss:$12 sps:$4 sm:$0xff]   ;;  %v1741_v32 = vld [vmem:[%s1857_s13 + $0x48] ss:$12 sps:$4 sm:$0xff]  }
  0x16   : > { %1516 = vmatprep.subr.bf16.mxu0 %v1707_v6  ;;  %1679 = vmatprep.subr.bf16.mxu1 %v1707_v6  ;;  %v1742_v33 = vld [vmem:[%s1857_s13 + $0x168] ss:$12 sps:$4 sm:$0xff]   ;;  %v1743_v34 = vld [vmem:[%s1857_s13 + $0x64] ss:$12 sps:$4 sm:$0xff]   ;;  %v1746_v36 = vld [vmem:[%s1857_s13 + $0x60] ss:$12 sps:$4 sm:$0xff]  }
  0x17   : > { %v1745_v35 = vld [vmem:[%s1857_s13 + $0x8] ss:$12 sps:$4 sm:$0xff]   ;;  %v1747_v37 = vld [vmem:[%s1857_s13 + $0x20] ss:$12 sps:$4 sm:$0xff]   ;;  %v1750_v39 = vld [vmem:[%s1857_s13 + $0x38] ss:$12 sps:$4 sm:$0xff]  }
  0x18   : > { %v1748_v38 = vld [vmem:[%s1857_s13 + $0x7c] ss:$12 sps:$4 sm:$0xff]   ;;  %v1751_v40 = vld [vmem:[%s1857_s13 + $0x78] ss:$12 sps:$4 sm:$0xff]   ;;  %v1753_v42 = vld [vmem:[%s1857_s13 + $0x94] ss:$12 sps:$4 sm:$0xff]  }
  0x19   : > { %1517 = vmatpush3.bf16.msra.mxu0 %v1708_v7  ;;  %1687 = vmatpush3.bf16.msra.mxu1 %v1708_v7  ;;  %v1752_v41 = vld [vmem:[%s1857_s13 + $0x50] ss:$12 sps:$4 sm:$0xff]   ;;  %v1755_v43 = vld [vmem:[%s1857_s13 + $0x68] ss:$12 sps:$4 sm:$0xff]   ;;  %v1757_v45 = vld [vmem:[%s1857_s13 + $0x80] ss:$12 sps:$4 sm:$0xff]  }
  0x1a   : > { %1518 = vmatprep.subr.bf16.mxu0 %v1709_v8  ;;  %1680 = vmatprep.subr.bf16.mxu1 %v1709_v8  ;;  %v1756_v44 = vld [vmem:[%s1857_s13 + $0x90] ss:$12 sps:$4 sm:$0xff]   ;;  %v1758_v46 = vld [vmem:[%s1857_s13 + $0xac] ss:$12 sps:$4 sm:$0xff]   ;;  %v1761_v48 = vld [vmem:[%s1857_s13 + $0xa8] ss:$12 sps:$4 sm:$0xff]  }
  0x1b   : > { %v1760_v47 = vld [vmem:[%s1857_s13 + $0x98] ss:$12 sps:$4 sm:$0xff]   ;;  %v1762_v49 = vld [vmem:[%s1857_s13 + $0xb0] ss:$12 sps:$4 sm:$0xff]   ;;  %v1765_v51 = vld [vmem:[%s1857_s13 + $0xc8] ss:$12 sps:$4 sm:$0xff]  }
  0x1c   : > { %v1763_v50 = vld [vmem:[%s1857_s13 + $0xc4] ss:$12 sps:$4 sm:$0xff]   ;;  %v1766_v52 = vld [vmem:[%s1857_s13 + $0xc0] ss:$12 sps:$4 sm:$0xff]   ;;  %v1768_v54 = vld [vmem:[%s1857_s13 + $0xdc] ss:$12 sps:$4 sm:$0xff]  }
  0x1d   : > { %1519 = vmatpush3.bf16.msra.mxu0 %v1710_v9  ;;  %1688 = vmatpush3.bf16.msra.mxu1 %v1710_v9  ;;  %v1767_v53 = vld [vmem:[%s1857_s13 + $0xe0] ss:$12 sps:$4 sm:$0xff]   ;;  %v1770_v55 = vld [vmem:[%s1857_s13 + $0xf8] ss:$12 sps:$4 sm:$0xff]   ;;  %v1772_v57 = vld [vmem:[%s1857_s13 + $0x110] ss:$12 sps:$4 sm:$0xff]  }
  0x1e   : > { %1520 = vmatprep.subr.bf16.mxu0 %v1711_v10  ;;  %1681 = vmatprep.subr.bf16.mxu1 %v1711_v10  ;;  %v1771_v56 = vld [vmem:[%s1857_s13 + $0xd8] ss:$12 sps:$4 sm:$0xff]   ;;  %v1773_v58 = vld [vmem:[%s1857_s13 + $0xf4] ss:$12 sps:$4 sm:$0xff]   ;;  %v1776_v60 = vld [vmem:[%s1857_s13 + $0xf0] ss:$12 sps:$4 sm:$0xff]  }
  0x1f   : > { %v1775_v59 = vld [vmem:[%s1857_s13 + $0x128] ss:$12 sps:$4 sm:$0xff]   ;;  %v1777_v61 = vld [vmem:[%s1857_s13 + $0x140] ss:$12 sps:$4 sm:$0xff]   ;;  %v1780_v63 = vld [vmem:[%s1857_s13 + $0x158] ss:$12 sps:$4 sm:$0xff]  }
  0x20   : > { %v1778_v62 = vld [vmem:[%s1857_s13 + $0x10c] ss:$12 sps:$4 sm:$0xff]   ;;  %v1781_v0 = vld [vmem:[%s1857_s13 + $0x108] ss:$12 sps:$4 sm:$0xff]   ;;  %v1782_v1 = vld [vmem:[%s1857_s13 + $0x170] ss:$12 sps:$4 sm:$0xff]  }
  0x21   : > { %1521 = vmatpush3.bf16.msra.mxu0 %v1712_v13  ;;  %1689 = vmatpush3.bf16.msra.mxu1 %v1712_v13 }
  0x22   : > { %1522 = vmatprep.subr.bf16.mxu0 %v1713_v14  ;;  %1682 = vmatprep.subr.bf16.mxu1 %v1713_v14 }
  0x25   : > { %1523 = vmatpush3.bf16.msra.mxu0 %v1714_v15  ;;  %1690 = vmatpush3.bf16.msra.mxu1 %v1714_v15 }
  0x26   : > { %1524 = vmatprep.subr.bf16.mxu0 %v1715_v16  ;;  %1683 = vmatprep.subr.bf16.mxu1 %v1715_v16 }
  0x29   : > { %1525 = vmatpush3.bf16.msra.mxu0 %v1716_v17  ;;  %1691 = vmatpush3.bf16.msra.mxu1 %v1716_v17 }
  0x2a   : > { %1640 = vmatprep.subr.bf16.mxu1 %v1723_v18 }
  0x2c   : > { %735 = vmatmul.mubr.bf16.vlgmr.msra.gmra.mxu0 %v1717_v19  ;;  %831 = vmatmul.mubr.bf16.vlgmr.msra.gmra.mxu1 %v1720_v20 }
  0x2d   : > { %1641 = vmatpush3.bf16.msra.mxu1 %v1723_v18  ;;  %742 = vmatprep.mubr.bf16.mxu0 %v1724_v21 }
  0x2e   : > { %838 = vmatprep.mubr.bf16.mxu1 %v1726_v22  ;;  %1642 = vmatprep.subr.bf16.mxu1 %v1736_v23 }
  0x31   : > { %1643 = vmatpush3.bf16.msra.mxu1 %v1736_v23 }
  0x34   : > { %743 = vmatmul.mubr.bf16.gmra.mxu0 %v1728_v24  ;;  %839 = vmatmul.mubr.bf16.gmra.mxu1 %v1729_v25 }
  0x35   : > { %750 = vmatprep.mubr.bf16.mxu0 %v1730_v26  ;;  %846 = vmatprep.mubr.bf16.mxu1 %v1732_v27 }
  0x3c   : > { %751 = vmatmul.mubr.bf16.gmra.mxu0 %v1734_v28  ;;  %847 = vmatmul.mubr.bf16.gmra.mxu1 %v1735_v29 }
  0x3d   : > { %758 = vmatprep.mubr.bf16.mxu0 %v1737_v30  ;;  %854 = vmatprep.mubr.bf16.mxu1 %v1739_v31 }
  0x44   : > { %759 = vmatmul.mubr.bf16.gmra.mxu0 %v1741_v32  ;;  %855 = vmatmul.mubr.bf16.gmra.mxu1 %v1742_v33 }
  0x45   : > { %766 = vmatprep.mubr.bf16.mxu0 %v1743_v34  ;;  %1644 = vmatprep.mubr.msk.bf16.mxu1 %vm653_vm0, %v1745_v35 }
  0x4c   : > { %767 = vmatmul.mubr.bf16.gmra.mxu0 %v1746_v36  ;;  %1645 = vmatmul.mubr.msk.bf16.vlgmr.msra.gmra.mxu1 %vm653_vm0, %v1747_v37 }
  0x4d   : > { %774 = vmatprep.mubr.bf16.mxu0 %v1748_v38  ;;  %1648 = vmatprep.mubr.msk.bf16.mxu1 %vm653_vm0, %v1750_v39 }
  0x54   : > { %775 = vmatmul.mubr.bf16.gmra.mxu0 %v1751_v40  ;;  %1649 = vmatmul.mubr.msk.bf16.gmra.mxu1 %vm653_vm0, %v1752_v41 }
  0x55   : > { %782 = vmatprep.mubr.bf16.mxu0 %v1753_v42  ;;  %1652 = vmatprep.mubr.msk.bf16.mxu1 %vm653_vm0, %v1755_v43  ;;  %v1975_v43 = vld [vmem:[%s2144_s2] ss:$0 sm:$0xff] }
  0x5c   : > { %783 = vmatmul.mubr.bf16.gmra.mxu0 %v1756_v44  ;;  %1653 = vmatmul.mubr.msk.bf16.gmra.mxu1 %vm653_vm0, %v1757_v45 }
  0x5d   : > { %790 = vmatprep.mubr.bf16.mxu0 %v1758_v46  ;;  %1656 = vmatprep.mubr.msk.bf16.mxu1 %vm653_vm0, %v1760_v47  ;;  %v1980_v46 = vld [vmem:[%s2145_s3] ss:$0 sm:$0xff] }
  0x64   : > { %791 = vmatmul.mubr.bf16.gmra.mxu0 %v1761_v48  ;;  %1657 = vmatmul.mubr.msk.bf16.gmra.mxu1 %vm653_vm0, %v1762_v49 }
  0x65   : > { %798 = vmatprep.mubr.bf16.mxu0 %v1763_v50  ;;  %1660 = vmatprep.mubr.msk.bf16.mxu1 %vm653_vm0, %v1765_v51 }
  0x6c   : > { %799 = vmatmul.mubr.bf16.gmra.mxu0 %v1766_v52  ;;  %1661 = vmatmul.mubr.msk.bf16.gmra.mxu1 %vm653_vm0, %v1767_v53 }
  0x6d   : > { %806 = vmatprep.mubr.bf16.mxu0 %v1768_v54  ;;  %1664 = vmatprep.mubr.msk.bf16.mxu1 %vm653_vm0, %v1770_v55 }
  0x74   : > { %807 = vmatmul.mubr.bf16.gmra.mxu0 %v1771_v56  ;;  %1665 = vmatmul.mubr.msk.bf16.gmra.mxu1 %vm653_vm0, %v1772_v57 }
  0x75   : > { %814 = vmatprep.mubr.bf16.mxu0 %v1773_v58  ;;  %1668 = vmatprep.mubr.msk.bf16.mxu1 %vm653_vm0, %v1775_v59 }
  0x7c   : > { %815 = vmatmul.mubr.bf16.gmra.mxu0 %v1776_v60  ;;  %1669 = vmatmul.mubr.msk.bf16.gmra.mxu1 %vm653_vm0, %v1777_v61 }
  0x7d   : > { %822 = vmatprep.mubr.bf16.mxu0 %v1778_v62  ;;  %1672 = vmatprep.mubr.msk.bf16.mxu1 %vm653_vm0, %v1780_v63 }
  0x84   : > { %823 = vmatmul.mubr.bf16.gmra.mxu0 %v1781_v0  ;;  %1673 = vmatmul.mubr.msk.bf16.gmra.mxu1 %vm653_vm0, %v1782_v1 }
  0xec   : > { %v1526_v2 = vpop.f32.mrf.mxu0  ;;  %v1598_v3 = vpop.f32.mrf.mxu1 }
  0xee   : > { %v1527_v4 = vpop.f32.mrf.mxu0  ;;  %v1599_v5 = vpop.f32.mrf.mxu1 }
  0xef   : > { %v1950_v6 = vadd.f32 %v1599_v5, %v1598_v3  ;;  %v1528_v44 = vadd.f32 %v1527_v4, %v1526_v2 }
  0xf0   : > { %v1529_v7 = vpop.f32.mrf.mxu0  ;;  %v1601_v8 = vpop.f32.mrf.mxu1 }
  0xf2   : > { %v1530_v9 = vpop.f32.mrf.mxu0  ;;  %v1602_v10 = vpop.f32.mrf.mxu1 }
  0xf3   : > { %v1952_v11 = vadd.f32 %v1602_v10, %v1601_v8  ;;  %v1531_v57 = vadd.f32 %v1530_v9, %v1529_v7 }
  0xf4   : > { %v1532_v12 = vpop.f32.mrf.mxu0  ;;  %v1604_v13 = vpop.f32.mrf.mxu1 }
  0xf6   : > { %v1533_v14 = vpop.f32.mrf.mxu0  ;;  %v1605_v15 = vpop.f32.mrf.mxu1 }
  0xf7   : > { %v1954_v16 = vadd.f32 %v1605_v15, %v1604_v13  ;;  %v1534_v40 = vadd.f32 %v1533_v14, %v1532_v12 }
  0xf8   : > { %v1535_v17 = vpop.f32.mrf.mxu0  ;;  %v1607_v18 = vpop.f32.mrf.mxu1 }
  0xfa   : > { %v1536_v19 = vpop.f32.mrf.mxu0  ;;  %v1608_v20 = vpop.f32.mrf.mxu1 }
  0xfb   : > { %v1956_v21 = vadd.f32 %v1608_v20, %v1607_v18  ;;  %v1537_v49 = vadd.f32 %v1536_v19, %v1535_v17 }
  0xfc   : > { %v1538_v22 = vpop.f32.mrf.mxu0  ;;  %v1610_v23 = vpop.f32.mrf.mxu1 }
  0xfe   : > { %v1539_v24 = vpop.f32.mrf.mxu0  ;;  %v1611_v25 = vpop.f32.mrf.mxu1 }
  0xff   : > { %v1958_v26 = vadd.f32 %v1611_v25, %v1610_v23  ;;  %v1540_v8 = vadd.f32 %v1539_v24, %v1538_v22 }
 0x100   : > { %v1541_v27 = vpop.f32.mrf.mxu0  ;;  %v1613_v28 = vpop.f32.mrf.mxu1 }
 0x102   : > { %v1542_v29 = vpop.f32.mrf.mxu0  ;;  %v1614_v30 = vpop.f32.mrf.mxu1 }
 0x103   : > { %v1960_v31 = vadd.f32 %v1614_v30, %v1613_v28  ;;  %v1543_v25 = vadd.f32 %v1542_v29, %v1541_v27 }
 0x104   : > { %v1544_v32 = vpop.f32.mrf.mxu0  ;;  %v1962_v33 = vpop.f32.mrf.mxu1 }
 0x106   : > { %v1545_v34 = vpop.f32.mrf.mxu0  ;;  %v1964_v35 = vpop.f32.mrf.mxu1 }
 0x107   : > { %v1546_v60 = vadd.f32 %v1545_v34, %v1544_v32 }
 0x108   : > { %v1547_v36 = vpop.f32.mrf.mxu0  ;;  %v1966_v37 = vpop.f32.mrf.mxu1 }
 0x10a   : > { %v1548_v38 = vpop.f32.mrf.mxu0  ;;  %v1968_v39 = vpop.f32.mrf.mxu1 }
 0x10b   : > { %v1549_v13 = vadd.f32 %v1548_v38, %v1547_v36 }
 0x10c   : > { %v1970_v41 = vpop.f32.mrf.mxu0  ;;  %v1646_v42 = vpop.f32.mrf.mxu1 }
 0x10d   : > { %v906_v45 = vadd.f32 %v1646_v42, %v1534_v40 }
 0x10e   : > { %v1551_v47 = vpop.f32.mrf.mxu0  ;;  %v897_v48 = vpop.f32.mrf.mxu1 }
 0x10f   : > { %v1033_v50 = vmul.f32 %v1975_v43, %v906_v45  ;;  %v898_v51 = vadd.f32 %v1528_v44, %v897_v48 }
 0x110   : > { %v1983_v52 = vpop.f32.mrf.mxu0  ;;  %v1647_v53 = vpop.f32.mrf.mxu1 }
 0x111   : > { %v1072_v54 = vadd.f32 %v1980_v46, %v1033_v50  ;;  %v1031_v55 = vmul.f32 %v1975_v43, %v898_v51  ;;  %v909_v56 = vadd.f32 %v1647_v53, %v1537_v49 }
 0x112   : > { %v1988_v58 = vpop.f32.mrf.mxu0  ;;  %v900_v59 = vpop.f32.mrf.mxu1 }
 0x113   : > { %v1104_v61 = vmax.f32 %v1072_v54, 0.0  ;;  %v1070_v62 = vadd.f32 %v1980_v46, %v1031_v55  ;;  %v1034_v63 = vmul.f32 %v1975_v43, %v909_v56  ;;  %v901_v0 = vadd.f32 %v1531_v57, %v900_v59 }
 0x114   : > { %v1556_v1 = vpop.f32.mrf.mxu0  ;;  %v1650_v2 = vpop.f32.mrf.mxu1  ;;  %v1552_v54 = vadd.f32 %v1551_v47, %v1970_v41 }
 0x115   : > { %v1480_v3 = vpack.c.bf16 %v1104_v61, %v1104_v61  ;;  %v1102_v4 = vmax.f32 %v1070_v62, 0.0  ;;  %v1073_v5 = vadd.f32 %v1980_v46, %v1034_v63  ;;  %v922_v7 = vadd.f32 %v1650_v2, %v1546_v60 }
 0x116   : > { %v1032_v9 = vmul.f32 %v1975_v43, %v901_v0  ;;  %v1557_v10 = vpop.f32.mrf.mxu0  ;;  %v913_v12 = vpop.f32.mrf.mxu1 }
 0x117   : > { %1265 = vst.msk [vmem:[%s1995_s16 + $0x8] sm:$0xf] %vm1262_vm1, %v1480_v3  ;;  %v1478_v14 = vpack.c.bf16 %v1102_v4, %v1102_v4  ;;  %v1105_v15 = vmax.f32 %v1073_v5, 0.0  ;;  %v1037_v17 = vmul.f32 %v1975_v43, %v922_v7  ;;  %v914_v19 = vadd.f32 %v1540_v8, %v913_v12 }
 0x118   : > { %v1071_v18 = vadd.f32 %v1980_v46, %v1032_v9  ;;  %v1559_v20 = vpop.f32.mrf.mxu0  ;;  %v1651_v23 = vpop.f32.mrf.mxu1  ;;  %v1558_v40 = vadd.f32 %v1557_v10, %v1556_v1  ;;  %v1555_v5 = vadd.f32 %v1988_v58, %v1983_v52 }
 0x119   : > { %1263 = vst.msk [vmem:[%s1995_s16] sm:$0xf] %vm1262_vm1, %v1478_v14  ;;  %v1481_v22 = vpack.c.bf16 %v1105_v15, %v1105_v15  ;;  %v1076_v24 = vadd.f32 %v1980_v46, %v1037_v17  ;;  %v925_v28 = vadd.f32 %v1651_v23, %v1549_v13  ;;  %v1035_v32 = vmul.f32 %v1975_v43, %v914_v19 }
 0x11a   : > { %v1103_v30 = vmax.f32 %v1071_v18, 0.0  ;;  %v1560_v34 = vpop.f32.mrf.mxu0  ;;  %v916_v36 = vpop.f32.mrf.mxu1 }
 0x11b   : > { %1266 = vst.msk [vmem:[%s1995_s16 + $0xc] sm:$0xf] %vm1262_vm1, %v1481_v22  ;;  %v1108_v38 = vmax.f32 %v1076_v24, 0.0  ;;  %v1038_v42 = vmul.f32 %v1975_v43, %v925_v28  ;;  %v917_v27 = vadd.f32 %v1543_v25, %v916_v36  ;;  %v1074_v44 = vadd.f32 %v1980_v46, %v1035_v32 }
 0x11c   : > { %v1479_v29 = vpack.c.bf16 %v1103_v30, %v1103_v30  ;;  %v1562_v45 = vpop.f32.mrf.mxu0  ;;  %v1654_v48 = vpop.f32.mrf.mxu1  ;;  %v1561_v60 = vadd.f32 %v1560_v34, %v1559_v20 }
 0x11d   : > { %v1484_v49 = vpack.c.bf16 %v1108_v38, %v1108_v38  ;;  %v1077_v50 = vadd.f32 %v1980_v46, %v1038_v42  ;;  %v1036_v51 = vmul.f32 %v1975_v43, %v917_v27  ;;  %v938_v53 = vadd.f32 %v1654_v48, %v1558_v40 }
 0x11e   : > { %1264 = vst.msk [vmem:[%s1995_s16 + $0x4] sm:$0xf] %vm1262_vm1, %v1479_v29  ;;  %v1106_v55 = vmax.f32 %v1074_v44, 0.0  ;;  %v1563_v56 = vpop.f32.mrf.mxu0  ;;  %v929_v57 = vpop.f32.mrf.mxu1 }
 0x11f   : > { %1269 = vst.msk [vmem:[%s1995_s16 + $0x18] sm:$0xf] %vm1262_vm1, %v1484_v49  ;;  %v1109_v59 = vmax.f32 %v1077_v50, 0.0  ;;  %v1075_v61 = vadd.f32 %v1980_v46, %v1036_v51  ;;  %v1041_v62 = vmul.f32 %v1975_v43, %v938_v53  ;;  %v930_v0 = vadd.f32 %v1552_v54, %v929_v57 }
 0x120   : > { %v1482_v63 = vpack.c.bf16 %v1106_v55, %v1106_v55  ;;  %v1565_v1 = vpop.f32.mrf.mxu0  ;;  %v1655_v2 = vpop.f32.mrf.mxu1  ;;  %v1564_v58 = vadd.f32 %v1563_v56, %v1562_v45 }
 0x121   : > { %v1485_v41 = vpack.c.bf16 %v1109_v59, %v1109_v59  ;;  %v1107_v47 = vmax.f32 %v1075_v61, 0.0  ;;  %v1080_v3 = vadd.f32 %v1980_v46, %v1041_v62  ;;  %v941_v4 = vadd.f32 %v1655_v2, %v1561_v60 }
 0x122   : > { %1267 = vst.msk [vmem:[%s1995_s16 + $0x10] sm:$0xf] %vm1262_vm1, %v1482_v63  ;;  %v1039_v7 = vmul.f32 %v1975_v43, %v930_v0  ;;  %v1566_v8 = vpop.f32.mrf.mxu0  ;;  %v932_v9 = vpop.f32.mrf.mxu1 }
 0x123   : > { %1270 = vst.msk [vmem:[%s1995_s16 + $0x1c] sm:$0xf] %vm1262_vm1, %v1485_v41  ;;  %v1483_v10 = vpack.c.bf16 %v1107_v47, %v1107_v47  ;;  %v1112_v12 = vmax.f32 %v1080_v3, 0.0  ;;  %v1042_v13 = vmul.f32 %v1975_v43, %v941_v4  ;;  %v933_v15 = vadd.f32 %v1555_v5, %v932_v9 }
 0x124   : > { %v1078_v14 = vadd.f32 %v1980_v46, %v1039_v7  ;;  %v1568_v17 = vpop.f32.mrf.mxu0  ;;  %v1658_v18 = vpop.f32.mrf.mxu1  ;;  %v1567_v42 = vadd.f32 %v1566_v8, %v1565_v1 }
 0x125   : > { %1268 = vst.msk [vmem:[%s1995_s16 + $0x14] sm:$0xf] %vm1262_vm1, %v1483_v10  ;;  %v1488_v52 = vpack.c.bf16 %v1112_v12, %v1112_v12  ;;  %v1081_v19 = vadd.f32 %v1980_v46, %v1042_v13  ;;  %v1040_v23 = vmul.f32 %v1975_v43, %v933_v15 }
 0x126   : > { %v1110_v20 = vmax.f32 %v1078_v14, 0.0  ;;  %v1569_v25 = vpop.f32.mrf.mxu0  ;;  %v945_v22 = vpop.f32.mrf.mxu1 }
 0x127   : > { %1273 = vst.msk [vmem:[%s1995_s16 + $0x28] sm:$0xf] %vm1262_vm1, %v1488_v52  ;;  %v1113_v24 = vmax.f32 %v1081_v19, 0.0  ;;  %v1570_v28 = vadd.f32 %v1569_v25, %v1568_v17  ;;  %v946_v30 = vadd.f32 %v1564_v58, %v945_v22  ;;  %v1079_v34 = vadd.f32 %v1980_v46, %v1040_v23 }
 0x128   : > { %v1486_v32 = vpack.c.bf16 %v1110_v20, %v1110_v20  ;;  %v1571_v36 = vpop.f32.mrf.mxu0  ;;  %v1659_v38 = vpop.f32.mrf.mxu1 }
 0x129   : > { %v1489_v40 = vpack.c.bf16 %v1113_v24, %v1113_v24  ;;  %v954_v27 = vadd.f32 %v1658_v18, %v1570_v28  ;;  %v1043_v29 = vmul.f32 %v1975_v43, %v946_v30  ;;  %v1111_v44 = vmax.f32 %v1079_v34, 0.0 }
 0x12a   : > { %1271 = vst.msk [vmem:[%s1995_s16 + $0x20] sm:$0xf] %vm1262_vm1, %v1486_v32  ;;  %v1572_v45 = vpop.f32.mrf.mxu0  ;;  %v948_v48 = vpop.f32.mrf.mxu1 }
 0x12b   : > { %1274 = vst.msk [vmem:[%s1995_s16 + $0x2c] sm:$0xf] %vm1262_vm1, %v1489_v40  ;;  %v1045_v49 = vmul.f32 %v1975_v43, %v954_v27  ;;  %v1082_v50 = vadd.f32 %v1980_v46, %v1043_v29  ;;  %v1573_v51 = vadd.f32 %v1572_v45, %v1571_v36  ;;  %v949_v53 = vadd.f32 %v1567_v42, %v948_v48 }
 0x12c   : > { %v1487_v54 = vpack.c.bf16 %v1111_v44, %v1111_v44  ;;  %v1574_v55 = vpop.f32.mrf.mxu0  ;;  %v1662_v56 = vpop.f32.mrf.mxu1 }
 0x12d   : > { %v1084_v57 = vadd.f32 %v1980_v46, %v1045_v49  ;;  %v1114_v59 = vmax.f32 %v1082_v50, 0.0  ;;  %v957_v60 = vadd.f32 %v1659_v38, %v1573_v51  ;;  %v1044_v61 = vmul.f32 %v1975_v43, %v949_v53 }
 0x12e   : > { %1272 = vst.msk [vmem:[%s1995_s16 + $0x24] sm:$0xf] %vm1262_vm1, %v1487_v54  ;;  %v1575_v62 = vpop.f32.mrf.mxu0  ;;  %v961_v63 = vpop.f32.mrf.mxu1 }
 0x12f   : > { %v1116_v0 = vmax.f32 %v1084_v57, 0.0  ;;  %v1490_v1 = vpack.c.bf16 %v1114_v59, %v1114_v59  ;;  %v1046_v2 = vmul.f32 %v1975_v43, %v957_v60  ;;  %v1083_v41 = vadd.f32 %v1980_v46, %v1044_v61 }
 0x130   : > { %v1576_v47 = vadd.f32 %v1575_v62, %v1574_v55  ;;  %v1577_v3 = vpop.f32.mrf.mxu0  ;;  %v1663_v4 = vpop.f32.mrf.mxu1 }
 0x131   : > { %v1492_v5 = vpack.c.bf16 %v1116_v0, %v1116_v0  ;;  %1275 = vst.msk [vmem:[%s1995_s16 + $0x30] sm:$0xf] %vm1262_vm1, %v1490_v1  ;;  %v1085_v7 = vadd.f32 %v1980_v46, %v1046_v2  ;;  %v1115_v8 = vmax.f32 %v1083_v41, 0.0  ;;  %v1618_v41 = vadd.f32 %v1964_v35, %v1962_v33 }
 0x132   : > { %v962_v9 = vadd.f32 %v1576_v47, %v961_v63  ;;  %v1578_v10 = vpop.f32.mrf.mxu0  ;;  %v964_v12 = vpop.f32.mrf.mxu1 }
 0x133   : > { %1277 = vst.msk [vmem:[%s1995_s16 + $0x38] sm:$0xf] %vm1262_vm1, %v1492_v5  ;;  %v1117_v13 = vmax.f32 %v1085_v7, 0.0  ;;  %v1491_v14 = vpack.c.bf16 %v1115_v8, %v1115_v8  ;;  %v1579_v15 = vadd.f32 %v1578_v10, %v1577_v3  ;;  %v1621_v10 = vadd.f32 %v1968_v39, %v1966_v37 }
 0x134   : > { %v1047_v17 = vmul.f32 %v1975_v43, %v962_v9  ;;  %v1580_v18 = vpop.f32.mrf.mxu0  ;;  %v2056_v52 = vpop.f32.mrf.mxu1 }
 0x135   : > { %v1493_v58 = vpack.c.bf16 %v1117_v13, %v1117_v13  ;;  %1276 = vst.msk [vmem:[%s1995_s16 + $0x34] sm:$0xf] %vm1262_vm1, %v1491_v14  ;;  %v965_v19 = vadd.f32 %v1579_v15, %v964_v12 }
 0x136   : > { %v1086_v20 = vadd.f32 %v1980_v46, %v1047_v17  ;;  %v1581_v23 = vpop.f32.mrf.mxu0  ;;  %v977_v25 = vpop.f32.mrf.mxu1 }
 0x137   : > { %1278 = vst.msk [vmem:[%s1995_s16 + $0x3c] sm:$0xf] %vm1262_vm1, %v1493_v58  ;;  %v1048_v22 = vmul.f32 %v1975_v43, %v965_v19  ;;  %v1582_v24 = vadd.f32 %v1581_v23, %v1580_v18 }
 0x138   : > { %v1118_v28 = vmax.f32 %v1086_v20, 0.0  ;;  %v1583_v30 = vpop.f32.mrf.mxu0  ;;  %v2064_v32 = vpop.f32.mrf.mxu1 }
 0x139   : > { %v1087_v34 = vadd.f32 %v1980_v46, %v1048_v22  ;;  %v970_v36 = vadd.f32 %v1662_v56, %v1582_v24 }
 0x13a   : > { %v1494_v38 = vpack.c.bf16 %v1118_v28, %v1118_v28  ;;  %v1584_v40 = vpop.f32.mrf.mxu0  ;;  %v980_v42 = vpop.f32.mrf.mxu1 }
 0x13b   : > { %v1119_v27 = vmax.f32 %v1087_v34, 0.0  ;;  %v1049_v29 = vmul.f32 %v1975_v43, %v970_v36  ;;  %v1585_v44 = vadd.f32 %v1584_v40, %v1583_v30 }
 0x13c   : > { %1279 = vst.msk [vmem:[%s1995_s16 + $0x40] sm:$0xf] %vm1262_vm1, %v1494_v38  ;;  %v1586_v45 = vpop.f32.mrf.mxu0  ;;  %v1670_v48 = vpop.f32.mrf.mxu1 }
 0x13d   : > { %v1495_v49 = vpack.c.bf16 %v1119_v27, %v1119_v27  ;;  %v1088_v50 = vadd.f32 %v1980_v46, %v1049_v29  ;;  %v973_v51 = vadd.f32 %v1663_v4, %v1585_v44  ;;  %v1002_v53 = vadd.f32 %v1670_v48, %v1954_v16 }
 0x13e   : > { %v1587_v54 = vpop.f32.mrf.mxu0  ;;  %v993_v55 = vpop.f32.mrf.mxu1 }
 0x13f   : > { %1280 = vst.msk [vmem:[%s1995_s16 + $0x44] sm:$0xf] %vm1262_vm1, %v1495_v49  ;;  %v1120_v56 = vmax.f32 %v1088_v50, 0.0  ;;  %v1050_v57 = vmul.f32 %v1975_v43, %v973_v51  ;;  %v1057_v59 = vmul.f32 %v1975_v43, %v1002_v53  ;;  %v1588_v60 = vadd.f32 %v1587_v54, %v1586_v45 }
 0x140   : > { %v994_v61 = vadd.f32 %v1950_v6, %v993_v55  ;;  %v1589_v62 = vpop.f32.mrf.mxu0  ;;  %v1671_v63 = vpop.f32.mrf.mxu1 }
 0x141   : > { %v1496_v0 = vpack.c.bf16 %v1120_v56, %v1120_v56  ;;  %v1089_v1 = vadd.f32 %v1980_v46, %v1050_v57  ;;  %v1096_v16 = vadd.f32 %v1980_v46, %v1057_v59  ;;  %v978_v2 = vadd.f32 %v1588_v60, %v977_v25 }
 0x142   : > { %v1055_v47 = vmul.f32 %v1975_v43, %v994_v61  ;;  %v1005_v3 = vadd.f32 %v1671_v63, %v1956_v21  ;;  %v1590_v4 = vpop.f32.mrf.mxu0  ;;  %v996_v5 = vpop.f32.mrf.mxu1 }
 0x143   : > { %1281 = vst.msk [vmem:[%s1995_s16 + $0x48] sm:$0xf] %vm1262_vm1, %v1496_v0  ;;  %v1121_v6 = vmax.f32 %v1089_v1, 0.0  ;;  %v1128_v7 = vmax.f32 %v1096_v16, 0.0  ;;  %v1051_v8 = vmul.f32 %v1975_v43, %v978_v2  ;;  %v1591_v9 = vadd.f32 %v1590_v4, %v1589_v62 }
 0x144   : > { %v1094_v12 = vadd.f32 %v1980_v46, %v1055_v47  ;;  %v1058_v33 = vmul.f32 %v1975_v43, %v1005_v3  ;;  %v997_v21 = vadd.f32 %v1952_v11, %v996_v5  ;;  %v1592_v35 = vpop.f32.mrf.mxu0  ;;  %v1674_v13 = vpop.f32.mrf.mxu1 }
 0x145   : > { %v1497_v14 = vpack.c.bf16 %v1121_v6, %v1121_v6  ;;  %v1504_v15 = vpack.c.bf16 %v1128_v7, %v1128_v7  ;;  %v1090_v17 = vadd.f32 %v1980_v46, %v1051_v8  ;;  %v981_v18 = vadd.f32 %v1591_v9, %v980_v42 }
 0x146   : > { %v1126_v58 = vmax.f32 %v1094_v12, 0.0  ;;  %v1097_v19 = vadd.f32 %v1980_v46, %v1058_v33  ;;  %v1056_v37 = vmul.f32 %v1975_v43, %v997_v21  ;;  %v1018_v39 = vadd.f32 %v1674_v13, %v1618_v41  ;;  %v1593_v20 = vpop.f32.mrf.mxu0  ;;  %v1009_v23 = vpop.f32.mrf.mxu1 }
 0x147   : > { %1282 = vst.msk [vmem:[%s1995_s16 + $0x4c] sm:$0xf] %vm1262_vm1, %v1497_v14  ;;  %1289 = vst.msk [vmem:[%s1995_s16 + $0x68] sm:$0xf] %vm1262_vm1, %v1504_v15  ;;  %v1122_v11 = vmax.f32 %v1090_v17, 0.0  ;;  %v1052_v25 = vmul.f32 %v1975_v43, %v981_v18  ;;  %v1594_v22 = vadd.f32 %v1593_v20, %v1592_v35  ;;  %v1010_v24 = vadd.f32 %v1958_v26, %v1009_v23 }
 0x148   : > { %v1502_v28 = vpack.c.bf16 %v1126_v58, %v1126_v58  ;;  %v1129_v30 = vmax.f32 %v1097_v19, 0.0  ;;  %v1095_v34 = vadd.f32 %v1980_v46, %v1056_v37  ;;  %v1061_v36 = vmul.f32 %v1975_v43, %v1018_v39  ;;  %v1595_v38 = vpop.f32.mrf.mxu0  ;;  %v1675_v40 = vpop.f32.mrf.mxu1 }
 0x149   : > { %v1498_v42 = vpack.c.bf16 %v1122_v11, %v1122_v11  ;;  %v1091_v27 = vadd.f32 %v1980_v46, %v1052_v25  ;;  %v986_v29 = vadd.f32 %v2056_v52, %v1594_v22  ;;  %v1059_v44 = vmul.f32 %v1975_v43, %v1010_v24 }
 0x14a   : > { %1287 = vst.msk [vmem:[%s1995_s16 + $0x60] sm:$0xf] %vm1262_vm1, %v1502_v28  ;;  %v1505_v26 = vpack.c.bf16 %v1129_v30, %v1129_v30  ;;  %v1127_v45 = vmax.f32 %v1095_v34, 0.0  ;;  %v1100_v48 = vadd.f32 %v1980_v46, %v1061_v36  ;;  %v1021_v49 = vadd.f32 %v1675_v40, %v1621_v10  ;;  %v1596_v50 = vpop.f32.mrf.mxu0  ;;  %v1012_v51 = vpop.f32.mrf.mxu1 }
 0x14b   : > { %1283 = vst.msk [vmem:[%s1995_s16 + $0x50] sm:$0xf] %vm1262_vm1, %v1498_v42  ;;  %v1123_v53 = vmax.f32 %v1091_v27, 0.0  ;;  %v1053_v54 = vmul.f32 %v1975_v43, %v986_v29  ;;  %v1098_v52 = vadd.f32 %v1980_v46, %v1059_v44  ;;  %v1597_v55 = vadd.f32 %v1596_v50, %v1595_v38 }
 0x14c   : > { %1290 = vst.msk [vmem:[%s1995_s16 + $0x6c] sm:$0xf] %vm1262_vm1, %v1505_v26  ;;  %v1503_v56 = vpack.c.bf16 %v1127_v45, %v1127_v45  ;;  %v1132_v57 = vmax.f32 %v1100_v48, 0.0  ;;  %v1062_v59 = vmul.f32 %v1975_v43, %v1021_v49  ;;  %v1013_v60 = vadd.f32 %v1960_v31, %v1012_v51 }
 0x14d   : > { %v1499_v61 = vpack.c.bf16 %v1123_v53, %v1123_v53  ;;  %v1092_v62 = vadd.f32 %v1980_v46, %v1053_v54  ;;  %v1130_v63 = vmax.f32 %v1098_v52, 0.0  ;;  %v989_v0 = vadd.f32 %v2064_v32, %v1597_v55 }
 0x14e   : > { %1288 = vst.msk [vmem:[%s1995_s16 + $0x64] sm:$0xf] %vm1262_vm1, %v1503_v56  ;;  %v1508_v1 = vpack.c.bf16 %v1132_v57, %v1132_v57  ;;  %v1101_v16 = vadd.f32 %v1980_v46, %v1062_v59  ;;  %v1060_v2 = vmul.f32 %v1975_v43, %v1013_v60 }
 0x14f   : > { %1284 = vst.msk [vmem:[%s1995_s16 + $0x54] sm:$0xf] %vm1262_vm1, %v1499_v61  ;;  %v1124_v41 = vmax.f32 %v1092_v62, 0.0  ;;  %v1506_v31 = vpack.c.bf16 %v1130_v63, %v1130_v63  ;;  %v1054_v47 = vmul.f32 %v1975_v43, %v989_v0 }
 0x150   : > { %1293 = vst.msk [vmem:[%s1995_s16 + $0x78] sm:$0xf] %vm1262_vm1, %v1508_v1  ;;  %v1133_v32 = vmax.f32 %v1101_v16, 0.0  ;;  %v1099_v3 = vadd.f32 %v1980_v46, %v1060_v2 }
 0x151   : > { %v1500_v4 = vpack.c.bf16 %v1124_v41, %v1124_v41  ;;  %1291 = vst.msk [vmem:[%s1995_s16 + $0x70] sm:$0xf] %vm1262_vm1, %v1506_v31  ;;  %v1093_v5 = vadd.f32 %v1980_v46, %v1054_v47 }
 0x152   : > { %v1509_v6 = vpack.c.bf16 %v1133_v32, %v1133_v32  ;;  %v1131_v7 = vmax.f32 %v1099_v3, 0.0 }
 0x153   : > { %1285 = vst.msk [vmem:[%s1995_s16 + $0x58] sm:$0xf] %vm1262_vm1, %v1500_v4  ;;  %v1125_v8 = vmax.f32 %v1093_v5, 0.0 }
 0x154   : > { %1294 = vst.msk [vmem:[%s1995_s16 + $0x7c] sm:$0xf] %vm1262_vm1, %v1509_v6  ;;  %v1507_v9 = vpack.c.bf16 %v1131_v7, %v1131_v7 }
 0x155   : > { %v1501_v10 = vpack.c.bf16 %v1125_v8, %v1125_v8 }
 0x156   : > { %1292 = vst.msk [vmem:[%s1995_s16 + $0x74] sm:$0xf] %vm1262_vm1, %v1507_v9 }
 0x157   : > { %1286 = vst.msk [vmem:[%s1995_s16 + $0x5c] sm:$0xf] %vm1262_vm1, %v1501_v10 }
 0x158 PF: > { %s14_s15 = sadd.s32 1, %s1789_s15  }
 0x159   : > { %p11_p4 = scmp.ge.s32.totalorder %s14_s15, 4  }
 0x15b   :  { %13 = sbr.rel (!%p11_p4) target bundleno = 1 (0x1), region = 66 }

// kernel: reference_encoder_forward.7
= control target key start
LH: loop header
LB: loop body
LE: loop exit
PB: predicated region body
PF: predicated region fallthrough
CT: control target
= control target key end

     0   :  { %v1121_v34 = vmov 0.0   ;;  %vm1122_vm0 = vmmov 0   ;;  %vm461_vm1 = vcmask 523264   ;;  %s1413_s1 = inlined_call_operand.vmem [shape: bf16[576,128], index: 1, kind: input, shape index: {}]   ;;  %s1414_s0 = inlined_call_operand.vmem [shape: bf16[80,576], index: 0, kind: input, shape index: {}]   ;;  %s1415_s2 = inlined_call_operand.vmem [shape: f32[1,128], index: 2, kind: input, shape index: {}]   ;;  %s1416_s3 = inlined_call_operand.vmem [shape: f32[1,128], index: 3, kind: input, shape index: {}]   ;;  %s1417_s4 = inlined_call_operand.vmem [shape: bf16[80,128], index: 4, kind: output, shape index: {}]  }
   0x1   :  { %v1050_v0 = vld [vmem:[%s1413_s1 + $0x78] sm:$0xff]   ;;  %v1054_v4 = vld [vmem:[%s1413_s1 + $0x70] sm:$0xff]   ;;  %v1058_v8 = vld [vmem:[%s1413_s1 + $0x68] sm:$0xff]  }
   0x2   :  { %v1051_v1 = vld [vmem:[%s1413_s1 + $0xf8] sm:$0xff]   ;;  %911 = vmatprep.subr.bf16.mxu0 %v1050_v0  ;;  %v1055_v5 = vld [vmem:[%s1413_s1 + $0xf0] sm:$0xff]   ;;  %v1059_v9 = vld [vmem:[%s1413_s1 + $0xe8] sm:$0xff]  }
   0x3   :  { %v1052_v2 = vld [vmem:[%s1413_s1 + $0x38] sm:$0xff]   ;;  %957 = vmatprep.subr.bf16.mxu1 %v1051_v1  ;;  %v1056_v6 = vld [vmem:[%s1413_s1 + $0x30] sm:$0xff]   ;;  %v1060_v10 = vld [vmem:[%s1413_s1 + $0x28] sm:$0xff]  }
   0x4   :  { %v1053_v3 = vld [vmem:[%s1413_s1 + $0xb8] sm:$0xff]   ;;  %912 = vmatpush3.bf16.msra.mxu0 %v1052_v2  ;;  %v1057_v7 = vld [vmem:[%s1413_s1 + $0xb0] sm:$0xff]   ;;  %v1061_v11 = vld [vmem:[%s1413_s1 + $0xa8] sm:$0xff]  }
   0x5   :  { %958 = vmatpush3.bf16.msra.mxu1 %v1053_v3  ;;  %913 = vmatprep.subr.bf16.mxu0 %v1054_v4  ;;  %v1062_v12 = vld [vmem:[%s1413_s1 + $0x60] sm:$0xff]   ;;  %v1066_v16 = vld [vmem:[%s1413_s1 + $0x58] sm:$0xff]   ;;  %v1070_v20 = vld [vmem:[%s1413_s1 + $0x50] sm:$0xff]  }
   0x6   :  { %959 = vmatprep.subr.bf16.mxu1 %v1055_v5  ;;  %v1063_v13 = vld [vmem:[%s1413_s1 + $0xe0] sm:$0xff]   ;;  %v1067_v17 = vld [vmem:[%s1413_s1 + $0xd8] sm:$0xff]   ;;  %v1071_v21 = vld [vmem:[%s1413_s1 + $0xd0] sm:$0xff]  }
   0x7   :  { %v1064_v14 = vld [vmem:[%s1413_s1 + $0x20] sm:$0xff]   ;;  %v1068_v18 = vld [vmem:[%s1413_s1 + $0x18] sm:$0xff]   ;;  %v1072_v22 = vld [vmem:[%s1413_s1 + $0x10] sm:$0xff]  }
   0x8   :  { %914 = vmatpush3.bf16.msra.mxu0 %v1056_v6  ;;  %v1065_v15 = vld [vmem:[%s1413_s1 + $0xa0] sm:$0xff]   ;;  %v1069_v19 = vld [vmem:[%s1413_s1 + $0x98] sm:$0xff]   ;;  %v1073_v23 = vld [vmem:[%s1413_s1 + $0x90] sm:$0xff]  }
   0x9   :  { %960 = vmatpush3.bf16.msra.mxu1 %v1057_v7  ;;  %915 = vmatprep.subr.bf16.mxu0 %v1058_v8  ;;  %v1074_v24 = vld [vmem:[%s1413_s1 + $0x48] sm:$0xff]   ;;  %v1078_v28 = vld [vmem:[%s1413_s1 + $0x40] sm:$0xff]   ;;  %v1088_v37 = vld [vmem:[%s1413_s1 + $0x118] sm:$0xff]  }
   0xa   :  { %961 = vmatprep.subr.bf16.mxu1 %v1059_v9  ;;  %v1075_v25 = vld [vmem:[%s1413_s1 + $0xc8] sm:$0xff]   ;;  %v1079_v29 = vld [vmem:[%s1413_s1 + $0xc0] sm:$0xff]   ;;  %v1095_v40 = vld [vmem:[%s1413_s1 + $0x110] sm:$0xff]  }
   0xb   :  { %v1076_v26 = vld [vmem:[%s1413_s1 + $0x8] sm:$0xff]   ;;  %v1080_v30 = vld [vmem:[%s1413_s1] sm:$0xff]   ;;  %v1098_v44 = vld [vmem:[%s1414_s0 + $0x5c] ss:$20 sps:$4 sm:$0xff]  }
   0xc   :  { %916 = vmatpush3.bf16.msra.mxu0 %v1060_v10  ;;  %v1077_v27 = vld [vmem:[%s1413_s1 + $0x88] sm:$0xff]   ;;  %v1081_v31 = vld [vmem:[%s1413_s1 + $0x80] sm:$0xff]   ;;  %v1103_v49 = vld [vmem:[%s1414_s0 + $0x7c] ss:$20 sps:$4 sm:$0xff]  }
   0xd   :  { %962 = vmatpush3.bf16.msra.mxu1 %v1061_v11  ;;  %917 = vmatprep.subr.bf16.mxu0 %v1062_v12  ;;  %v1082_v32 = vld [vmem:[%s1414_s0] ss:$20 sps:$4 sm:$0xff]   ;;  %v1084_v33 = vld [vmem:[%s1414_s0 + $0x4] ss:$20 sps:$4 sm:$0xff]   ;;  %v1085_v35 = vld [vmem:[%s1414_s0 + $0x8] ss:$20 sps:$4 sm:$0xff]  }
   0xe   :  { %963 = vmatprep.subr.bf16.mxu1 %v1063_v13  ;;  %v1087_v36 = vld [vmem:[%s1414_s0 + $0xc] ss:$20 sps:$4 sm:$0xff]   ;;  %509 = vmatprep.mubr.bf16.mxu0 %v1084_v33  ;;  %v1091_v39 = vld [vmem:[%s1414_s0 + $0x34] ss:$20 sps:$4 sm:$0xff]   ;;  %v1094_v42 = vld [vmem:[%s1414_s0 + $0x30] ss:$20 sps:$4 sm:$0xff]  }
   0xf   :  { %582 = vmatprep.mubr.bf16.mxu1 %v1087_v36  ;;  %v1089_v38 = vld [vmem:[%s1414_s0 + $0x2c] ss:$20 sps:$4 sm:$0xff]   ;;  %v1093_v41 = vld [vmem:[%s1414_s0 + $0x28] ss:$20 sps:$4 sm:$0xff]   ;;  %v1100_v46 = vld [vmem:[%s1414_s0 + $0x50] ss:$20 sps:$4 sm:$0xff]  }
  0x10   :  { %918 = vmatpush3.bf16.msra.mxu0 %v1064_v14  ;;  %v1096_v43 = vld [vmem:[%s1414_s0 + $0x54] ss:$20 sps:$4 sm:$0xff]   ;;  %v1101_v47 = vld [vmem:[%s1414_s0 + $0x58] ss:$20 sps:$4 sm:$0xff]   ;;  %v1113_v48 = vld [vmem:[%s1413_s1 + $0x100] sm:$0xff]  }
  0x11   :  { %964 = vmatpush3.bf16.msra.mxu1 %v1065_v15  ;;  %919 = vmatprep.subr.bf16.mxu0 %v1066_v16  ;;  %v1102_v45 = vld [vmem:[%s1413_s1 + $0x108] sm:$0xff]   ;;  %v1105_v50 = vld [vmem:[%s1414_s0 + $0x84] ss:$20 sps:$4 sm:$0xff]   ;;  %v1108_v52 = vld [vmem:[%s1414_s0 + $0x80] ss:$20 sps:$4 sm:$0xff]  }
  0x12   :  { %965 = vmatprep.subr.bf16.mxu1 %v1067_v17  ;;  %v1107_v51 = vld [vmem:[%s1414_s0 + $0x78] ss:$20 sps:$4 sm:$0xff]   ;;  %v1114_v55 = vld [vmem:[%s1414_s0 + $0xa0] ss:$20 sps:$4 sm:$0xff]   ;;  %v1115_v56 = vld [vmem:[%s1414_s0 + $0xa8] ss:$20 sps:$4 sm:$0xff]  }
  0x13   :  { %v1109_v53 = vld [vmem:[%s1414_s0 + $0xa4] ss:$20 sps:$4 sm:$0xff]   ;;  %v1111_v54 = vld [vmem:[%s1414_s0 + $0xac] ss:$20 sps:$4 sm:$0xff]   ;;  %v1117_v58 = vld [vmem:[%s1414_s0 + $0x88] ss:$20 sps:$4 sm:$0xff]  }
  0x14   :  { %920 = vmatpush3.bf16.msra.mxu0 %v1068_v18  ;;  %v1116_v57 = vld [vmem:[%s1414_s0 + $0x10] ss:$20 sps:$4 sm:$0xff]   ;;  %v1118_v59 = vld [vmem:[%s1414_s0 + $0x38] ss:$20 sps:$4 sm:$0xff]   ;;  %v1120_v61 = vld [vmem:[%s1414_s0 + $0x60] ss:$20 sps:$4 sm:$0xff]  }
  0x15   :  { %966 = vmatpush3.bf16.msra.mxu1 %v1069_v19  ;;  %921 = vmatprep.subr.bf16.mxu0 %v1070_v20  ;;  %v1119_v60 = vld [vmem:[%s1414_s0 + $0xb0] ss:$20 sps:$4 sm:$0xff]  }
  0x16   :  { %967 = vmatprep.subr.bf16.mxu1 %v1071_v21 }
  0x18   :  { %922 = vmatpush3.bf16.msra.mxu0 %v1072_v22 }
  0x19   :  { %968 = vmatpush3.bf16.msra.mxu1 %v1073_v23  ;;  %923 = vmatprep.subr.bf16.mxu0 %v1074_v24 }
  0x1a   :  { %969 = vmatprep.subr.bf16.mxu1 %v1075_v25 }
  0x1c   :  { %924 = vmatpush3.bf16.msra.mxu0 %v1076_v26 }
  0x1d   :  { %970 = vmatpush3.bf16.msra.mxu1 %v1077_v27  ;;  %925 = vmatprep.subr.bf16.mxu0 %v1078_v28 }
  0x1e   :  { %971 = vmatprep.subr.bf16.mxu1 %v1079_v29 }
  0x20   :  { %926 = vmatpush3.bf16.msra.mxu0 %v1080_v30 }
  0x21   :  { %972 = vmatpush3.bf16.msra.mxu1 %v1081_v31  ;;  %1012 = vmatprep.subr.bf16.mxu0 %v1121_v34 }
  0x22   :  { %1040 = vmatprep.subr.bf16.mxu1 %v1121_v34 }
  0x23   :  { %510 = vmatmul.mubr.bf16.vlgmr.msra.gmra.mxu0 %v1082_v32 }
  0x24   :  { %583 = vmatmul.mubr.bf16.vlgmr.msra.gmra.mxu1 %v1085_v35  ;;  %1013 = vmatpush3.bf16.msra.mxu0 %v1088_v37 }
  0x25   :  { %517 = vmatprep.mubr.bf16.mxu0 %v1089_v38  ;;  %1044 = vmatpush3.bf16.msra.mxu1 %v1088_v37 }
  0x26   :  { %590 = vmatprep.mubr.bf16.mxu1 %v1091_v39  ;;  %1014 = vmatprep.subr.bf16.mxu0 %v1121_v34 }
  0x27   :  { %1041 = vmatprep.subr.bf16.mxu1 %v1121_v34 }
  0x28   :  { %1015 = vmatpush3.bf16.msra.mxu0 %v1095_v40 }
  0x29   :  { %1045 = vmatpush3.bf16.msra.mxu1 %v1095_v40  ;;  %1016 = vmatprep.subr.bf16.mxu0 %v1121_v34 }
  0x2a   :  { %1042 = vmatprep.subr.bf16.mxu1 %v1121_v34 }
  0x2b   :  { %518 = vmatmul.mubr.bf16.gmra.mxu0 %v1093_v41 }
  0x2c   :  { %591 = vmatmul.mubr.bf16.gmra.mxu1 %v1094_v42  ;;  %525 = vmatprep.mubr.bf16.mxu0 %v1096_v43 }
  0x2d   :  { %598 = vmatprep.mubr.bf16.mxu1 %v1098_v44  ;;  %1017 = vmatpush3.bf16.msra.mxu0 %v1102_v45 }
  0x2e   :  { %1046 = vmatpush3.bf16.msra.mxu1 %v1102_v45  ;;  %1018 = vmatprep.subr.bf16.mxu0 %v1121_v34 }
  0x2f   :  { %1043 = vmatprep.subr.bf16.mxu1 %v1121_v34 }
  0x31   :  { %1019 = vmatpush3.bf16.msra.mxu0 %v1113_v48 }
  0x32   :  { %1047 = vmatpush3.bf16.msra.mxu1 %v1113_v48  ;;  %v1363_v48 = vld [vmem:[%s1415_s2] ss:$0 sm:$0xff] }
  0x33   :  { %526 = vmatmul.mubr.bf16.gmra.mxu0 %v1100_v46 }
  0x34   :  { %599 = vmatmul.mubr.bf16.gmra.mxu1 %v1101_v47  ;;  %533 = vmatprep.mubr.bf16.mxu0 %v1103_v49 }
  0x35   :  { %606 = vmatprep.mubr.bf16.mxu1 %v1105_v50 }
  0x3b   :  { %534 = vmatmul.mubr.bf16.gmra.mxu0 %v1107_v51 }
  0x3c   :  { %607 = vmatmul.mubr.bf16.gmra.mxu1 %v1108_v52  ;;  %541 = vmatprep.mubr.bf16.mxu0 %v1109_v53 }
  0x3d   :  { %614 = vmatprep.mubr.bf16.mxu1 %v1111_v54 }
  0x43   :  { %542 = vmatmul.mubr.bf16.gmra.mxu0 %v1114_v55 }
  0x44   :  { %615 = vmatmul.mubr.bf16.gmra.mxu1 %v1115_v56  ;;  %1020 = vmatprep.mubr.msk.bf16.mxu0 %vm1122_vm0, %v1121_v34 }
  0x45   :  { %1032 = vmatprep.mubr.msk.bf16.mxu1 %vm1122_vm0, %v1121_v34 }
  0x4b   :  { %1021 = vmatmul.mubr.msk.bf16.vlgmr.msra.gmra.mxu0 %vm461_vm1, %v1116_v57 }
  0x4c   :  { %1033 = vmatmul.mubr.msk.bf16.vlgmr.msra.gmra.mxu1 %vm461_vm1, %v1117_v58  ;;  %1024 = vmatprep.mubr.msk.bf16.mxu0 %vm1122_vm0, %v1121_v34 }
  0x4d   :  { %1036 = vmatprep.mubr.msk.bf16.mxu1 %vm1122_vm0, %v1121_v34 }
  0x53   :  { %1025 = vmatmul.mubr.msk.bf16.gmra.mxu0 %vm461_vm1, %v1118_v59 }
  0x54   :  { %1037 = vmatmul.mubr.msk.bf16.gmra.mxu1 %vm461_vm1, %v1119_v60  ;;  %1028 = vmatprep.mubr.msk.bf16.mxu0 %vm1122_vm0, %v1121_v34 }
  0x5b   :  { %1029 = vmatmul.mubr.msk.bf16.gmra.mxu0 %vm461_vm1, %v1120_v61  ;;  %v1369_v61 = vld [vmem:[%s1416_s3] ss:$0 sm:$0xff] }
  0xe3   :  { %v927_v62 = vpop.f32.mrf.mxu0 }
  0xe4   :  { %v973_v63 = vpop.f32.mrf.mxu1 }
  0xe5   :  { %v928_v0 = vpop.f32.mrf.mxu0 }
  0xe6   :  { %v974_v1 = vpop.f32.mrf.mxu1  ;;  %v929_v33 = vadd.f32 %v928_v0, %v927_v62 }
  0xe7   :  { %v930_v2 = vpop.f32.mrf.mxu0  ;;  %v975_v34 = vadd.f32 %v974_v1, %v973_v63 }
  0xe8   :  { %v976_v3 = vpop.f32.mrf.mxu1 }
  0xe9   :  { %v931_v4 = vpop.f32.mrf.mxu0  ;;  %v585_v44 = vadd.f32 %v975_v34, %v929_v33 }
  0xea   :  { %v977_v5 = vpop.f32.mrf.mxu1  ;;  %v932_v41 = vadd.f32 %v931_v4, %v930_v2 }
  0xeb   :  { %v933_v6 = vpop.f32.mrf.mxu0  ;;  %v978_v42 = vadd.f32 %v977_v5, %v976_v3 }
  0xec   :  { %v979_v7 = vpop.f32.mrf.mxu1 }
  0xed   :  { %v934_v8 = vpop.f32.mrf.mxu0  ;;  %v588_v60 = vadd.f32 %v978_v42, %v932_v41 }
  0xee   :  { %v980_v9 = vpop.f32.mrf.mxu1  ;;  %v935_v52 = vadd.f32 %v934_v8, %v933_v6 }
  0xef   :  { %v936_v10 = vpop.f32.mrf.mxu0  ;;  %v981_v53 = vadd.f32 %v980_v9, %v979_v7 }
  0xf0   :  { %v982_v11 = vpop.f32.mrf.mxu1 }
  0xf1   :  { %v937_v12 = vpop.f32.mrf.mxu0  ;;  %v593_v6 = vadd.f32 %v981_v53, %v935_v52 }
  0xf2   :  { %v983_v13 = vpop.f32.mrf.mxu1  ;;  %v938_v3 = vadd.f32 %v937_v12, %v936_v10 }
  0xf3   :  { %v1344_v14 = vpop.f32.mrf.mxu0  ;;  %v984_v7 = vadd.f32 %v983_v13, %v982_v11 }
  0xf4   :  { %v1346_v15 = vpop.f32.mrf.mxu1 }
  0xf5   :  { %v1348_v16 = vpop.f32.mrf.mxu0 }
  0xf6   :  { %v1350_v17 = vpop.f32.mrf.mxu1  ;;  %v941_v11 = vadd.f32 %v1348_v16, %v1344_v14 }
  0xf7   :  { %v1352_v18 = vpop.f32.mrf.mxu0  ;;  %v987_v13 = vadd.f32 %v1350_v17, %v1346_v15 }
  0xf8   :  { %v1354_v19 = vpop.f32.mrf.mxu1 }
  0xf9   :  { %v1356_v20 = vpop.f32.mrf.mxu0 }
  0xfa   :  { %v1358_v21 = vpop.f32.mrf.mxu1 }
  0xfb   :  { %v945_v22 = vpop.f32.mrf.mxu0 }
  0xfc   :  { %v991_v23 = vpop.f32.mrf.mxu1 }
  0xfd   :  { %v946_v24 = vpop.f32.mrf.mxu0 }
  0xfe   :  { %v992_v25 = vpop.f32.mrf.mxu1  ;;  %v947_v36 = vadd.f32 %v946_v24, %v945_v22 }
  0xff   :  { %v948_v26 = vpop.f32.mrf.mxu0  ;;  %v993_v37 = vadd.f32 %v992_v25, %v991_v23 }
 0x100   :  { %v994_v27 = vpop.f32.mrf.mxu1 }
 0x101   :  { %v949_v28 = vpop.f32.mrf.mxu0  ;;  %v609_v49 = vadd.f32 %v993_v37, %v947_v36  ;;  %v596_v37 = vadd.f32 %v984_v7, %v938_v3 }
 0x102   :  { %v995_v29 = vpop.f32.mrf.mxu1  ;;  %v950_v45 = vadd.f32 %v949_v28, %v948_v26 }
 0x103   :  { %v951_v30 = vpop.f32.mrf.mxu0  ;;  %v996_v46 = vadd.f32 %v995_v29, %v994_v27 }
 0x104   :  { %v997_v31 = vpop.f32.mrf.mxu1 }
 0x105   :  { %v952_v32 = vpop.f32.mrf.mxu0  ;;  %v612_v0 = vadd.f32 %v996_v46, %v950_v45  ;;  %v601_v45 = vadd.f32 %v987_v13, %v941_v11  ;;  %v944_v46 = vadd.f32 %v1356_v20, %v1352_v18 }
 0x106   :  { %v998_v35 = vpop.f32.mrf.mxu1  ;;  %v953_v56 = vadd.f32 %v952_v32, %v951_v30 }
 0x107   :  { %v954_v38 = vpop.f32.mrf.mxu0  ;;  %v999_v57 = vadd.f32 %v998_v35, %v997_v31 }
 0x108   :  { %v1000_v39 = vpop.f32.mrf.mxu1 }
 0x109   :  { %v955_v40 = vpop.f32.mrf.mxu0  ;;  %v617_v23 = vadd.f32 %v999_v57, %v953_v56 }
 0x10a   :  { %v1001_v43 = vpop.f32.mrf.mxu1  ;;  %v956_v24 = vadd.f32 %v955_v40, %v954_v38 }
 0x10b   :  { %v657_v47 = vpop.f32.mrf.mxu0  ;;  %v1002_v25 = vadd.f32 %v1001_v43, %v1000_v39 }
 0x10c   :  { %v658_v50 = vadd.f32 %v657_v47, %v585_v44  ;;  %v681_v51 = vpop.f32.mrf.mxu1  ;;  %v990_v47 = vadd.f32 %v1358_v21, %v1354_v19 }
 0x10d   :  { %v682_v54 = vadd.f32 %v681_v51, %v609_v49  ;;  %v1022_v55 = vpop.f32.mrf.mxu0  ;;  %v620_v42 = vadd.f32 %v1002_v25, %v956_v24 }
 0x10e   :  { %v703_v58 = vmul.f32 %v1363_v48, %v658_v50  ;;  %v1034_v59 = vpop.f32.mrf.mxu1 }
 0x10f   :  { %v709_v62 = vmul.f32 %v1363_v48, %v682_v54  ;;  %v660_v63 = vpop.f32.mrf.mxu0 }
 0x110   :  { %v661_v1 = vadd.f32 %v660_v63, %v588_v60  ;;  %v684_v2 = vpop.f32.mrf.mxu1  ;;  %v720_v8 = vadd.f32 %v1369_v61, %v703_v58  ;;  %v604_v58 = vadd.f32 %v990_v47, %v944_v46 }
 0x111   :  { %v685_v4 = vadd.f32 %v684_v2, %v612_v0  ;;  %v1023_v5 = vpop.f32.mrf.mxu0  ;;  %v726_v26 = vadd.f32 %v1369_v61, %v709_v62 }
 0x112   :  { %v704_v9 = vmul.f32 %v1363_v48, %v661_v1  ;;  %v1035_v22 = vpop.f32.mrf.mxu1  ;;  %v730_v33 = vmax.f32 %v720_v8, 0.0 }
 0x113   :  { %v710_v27 = vmul.f32 %v1363_v48, %v685_v4  ;;  %v665_v28 = vpop.f32.mrf.mxu0  ;;  %v736_v38 = vmax.f32 %v726_v26, 0.0 }
 0x114   :  { %v721_v29 = vadd.f32 %v1369_v61, %v704_v9  ;;  %v666_v10 = vadd.f32 %v665_v28, %v593_v6  ;;  %v689_v12 = vpop.f32.mrf.mxu1 }
 0x115   :  { %v727_v30 = vadd.f32 %v1369_v61, %v710_v27  ;;  %v690_v31 = vadd.f32 %v689_v12, %v617_v23  ;;  %v1026_v32 = vpop.f32.mrf.mxu0 }
 0x116   :  { %v731_v34 = vmax.f32 %v721_v29, 0.0  ;;  %v705_v35 = vmul.f32 %v1363_v48, %v666_v10  ;;  %v1038_v36 = vpop.f32.mrf.mxu1 }
 0x117   :  { %v737_v39 = vmax.f32 %v727_v30, 0.0  ;;  %v711_v40 = vmul.f32 %v1363_v48, %v690_v31  ;;  %v668_v41 = vpop.f32.mrf.mxu0 }
 0x118   :  { %v885_v14 = vpack.c.bf16 %v731_v34, %v730_v33  ;;  %v669_v16 = vadd.f32 %v668_v41, %v596_v37  ;;  %v692_v43 = vpop.f32.mrf.mxu1  ;;  %v722_v49 = vadd.f32 %v1369_v61, %v705_v35 }
 0x119   :  { %v900_v15 = vpack.c.bf16 %v737_v39, %v736_v38  ;;  %v693_v17 = vadd.f32 %v692_v43, %v620_v42  ;;  %v1027_v44 = vpop.f32.mrf.mxu0  ;;  %v728_v52 = vadd.f32 %v1369_v61, %v711_v40 }
 0x11a   :  { %886 = vst [vmem:[%s1417_s4] sm:$0xff] %v885_v14   ;;  %v706_v50 = vmul.f32 %v1363_v48, %v669_v16  ;;  %v1039_v51 = vpop.f32.mrf.mxu1  ;;  %v732_v55 = vmax.f32 %v722_v49, 0.0 }
 0x11b   :  { %909 = vst [vmem:[%s1417_s4 + $0x18] sm:$0xff] %v900_v15   ;;  %v712_v18 = vmul.f32 %v1363_v48, %v693_v17  ;;  %v673_v20 = vpop.f32.mrf.mxu0  ;;  %v738_v59 = vmax.f32 %v728_v52, 0.0 }
 0x11c   :  { %v723_v19 = vadd.f32 %v1369_v61, %v706_v50  ;;  %v674_v21 = vadd.f32 %v673_v20, %v601_v45 }
 0x11d   :  { %v729_v53 = vadd.f32 %v1369_v61, %v712_v18  ;;  %v1030_v54 = vpop.f32.mrf.mxu0 }
 0x11e   :  { %v733_v56 = vmax.f32 %v723_v19, 0.0  ;;  %v707_v57 = vmul.f32 %v1363_v48, %v674_v21 }
 0x11f   :  { %v739_v60 = vmax.f32 %v729_v53, 0.0  ;;  %v676_v62 = vpop.f32.mrf.mxu0 }
 0x120   :  { %v890_v63 = vpack.c.bf16 %v733_v56, %v732_v55  ;;  %v677_v0 = vadd.f32 %v676_v62, %v604_v58  ;;  %v724_v3 = vadd.f32 %v1369_v61, %v707_v57 }
 0x121   :  { %v905_v1 = vpack.c.bf16 %v739_v60, %v738_v59  ;;  %v1031_v2 = vpop.f32.mrf.mxu0 }
 0x122   :  { %907 = vst [vmem:[%s1417_s4 + $0x8] sm:$0xff] %v890_v63   ;;  %v708_v4 = vmul.f32 %v1363_v48, %v677_v0  ;;  %v734_v6 = vmax.f32 %v724_v3, 0.0 }
 0x123   :  { %910 = vst [vmem:[%s1417_s4 + $0x20] sm:$0xff] %v905_v1  }
 0x124   :  { %v725_v5 = vadd.f32 %v1369_v61, %v708_v4 }
 0x126   :  { %v735_v7 = vmax.f32 %v725_v5, 0.0 }
 0x128   :  { %v895_v8 = vpack.c.bf16 %v735_v7, %v734_v6 }
 0x12a   :  { %908 = vst [vmem:[%s1417_s4 + $0x10] sm:$0xff] %v895_v8  }

// kernel: reference_encoder_forward.9
= control target key start
LH: loop header
LB: loop body
LE: loop exit
PB: predicated region body
PF: predicated region fallthrough
CT: control target
= control target key end

     0   :  { %14 = vsyncpa [#allocation3], 0  ;;  %v3461_v2 = vmov 0   ;;  %s3450_s0 = inlined_call_operand.vmem [shape: f32[4,2,768], index: 0, kind: input, shape index: {}]   ;;  %s3451_s1 = inlined_call_operand.vmem [shape: bf16[256,768], index: 1, kind: input, shape index: {}]   ;;  %s3452_s2 = inlined_call_operand.vmem [shape: f32[1,768], index: 2, kind: input, shape index: {}]   ;;  %s3453_s3 = inlined_call_operand.vmem [shape: f32[256,64], index: 3, kind: input, shape index: {}]   ;;  %s3454_s4 = inlined_call_operand.vmem [shape: f32[1,64], index: 4, kind: input, shape index: {}]   ;;  %s3455_s5 = inlined_call_operand.vmem [shape: f32[256,64], index: 5, kind: input, shape index: {}]   ;;  %s3456_s6 = inlined_call_operand.vmem [shape: f32[1,64], index: 6, kind: input, shape index: {}]   ;;  %s3457_s7 = inlined_call_operand.hbm [shape: f32[2,64], index: 7, kind: output, shape index: {0}]   ;;  %s3458_s8 = inlined_call_operand.hbm [shape: f32[2,64], index: 8, kind: output, shape index: {1}]  }
   0x1   :  { %v2182_v0 = vld [vmem:[%s3451_s1 + $0x154] ss:$24 sps:$4 sm:$0xff]   ;;  %v2187_v1 = vld [vmem:[%s3451_s1 + $0x150] ss:$24 sps:$4 sm:$0xff]   ;;  %673 = vmatprep.mubr.bf16.mxu0 %v3461_v2  ;;  %714 = vmatprep.mubr.bf16.mxu1 %v3461_v2  ;;  %v2195_v3 = vld [vmem:[%s3451_s1 + $0x124] ss:$24 sps:$4 sm:$0xff]  }
   0x2   :  { %641 = vmatprep.subr.bf16.mxu0 %v2182_v0  ;;  %v2201_v4 = vld [vmem:[%s3451_s1 + $0x120] ss:$24 sps:$4 sm:$0xff]   ;;  %v2207_v5 = vld [vmem:[%s3451_s1 + $0xf4] ss:$24 sps:$4 sm:$0xff]   ;;  %v2213_v6 = vld [vmem:[%s3451_s1 + $0xf0] ss:$24 sps:$4 sm:$0xff]  }
   0x3   :  { %642 = vmatpush1.bf16.msra.mxu0 %v2187_v1  ;;  %v2219_v7 = vld [vmem:[%s3451_s1 + $0xc4] ss:$24 sps:$4 sm:$0xff]   ;;  %v2225_v8 = vld [vmem:[%s3451_s1 + $0xc0] ss:$24 sps:$4 sm:$0xff]   ;;  %v2231_v9 = vld [vmem:[%s3451_s1 + $0x94] ss:$24 sps:$4 sm:$0xff]  }
   0x4   :  { %643 = vmatprep.subr.bf16.mxu0 %v2195_v3  ;;  %v2237_v10 = vld [vmem:[%s3451_s1 + $0x90] ss:$24 sps:$4 sm:$0xff]   ;;  %v2242_v11 = vld [vmem:[%s3451_s1 + $0x15c] ss:$24 sps:$4 sm:$0xff]   ;;  %v2259_v14 = vld [vmem:[%s3451_s1 + $0x12c] ss:$24 sps:$4 sm:$0xff]  }
   0x5   :  { %v2247_v12 = vld [vmem:[%s3451_s1 + $0x158] ss:$24 sps:$4 sm:$0xff]   ;;  %v2253_v13 = vld [vmem:[%s3451_s1 + $0x64] ss:$24 sps:$4 sm:$0xff]   ;;  %682 = vmatprep.subr.bf16.mxu1 %v2242_v11  ;;  %v2265_v15 = vld [vmem:[%s3451_s1 + $0x128] ss:$24 sps:$4 sm:$0xff]  }
   0x6   :  { %683 = vmatpush1.bf16.msra.mxu1 %v2247_v12  ;;  %v2271_v16 = vld [vmem:[%s3451_s1 + $0x60] ss:$24 sps:$4 sm:$0xff]   ;;  %v2278_v17 = vld [vmem:[%s3451_s1 + $0x34] ss:$24 sps:$4 sm:$0xff]   ;;  %v2295_v20 = vld [vmem:[%s3451_s1 + $0x30] ss:$24 sps:$4 sm:$0xff]  }
   0x7   :  { %644 = vmatpush1.bf16.msra.mxu0 %v2201_v4  ;;  %684 = vmatprep.subr.bf16.mxu1 %v2259_v14  ;;  %v2283_v18 = vld [vmem:[%s3451_s1 + $0xfc] ss:$24 sps:$4 sm:$0xff]   ;;  %v2289_v19 = vld [vmem:[%s3451_s1 + $0xf8] ss:$24 sps:$4 sm:$0xff]   ;;  %v2301_v21 = vld [vmem:[%s3451_s1 + $0xcc] ss:$24 sps:$4 sm:$0xff]  }
   0x8   :  { %645 = vmatprep.subr.bf16.mxu0 %v2207_v5  ;;  %3563 = vst [vmem:[#allocation8_spill] sm:$0xff] %v2289_v19  ;;  %3564 = vst [vmem:[#allocation9_spill] sm:$0xff] %v2301_v21  ;;  %v2307_v22 = vld [vmem:[%s3451_s1 + $0x4] ss:$24 sps:$4 sm:$0xff]   ;;  %v2312_v23 = vld [vmem:[%s3451_s1] ss:$24 sps:$4 sm:$0xff]  }
   0x9   :  { %v2318_v24 = vld [vmem:[%s3451_s1 + $0xc8] ss:$24 sps:$4 sm:$0xff]   ;;  %v2325_v25 = vld [vmem:[%s3451_s1 + $0x9c] ss:$24 sps:$4 sm:$0xff]   ;;  %v2337_v27 = vld [vmem:[%s3451_s1 + $0x98] ss:$24 sps:$4 sm:$0xff]  }
   0xa   :  { %685 = vmatpush1.bf16.msra.mxu1 %v2265_v15  ;;  %3565 = vst [vmem:[#allocation10_spill] sm:$0xff] %v2318_v24  ;;  %3566 = vst [vmem:[#allocation11_spill] sm:$0xff] %v2325_v25  ;;  %v2331_v26 = vld [vmem:[%s3451_s1 + $0x2d4] ss:$24 sps:$4 sm:$0xff]   ;;  %v2343_v28 = vld [vmem:[%s3451_s1 + $0x2d0] ss:$24 sps:$4 sm:$0xff]  }
   0xb   :  { %646 = vmatpush1.bf16.msra.mxu0 %v2213_v6  ;;  %686 = vmatprep.subr.bf16.mxu1 %v2283_v18  ;;  %3567 = vst [vmem:[#allocation12_spill] sm:$0xff] %v2337_v27  ;;  %v2349_v29 = vld [vmem:[%s3451_s1 + $0x6c] ss:$24 sps:$4 sm:$0xff]   ;;  %v2360_v31 = vld [vmem:[%s3451_s1 + $0x2a0] ss:$24 sps:$4 sm:$0xff]  }
   0xc   :  { %647 = vmatprep.subr.bf16.mxu0 %v2219_v7  ;;  %3568 = vst [vmem:[#allocation13_spill] sm:$0xff] %v2349_v29  ;;  %v2355_v30 = vld [vmem:[%s3451_s1 + $0x2a4] ss:$24 sps:$4 sm:$0xff]   ;;  %v2366_v32 = vld [vmem:[%s3451_s1 + $0x68] ss:$24 sps:$4 sm:$0xff]  }
   0xd   :  { %3569 = vst [vmem:[#allocation14_spill] sm:$0xff] %v2366_v32  ;;  %v2373_v33 = vld [vmem:[%s3451_s1 + $0x3c] ss:$24 sps:$4 sm:$0xff]   ;;  %v2385_v35 = vld [vmem:[%s3451_s1 + $0x38] ss:$24 sps:$4 sm:$0xff]  }
   0xe   :  { %687 = vmatpush1.bf16.msra.mxu1 %v2289_v19  ;;  %3570 = vst [vmem:[#allocation15_spill] sm:$0xff] %v2373_v33  ;;  %v2379_v34 = vld [vmem:[%s3451_s1 + $0x274] ss:$24 sps:$4 sm:$0xff]   ;;  %3571 = vst [vmem:[#allocation16_spill] sm:$0xff] %v2385_v35  ;;  %v2391_v36 = vld [vmem:[%s3451_s1 + $0x270] ss:$24 sps:$4 sm:$0xff]  }
   0xf   :  { %648 = vmatpush1.bf16.msra.mxu0 %v2225_v8  ;;  %688 = vmatprep.subr.bf16.mxu1 %v2301_v21  ;;  %v2397_v37 = vld [vmem:[%s3451_s1 + $0xc] ss:$24 sps:$4 sm:$0xff]   ;;  %v2408_v39 = vld [vmem:[%s3451_s1 + $0x240] ss:$24 sps:$4 sm:$0xff]   ;;  %v2421_v41 = vld [vmem:[%s3451_s1 + $0x2dc] ss:$24 sps:$4 sm:$0xff]  }
  0x10   :  { %649 = vmatprep.subr.bf16.mxu0 %v2231_v9  ;;  %3572 = vst [vmem:[#allocation17_spill] sm:$0xff] %v2397_v37  ;;  %v2403_v38 = vld [vmem:[%s3451_s1 + $0x244] ss:$24 sps:$4 sm:$0xff]   ;;  %v2414_v40 = vld [vmem:[%s3451_s1 + $0x8] ss:$24 sps:$4 sm:$0xff]   ;;  %3574 = vst [vmem:[#allocation19_spill] sm:$0xff] %v2421_v41 }
  0x11   :  { %3573 = vst [vmem:[#allocation18_spill] sm:$0xff] %v2414_v40  ;;  %v2427_v42 = vld [vmem:[%s3451_s1 + $0x214] ss:$24 sps:$4 sm:$0xff]   ;;  %v2433_v43 = vld [vmem:[%s3451_s1 + $0x2d8] ss:$24 sps:$4 sm:$0xff]  }
  0x12   :  { %689 = vmatpush1.bf16.msra.mxu1 %v2318_v24  ;;  %3575 = vst [vmem:[#allocation20_spill] sm:$0xff] %v2433_v43  ;;  %v2439_v44 = vld [vmem:[%s3451_s1 + $0x210] ss:$24 sps:$4 sm:$0xff]   ;;  %v2445_v45 = vld [vmem:[%s3451_s1 + $0x2ac] ss:$24 sps:$4 sm:$0xff]  }
  0x13   :  { %650 = vmatpush1.bf16.msra.mxu0 %v2237_v10  ;;  %690 = vmatprep.subr.bf16.mxu1 %v2325_v25  ;;  %3576 = vst [vmem:[#allocation21_spill] sm:$0xff] %v2445_v45  ;;  %v2451_v46 = vld [vmem:[%s3451_s1 + $0x1e4] ss:$24 sps:$4 sm:$0xff]   ;;  %v2456_v47 = vld [vmem:[%s3451_s1 + $0x1e0] ss:$24 sps:$4 sm:$0xff]  }
  0x14   :  { %651 = vmatprep.subr.bf16.mxu0 %v2253_v13  ;;  %v2462_v48 = vld [vmem:[%s3451_s1 + $0x2a8] ss:$24 sps:$4 sm:$0xff]   ;;  %v2469_v49 = vld [vmem:[%s3451_s1 + $0x27c] ss:$24 sps:$4 sm:$0xff]   ;;  %v2481_v51 = vld [vmem:[%s3451_s1 + $0x278] ss:$24 sps:$4 sm:$0xff]  }
  0x15   :  { %3577 = vst [vmem:[#allocation22_spill] sm:$0xff] %v2462_v48  ;;  %3578 = vst [vmem:[#allocation23_spill] sm:$0xff] %v2469_v49  ;;  %v2475_v50 = vld [vmem:[%s3451_s1 + $0x1b4] ss:$24 sps:$4 sm:$0xff]   ;;  %v2487_v52 = vld [vmem:[%s3451_s1 + $0x1b0] ss:$24 sps:$4 sm:$0xff]  }
  0x16   :  { %691 = vmatpush1.bf16.msra.mxu1 %v2337_v27  ;;  %3579 = vst [vmem:[#allocation24_spill] sm:$0xff] %v2481_v51  ;;  %v2493_v53 = vld [vmem:[%s3451_s1 + $0x24c] ss:$24 sps:$4 sm:$0xff]   ;;  %v2505_v55 = vld [vmem:[%s3451_s1 + $0x248] ss:$24 sps:$4 sm:$0xff]  }
  0x17   :  { %652 = vmatpush1.bf16.msra.mxu0 %v2271_v16  ;;  %692 = vmatprep.subr.bf16.mxu1 %v2349_v29  ;;  %3580 = vst [vmem:[#allocation25_spill] sm:$0xff] %v2493_v53  ;;  %v2499_v54 = vld [vmem:[%s3451_s1 + $0x184] ss:$24 sps:$4 sm:$0xff]   ;;  %3581 = vst [vmem:[#allocation26_spill] sm:$0xff] %v2505_v55  ;;  %v2511_v56 = vld [vmem:[%s3451_s1 + $0x180] ss:$24 sps:$4 sm:$0xff]  }
  0x18   :  { %653 = vmatprep.subr.bf16.mxu0 %v2278_v17  ;;  %3582 = vst [vmem:[#allocation27_spill] sm:$0xff] %v2511_v56  ;;  %v2517_v57 = vld [vmem:[%s3451_s1 + $0x21c] ss:$24 sps:$4 sm:$0xff]   ;;  %v2529_v59 = vld [vmem:[%s3451_s1 + $0x218] ss:$24 sps:$4 sm:$0xff]  }
  0x19   :  { %3583 = vst [vmem:[#allocation28_spill] sm:$0xff] %v2517_v57  ;;  %v2523_v58 = vld [vmem:[%s3451_s1 + $0x164] ss:$24 sps:$4 sm:$0xff]   ;;  %3585 = vst [vmem:[#allocation30_spill] sm:$0xff] %v2529_v59  ;;  %v2535_v60 = vld [vmem:[%s3451_s1 + $0x160] ss:$24 sps:$4 sm:$0xff]  }
  0x1a   :  { %693 = vmatpush1.bf16.msra.mxu1 %v2366_v32  ;;  %3584 = vst [vmem:[#allocation29_spill] sm:$0xff] %v2523_v58  ;;  %3586 = vst [vmem:[#allocation31_spill] sm:$0xff] %v2535_v60  ;;  %v2541_v61 = vld [vmem:[%s3451_s1 + $0x1ec] ss:$24 sps:$4 sm:$0xff]  }
  0x1b   :  { %654 = vmatpush1.bf16.msra.mxu0 %v2295_v20  ;;  %694 = vmatprep.subr.bf16.mxu1 %v2373_v33  ;;  %3587 = vst [vmem:[#allocation32_spill] sm:$0xff] %v2541_v61  ;;  %v2547_v62 = vld [vmem:[%s3451_s1 + $0x134] ss:$24 sps:$4 sm:$0xff]  }
  0x1c   :  { %655 = vmatprep.subr.bf16.mxu0 %v2307_v22  ;;  %3588 = vst [vmem:[#allocation33_spill] sm:$0xff] %v2547_v62 }
  0x1e   :  { %695 = vmatpush1.bf16.msra.mxu1 %v2385_v35 }
  0x1f   :  { %656 = vmatpush1.bf16.msra.mxu0 %v2312_v23  ;;  %696 = vmatprep.subr.bf16.mxu1 %v2397_v37 }
  0x20   :  { %657 = vmatprep.subr.bf16.mxu0 %v2331_v26 }
  0x22   :  { %697 = vmatpush1.bf16.msra.mxu1 %v2414_v40 }
  0x23   :  { %658 = vmatpush2.bf16.msra.mxu0 %v2343_v28  ;;  %698 = vmatprep.subr.bf16.mxu1 %v2421_v41 }
  0x24   :  { %659 = vmatprep.subr.bf16.mxu0 %v2355_v30 }
  0x26   :  { %699 = vmatpush2.bf16.msra.mxu1 %v2433_v43 }
  0x27   :  { %660 = vmatpush2.bf16.msra.mxu0 %v2360_v31  ;;  %700 = vmatprep.subr.bf16.mxu1 %v2445_v45 }
  0x28   :  { %661 = vmatprep.subr.bf16.mxu0 %v2379_v34 }
  0x2a   :  { %701 = vmatpush2.bf16.msra.mxu1 %v2462_v48 }
  0x2b   :  { %662 = vmatpush2.bf16.msra.mxu0 %v2391_v36  ;;  %702 = vmatprep.subr.bf16.mxu1 %v2469_v49 }
  0x2c   :  { %663 = vmatprep.subr.bf16.mxu0 %v2403_v38 }
  0x2e   :  { %703 = vmatpush2.bf16.msra.mxu1 %v2481_v51 }
  0x2f   :  { %664 = vmatpush2.bf16.msra.mxu0 %v2408_v39  ;;  %704 = vmatprep.subr.bf16.mxu1 %v2493_v53 }
  0x30   :  { %665 = vmatprep.subr.bf16.mxu0 %v2427_v42 }
  0x32   :  { %705 = vmatpush2.bf16.msra.mxu1 %v2505_v55 }
  0x33   :  { %666 = vmatpush2.bf16.msra.mxu0 %v2439_v44  ;;  %706 = vmatprep.subr.bf16.mxu1 %v2517_v57 }
  0x34   :  { %667 = vmatprep.subr.bf16.mxu0 %v2451_v46 }
  0x37   :  { %668 = vmatpush2.bf16.msra.mxu0 %v2456_v47 }
  0x38   :  { %669 = vmatprep.subr.bf16.mxu0 %v2475_v50 }
  0x3b   :  { %670 = vmatpush2.bf16.msra.mxu0 %v2487_v52 }
  0x3c   :  { %671 = vmatprep.subr.bf16.mxu0 %v2499_v54 }
  0x3f   :  { %672 = vmatpush2.bf16.msra.mxu0 %v2511_v56 }
  0x40   :  { %723 = vmatprep.subr.bf16.mxu0 %v2523_v58 }
  0x41   :  { %15 = vsyncpa [#allocation5], 0  ;;  %707 = vmatpush2.bf16.msra.mxu1 %v2529_v59  ;;  %v2554_v63 = vld [vmem:[%s3451_s1 + $0x1e8] ss:$24 sps:$4 sm:$0xff]   ;;  %v2572_v59 = vld [vmem:[%s3451_s1 + $0x104] ss:$24 sps:$4 sm:$0xff]  }
  0x42   :  { %674 = vmatmul.mubr.bf16.vlgmr.msra.gmra.mxu0 %v3461_v2  ;;  %3589 = vst [vmem:[#allocation34_spill] sm:$0xff] %v2554_v63  ;;  %v2560_v57 = vld [vmem:[%s3451_s1 + $0x130] ss:$24 sps:$4 sm:$0xff]   ;;  %708 = vmatprep.subr.bf16.mxu1 %v2541_v61  ;;  %v2566_v2 = vld [vmem:[%s3451_s1 + $0x1bc] ss:$24 sps:$4 sm:$0xff]   ;;  %3592 = vst [vmem:[#allocation37_spill] sm:$0xff] %v2572_v59 }
  0x43   :  { %724 = vmatpush1.bf16.msra.mxu0 %v2535_v60  ;;  %3590 = vst [vmem:[#allocation35_spill] sm:$0xff] %v2560_v57  ;;  %3591 = vst [vmem:[#allocation36_spill] sm:$0xff] %v2566_v2  ;;  %v3593_v60 = vmov 0   ;;  %v2579_v61 = vld [vmem:[%s3451_s1 + $0x1b8] ss:$24 sps:$4 sm:$0xff]   ;;  %s2132_s25 = smov [#allocation2]  }
  0x44   :  { %725 = vmatprep.subr.bf16.mxu0 %v2547_v62  ;;  %755 = vmatprep.mubr.bf16.mxu0 %v3593_v60  ;;  %3594 = vst [vmem:[#allocation38_spill] sm:$0xff] %v2579_v61  ;;  %v2585_v62 = vld [vmem:[%s3451_s1 + $0x100] ss:$24 sps:$4 sm:$0xff]   ;;  %v2591_v55 = vld [vmem:[%s3451_s1 + $0x18c] ss:$24 sps:$4 sm:$0xff]   ;;  %s1647_s26 = sshll.u32 %s2132_s25, 4  ;;  %s1648_s26 = int_to_ptr.vmem [resolvable:$true] %s1647_s26 }
  0x45   :  { %709 = vmatpush2.bf16.msra.mxu1 %v2554_v63  ;;  %3595 = vst [vmem:[#allocation39_spill] sm:$0xff] %v2585_v62  ;;  %3596 = vst [vmem:[#allocation40_spill] sm:$0xff] %v2591_v55  ;;  %v2597_v63 = vld [vmem:[%s3451_s1 + $0xd4] ss:$24 sps:$4 sm:$0xff]   ;;  %s2133_s27 = smov [#allocation4]   ;;  %vm1529_vm0 = vcmask 517120   ;;  %p2091_p1 = scmp.lt.s32.totalorder %s1648_s26, %s1648_s26 }
  0x46   :  { %710 = vmatprep.subr.bf16.mxu1 %v2566_v2  ;;  %3597 = vst [vmem:[#allocation41_spill] sm:$0xff] %v2597_v63  ;;  %v2609_v2 = vld [vmem:[%s3451_s1 + $0xd0] ss:$24 sps:$4 sm:$0xff]   ;;  %s1657_s28 = sshll.u32 %s2133_s27, 4  ;;  %s2086_s29 = scalar_lea.vmem %s1648_s26, 32  ;;  %s1658_s28 = int_to_ptr.vmem [resolvable:$true] %s1657_s28 }
  0x47   :  { %726 = vmatpush1.bf16.msra.mxu0 %v2560_v57  ;;  %v2603_v57 = vld [vmem:[%s3451_s1 + $0x188] ss:$24 sps:$4 sm:$0xff]   ;;  %3599 = vst [vmem:[#allocation43_spill] sm:$0xff] %v2609_v2  ;;  %p2087_p0 = scmp.ne.s32.totalorder %s1648_s26, %s2086_s29  ;;  %p2092_p2 = scmp.lt.s32.totalorder %s2086_s29, %s2086_s29 }
  0x48   :  { %727 = vmatprep.subr.bf16.mxu0 %v2572_v59  ;;  %3598 = vst [vmem:[#allocation42_spill] sm:$0xff] %v2603_v57  ;;  %v2616_v59 = vld [vmem:[%s3451_s1 + $0xa4] ss:$24 sps:$4 sm:$0xff]  }
  0x49   :  { %711 = vmatpush2.bf16.msra.mxu1 %v2579_v61  ;;  %3600 = vst [vmem:[#allocation44_spill] sm:$0xff] %v2616_v59  ;;  %p2093_p3 = por %p2092_p2, %p2091_p1 }
  0x4a   :  { %712 = vmatprep.subr.bf16.mxu1 %v2591_v55 }
  0x4b   :  { %728 = vmatpush1.bf16.msra.mxu0 %v2585_v62  ;;  %v2623_v62 = vld [vmem:[%s3451_s1 + $0xa0] ss:$24 sps:$4 sm:$0xff]   ;;  %p2094_p4 = pnand %p2093_p3, %p2087_p0 }
  0x4c   :  { %729 = vmatprep.subr.bf16.mxu0 %v2597_v63  ;;  %3601 = vst [vmem:[#allocation45_spill] sm:$0xff] %v2623_v62  ;;  %v2630_v63 = vld [vmem:[%s3451_s1 + $0x74] ss:$24 sps:$4 sm:$0xff]  }
  0x4d   :  { %713 = vmatpush2.bf16.msra.mxu1 %v2603_v57  ;;  %3602 = vst [vmem:[#allocation46_spill] sm:$0xff] %v2630_v63 }
  0x4e   :  { %837 = vmatprep.subr.bf16.mxu1 %v2182_v0 }
  0x4f   :  { %730 = vmatpush1.bf16.msra.mxu0 %v2609_v2  ;;  %v2638_v2 = vld [vmem:[%s3451_s1 + $0x70] ss:$24 sps:$4 sm:$0xff]  }
  0x50   :  { %731 = vmatprep.subr.bf16.mxu0 %v2616_v59  ;;  %715 = vmatmul.mubr.bf16.vlgmr.msra.gmra.mxu1 %v3593_v60  ;;  %3603 = vst [vmem:[#allocation47_spill] sm:$0xff] %v2638_v2  ;;  %v2645_v59 = vld [vmem:[%s3451_s1 + $0x44] ss:$24 sps:$4 sm:$0xff]  }
  0x51   :  { %838 = vmatpush1.bf16.msra.mxu1 %v2187_v1  ;;  %3604 = vst [vmem:[#allocation48_spill] sm:$0xff] %v2645_v59 }
  0x52   :  { %839 = vmatprep.subr.bf16.mxu1 %v2195_v3 }
  0x53   :  { %732 = vmatpush1.bf16.msra.mxu0 %v2623_v62  ;;  %v2652_v62 = vld [vmem:[%s3451_s1 + $0x40] ss:$24 sps:$4 sm:$0xff]  }
  0x54   :  { %733 = vmatprep.subr.bf16.mxu0 %v2630_v63  ;;  %3605 = vst [vmem:[#allocation49_spill] sm:$0xff] %v2652_v62  ;;  %v2659_v63 = vld [vmem:[%s3451_s1 + $0x14] ss:$24 sps:$4 sm:$0xff]  }
  0x55   :  { %840 = vmatpush1.bf16.msra.mxu1 %v2201_v4  ;;  %3606 = vst [vmem:[#allocation50_spill] sm:$0xff] %v2659_v63 }
  0x56   :  { %841 = vmatprep.subr.bf16.mxu1 %v2207_v5 }
  0x57   :  { %734 = vmatpush1.bf16.msra.mxu0 %v2638_v2  ;;  %v2666_v2 = vld [vmem:[%s3451_s1 + $0x10] ss:$24 sps:$4 sm:$0xff]  }
  0x58   :  { %735 = vmatprep.subr.bf16.mxu0 %v2645_v59  ;;  %3607 = vst [vmem:[#allocation51_spill] sm:$0xff] %v2666_v2  ;;  %v2673_v59 = vld [vmem:[%s3451_s1 + $0x2e4] ss:$24 sps:$4 sm:$0xff]  }
  0x59   :  { %842 = vmatpush1.bf16.msra.mxu1 %v2213_v6  ;;  %3608 = vst [vmem:[#allocation52_spill] sm:$0xff] %v2673_v59 }
  0x5a   :  { %843 = vmatprep.subr.bf16.mxu1 %v2219_v7 }
  0x5b   :  { %736 = vmatpush1.bf16.msra.mxu0 %v2652_v62  ;;  %v2680_v62 = vld [vmem:[%s3451_s1 + $0x2e0] ss:$24 sps:$4 sm:$0xff]  }
  0x5c   :  { %737 = vmatprep.subr.bf16.mxu0 %v2659_v63  ;;  %3609 = vst [vmem:[#allocation53_spill] sm:$0xff] %v2680_v62  ;;  %v2687_v63 = vld [vmem:[%s3451_s1 + $0x2b4] ss:$24 sps:$4 sm:$0xff]  }
  0x5d   :  { %844 = vmatpush1.bf16.msra.mxu1 %v2225_v8  ;;  %3610 = vst [vmem:[#allocation54_spill] sm:$0xff] %v2687_v63 }
  0x5e   :  { %845 = vmatprep.subr.bf16.mxu1 %v2231_v9 }
  0x5f   :  { %738 = vmatpush1.bf16.msra.mxu0 %v2666_v2  ;;  %v2694_v2 = vld [vmem:[%s3451_s1 + $0x2b0] ss:$24 sps:$4 sm:$0xff]  }
  0x60   :  { %739 = vmatprep.subr.bf16.mxu0 %v2673_v59  ;;  %3611 = vst [vmem:[#allocation55_spill] sm:$0xff] %v2694_v2  ;;  %v2701_v59 = vld [vmem:[%s3451_s1 + $0x284] ss:$24 sps:$4 sm:$0xff]  }
  0x61   :  { %846 = vmatpush1.bf16.msra.mxu1 %v2237_v10  ;;  %3612 = vst [vmem:[#allocation56_spill] sm:$0xff] %v2701_v59 }
  0x62   :  { %847 = vmatprep.subr.bf16.mxu1 %v2253_v13 }
  0x63   :  { %740 = vmatpush2.bf16.msra.mxu0 %v2680_v62  ;;  %v2708_v62 = vld [vmem:[%s3451_s1 + $0x280] ss:$24 sps:$4 sm:$0xff]  }
  0x64   :  { %741 = vmatprep.subr.bf16.mxu0 %v2687_v63  ;;  %3613 = vst [vmem:[#allocation57_spill] sm:$0xff] %v2708_v62  ;;  %v2715_v63 = vld [vmem:[%s3451_s1 + $0x254] ss:$24 sps:$4 sm:$0xff]  }
  0x65   :  { %848 = vmatpush1.bf16.msra.mxu1 %v2271_v16  ;;  %3614 = vst [vmem:[#allocation58_spill] sm:$0xff] %v2715_v63 }
  0x66   :  { %849 = vmatprep.subr.bf16.mxu1 %v2278_v17 }
  0x67   :  { %742 = vmatpush2.bf16.msra.mxu0 %v2694_v2  ;;  %v2722_v2 = vld [vmem:[%s3451_s1 + $0x250] ss:$24 sps:$4 sm:$0xff]  }
  0x68   :  { %743 = vmatprep.subr.bf16.mxu0 %v2701_v59  ;;  %3615 = vst [vmem:[#allocation59_spill] sm:$0xff] %v2722_v2  ;;  %v2729_v59 = vld [vmem:[%s3451_s1 + $0x224] ss:$24 sps:$4 sm:$0xff]  }
  0x69   :  { %850 = vmatpush1.bf16.msra.mxu1 %v2295_v20  ;;  %3616 = vst [vmem:[#allocation60_spill] sm:$0xff] %v2729_v59 }
  0x6a   :  { %851 = vmatprep.subr.bf16.mxu1 %v2307_v22 }
  0x6b   :  { %744 = vmatpush2.bf16.msra.mxu0 %v2708_v62  ;;  %v2736_v62 = vld [vmem:[%s3451_s1 + $0x220] ss:$24 sps:$4 sm:$0xff]  }
  0x6c   :  { %745 = vmatprep.subr.bf16.mxu0 %v2715_v63  ;;  %3617 = vst [vmem:[#allocation61_spill] sm:$0xff] %v2736_v62  ;;  %v2743_v63 = vld [vmem:[%s3451_s1 + $0x1f4] ss:$24 sps:$4 sm:$0xff]  }
  0x6d   :  { %852 = vmatpush1.bf16.msra.mxu1 %v2312_v23  ;;  %3618 = vst [vmem:[#allocation62_spill] sm:$0xff] %v2743_v63 }
  0x6e   :  { %853 = vmatprep.subr.bf16.mxu1 %v2331_v26 }
  0x6f   :  { %746 = vmatpush2.bf16.msra.mxu0 %v2722_v2  ;;  %v2750_v2 = vld [vmem:[%s3451_s1 + $0x1f0] ss:$24 sps:$4 sm:$0xff]  }
  0x70   :  { %747 = vmatprep.subr.bf16.mxu0 %v2729_v59  ;;  %3619 = vst [vmem:[#allocation63_spill] sm:$0xff] %v2750_v2  ;;  %v2757_v59 = vld [vmem:[%s3451_s1 + $0x1c4] ss:$24 sps:$4 sm:$0xff]  }
  0x71   :  { %854 = vmatpush2.bf16.msra.mxu1 %v2343_v28 }
  0x72   :  { %855 = vmatprep.subr.bf16.mxu1 %v2355_v30 }
  0x73   :  { %748 = vmatpush2.bf16.msra.mxu0 %v2736_v62  ;;  %v2764_v62 = vld [vmem:[%s3451_s1 + $0x1c0] ss:$24 sps:$4 sm:$0xff]  }
  0x74   :  { %749 = vmatprep.subr.bf16.mxu0 %v2743_v63  ;;  %v2771_v63 = vld [vmem:[%s3451_s1 + $0x194] ss:$24 sps:$4 sm:$0xff]  }
  0x75   :  { %856 = vmatpush2.bf16.msra.mxu1 %v2360_v31 }
  0x76   :  { %857 = vmatprep.subr.bf16.mxu1 %v2379_v34 }
  0x77   :  { %750 = vmatpush2.bf16.msra.mxu0 %v2750_v2  ;;  %v2778_v2 = vld [vmem:[%s3451_s1 + $0x190] ss:$24 sps:$4 sm:$0xff]  }
  0x78   :  { %751 = vmatprep.subr.bf16.mxu0 %v2757_v59  ;;  %3620 = vst [vmem:[#allocation64_spill] sm:$0xff] %v2778_v2 }
  0x79   :  { %858 = vmatpush2.bf16.msra.mxu1 %v2391_v36 }
  0x7a   :  { %859 = vmatprep.subr.bf16.mxu1 %v2403_v38 }
  0x7b   :  { %752 = vmatpush2.bf16.msra.mxu0 %v2764_v62 }
  0x7c   :  { %753 = vmatprep.subr.bf16.mxu0 %v2771_v63 }
  0x7d   :  { %860 = vmatpush2.bf16.msra.mxu1 %v2408_v39 }
  0x7e   :  { %861 = vmatprep.subr.bf16.mxu1 %v2427_v42 }
  0x7f   :  { %754 = vmatpush2.bf16.msra.mxu0 %v2778_v2 }
  0x80   :  { %878 = vmatprep.subr.bf16.mxu0 %v2242_v11 }
  0x81   :  { %862 = vmatpush2.bf16.msra.mxu1 %v2439_v44 }
  0x82   :  { %756 = vmatmul.mubr.bf16.vlgmr.msra.gmra.mxu0 %v3593_v60  ;;  %863 = vmatprep.subr.bf16.mxu1 %v2451_v46  ;;  %v3621_v60 = vld [vmem:[#allocation26_spill] sm:$0xff] }
  0x83   :  { %879 = vmatpush1.bf16.msra.mxu0 %v2247_v12 }
  0x84   :  { %880 = vmatprep.subr.bf16.mxu0 %v2259_v14 }
  0x85   :  { %864 = vmatpush2.bf16.msra.mxu1 %v2456_v47 }
  0x86   :  { %865 = vmatprep.subr.bf16.mxu1 %v2475_v50 }
  0x87   :  { %881 = vmatpush1.bf16.msra.mxu0 %v2265_v15 }
  0x88   :  { %882 = vmatprep.subr.bf16.mxu0 %v2283_v18 }
  0x89   :  { %866 = vmatpush2.bf16.msra.mxu1 %v2487_v52 }
  0x8a   :  { %867 = vmatprep.subr.bf16.mxu1 %v2499_v54 }
  0x8b   :  { %883 = vmatpush1.bf16.msra.mxu0 %v2289_v19 }
  0x8c   :  { %884 = vmatprep.subr.bf16.mxu0 %v2301_v21 }
  0x8d   :  { %868 = vmatpush2.bf16.msra.mxu1 %v2511_v56 }
  0x8e   :  { %919 = vmatprep.subr.bf16.mxu1 %v2523_v58 }
  0x8f   :  { %885 = vmatpush1.bf16.msra.mxu0 %v2318_v24 }
  0x90   :  { %886 = vmatprep.subr.bf16.mxu0 %v2325_v25 }
  0x93   :  { %887 = vmatpush1.bf16.msra.mxu0 %v2337_v27 }
  0x94   :  { %888 = vmatprep.subr.bf16.mxu0 %v2349_v29 }
  0x97   :  { %889 = vmatpush1.bf16.msra.mxu0 %v2366_v32 }
  0x98   :  { %890 = vmatprep.subr.bf16.mxu0 %v2373_v33 }
  0x9b   :  { %891 = vmatpush1.bf16.msra.mxu0 %v2385_v35  ;;  %v3622_v35 = vld [vmem:[#allocation28_spill] sm:$0xff] }
  0x9c   :  { %892 = vmatprep.subr.bf16.mxu0 %v2397_v37  ;;  %v3623_v37 = vld [vmem:[#allocation30_spill] sm:$0xff] }
  0x9f   :  { %893 = vmatpush1.bf16.msra.mxu0 %v2414_v40  ;;  %v3624_v40 = vld [vmem:[#allocation32_spill] sm:$0xff] }
  0xa0   :  { %894 = vmatprep.subr.bf16.mxu0 %v2421_v41  ;;  %v3625_v41 = vld [vmem:[#allocation34_spill] sm:$0xff] }
  0xa3   :  { %895 = vmatpush2.bf16.msra.mxu0 %v2433_v43  ;;  %v3626_v43 = vld [vmem:[#allocation36_spill] sm:$0xff] }
  0xa4   :  { %896 = vmatprep.subr.bf16.mxu0 %v2445_v45 }
  0xa7   :  { %897 = vmatpush2.bf16.msra.mxu0 %v2462_v48 }
  0xa8   :  { %898 = vmatprep.subr.bf16.mxu0 %v2469_v49 }
  0xab   :  { %899 = vmatpush2.bf16.msra.mxu0 %v2481_v51  ;;  %v131_v51 = vlaneseq }
  0xac   :  { %900 = vmatprep.subr.bf16.mxu0 %v2493_v53 }
  0xaf   :  { %901 = vmatpush2.bf16.msra.mxu0 %v3621_v60 }
  0xb0   :  { %902 = vmatprep.subr.bf16.mxu0 %v3622_v35 }
  0xb3   :  { %903 = vmatpush2.bf16.msra.mxu0 %v3623_v37  ;;  %v132_v37 = vshrl.u32 %v131_v51, 7 }
  0xb4   :  { %904 = vmatprep.subr.bf16.mxu0 %v3624_v40 }
  0xb5   :  { %v133_v48 = vsub.s32 0, %v132_v37  ;;  %v137_v40 = vsub.s32 1, %v132_v37  ;;  %v141_v25 = vsub.s32 2, %v132_v37  ;;  %v145_v24 = vsub.s32 3, %v132_v37 }
  0xb7   :  { %905 = vmatpush2.bf16.msra.mxu0 %v3625_v41 }
  0xb8   :  { %906 = vmatprep.subr.bf16.mxu0 %v3626_v43  ;;  %v129_v43 = vld [vmem:[%s3452_s2] sm:$0x3f] }
  0xb9   :  { %v2830_v41 = vrot.slane %v129_v43, %v133_v48  ;;  %v2832_v45 = vrot.slane %v129_v43, %v137_v40  ;;  %v31_v40 = vld [vmem:[%s3450_s0] sm:$0xff]  ;;  %v2844_v21 = vrot.slane %v129_v43, %v145_v24  ;;  %v153_v24 = vsub.s32 5, %v132_v37 }
  0xbb   :  { %907 = vmatpush2.bf16.msra.mxu0 %v2579_v61  ;;  %3627 = vst [vmem:[#allocation65_spill] sm:$0xff] %v2830_v41  ;;  %v2131_v61 = vmov 1983009808   ;;  %3628 = vst [vmem:[#allocation66_spill] sm:$0xff] %v2832_v45 }
  0xbc   :  { %908 = vmatprep.subr.bf16.mxu0 %v2591_v55  ;;  %v768_v55 = vunpack.c.l.s4 %v2131_v61  ;;  %v2842_v61 = vrot.slane %v129_v43, %v141_v25  ;;  %v149_v25 = vsub.s32 4, %v132_v37 }
  0xbe   :  { %v769_v32 = vunpack.c.0.s8 %v768_v55  ;;  %v2849_v19 = vrot.slane %v129_v43, %v149_v25 }
  0xbf   :  { %909 = vmatpush2.bf16.msra.mxu0 %v2603_v57 }
  0xc0   :  { %1033 = vmatprep.subr.bf16.mxu0 %v2182_v0  ;;  %v2836_v29 = vsub.s32 %v769_v32, %v132_v37  ;;  %v32_v37 = vld [vmem:[%s3450_s0 + $0x8] sm:$0xf] }
 0x102   :  { %v675_v53 = vpop.f32.mrf.mxu0 }
 0x103   :  { %v676_v33 = vadd.f32 %v675_v53, %v2830_v41 }
 0x104   :  { %v677_v60 = vpop.f32.mrf.mxu0 }
 0x106   :  { %v679_v35 = vpop.f32.mrf.mxu0 }
 0x107   :  { %v678_v35 = vadd.f32 %v677_v60, %v2832_v45 }
 0x108   :  { %v680_v49 = vpop.f32.mrf.mxu0 }
 0x109   :  { %v766_v27 = vcombine.low %v676_v33, %v678_v35  ;;  %v783_v33 = vrot.slane %v31_v40, 4 }
 0x10b   :  { %v773_v48 = vrot.slane %v766_v27, %v2836_v29 }
 0x10d   :  { %v775_v53 = vadd.f32 %v773_v48, %v31_v40  ;;  %v2851_v48 = vrot.slane %v129_v43, %v153_v24 }
 0x10f   :  { %v1765_v32 = vmul.f32 -1.442695, %v775_v53 }
 0x110   :  { %v716_v57 = vpop.f32.mrf.mxu1 }
 0x111   :  { %v717_v55 = vadd.f32 %v716_v57, %v2842_v61  ;;  %1999 = vpow2.f32 %v1765_v32 }
 0x112   :  { %v718_v0 = vpop.f32.mrf.mxu1 }
 0x113   :  { %v719_v60 = vadd.f32 %v718_v0, %v2844_v21 }
 0x114   :  { %v720_v49 = vpop.f32.mrf.mxu1 }
 0x115   :  { %v787_v49 = vcombine.low %v717_v55, %v719_v60 }
 0x116   :  { %v721_v51 = vpop.f32.mrf.mxu1 }
 0x117   :  { %v794_v35 = vrot.slane %v787_v49, %v2836_v29 }
 0x119   :  { %v796_v27 = vadd.f32 %v794_v35, %v783_v33 }
 0x11b   :  { %v1766_v51 = vmul.f32 -1.442695, %v796_v27 }
 0x11d   :  { %2001 = vpow2.f32 %v1766_v51 }
 0x11e   :  { %v2000_v41 = vpop.eup %1999 }
 0x11f   :  { %v779_v45 = vadd.f32 1.0, %v2000_v41 }
 0x121   :  { %2003 = vrcp.f32 %v779_v45 }
 0x12a   :  { %v2002_v0 = vpop.eup %2001 }
 0x12b   :  { %v800_v32 = vadd.f32 1.0, %v2002_v0 }
 0x12d   :  { %2005 = vrcp.f32 %v800_v32  ;;  %v3629_v32 = vld [vmem:[#allocation31_spill] sm:$0xff] }
 0x12e   :  { %v2004_v45 = vpop.eup %2003 }
 0x13a   :  { %v2006_v27 = vpop.eup %2005 }
 0x13b   :  { %v817_v51 = vsub.f32 1.0, %v2006_v27 }
 0x142   :  { %v757_v57 = vpop.f32.mrf.mxu0 }
 0x143   :  { %v758_v55 = vadd.f32 %v757_v57, %v2849_v19  ;;  %v819_v57 = vmul.f32 0.0, %v2006_v27  ;;  %v3657_v27 = vld [vmem:[#allocation9_spill] sm:$0xff] }
 0x144   :  { %v759_v53 = vpop.f32.mrf.mxu0 }
 0x145   :  { %v760_v40 = vadd.f32 %v759_v53, %v2851_v48 }
 0x146   :  { %v761_v60 = vpop.f32.mrf.mxu0 }
 0x147   :  { %v805_v49 = vcombine.low %v758_v55, %v760_v40 }
 0x148   :  { %v762_v33 = vpop.f32.mrf.mxu0 }
 0x149   :  { %v812_v41 = vrot.slane %v805_v49, %v2836_v29  ;;  %v3630_v49 = vld [vmem:[#allocation33_spill] sm:$0xff]  ;;  %v3631_v33 = vld [vmem:[#allocation35_spill] sm:$0xff] }
 0x14b   :  { %v814_v43 = vmul.f32 %v2004_v45, %v812_v41  ;;  %v3632_v41 = vld [vmem:[#allocation37_spill] sm:$0xff]  ;;  %v3633_v45 = vld [vmem:[#allocation39_spill] sm:$0xff] }
 0x14d   :  { %v815_v35 = vadd.f32 %v814_v43, %v32_v37  ;;  %v3634_v37 = vld [vmem:[#allocation41_spill] sm:$0xff]  ;;  %v3635_v43 = vld [vmem:[#allocation43_spill] sm:$0xff] }
 0x14f   :  { %2007 = vtanh.f32 %v815_v35  ;;  %v3656_v35 = vld [vmem:[#allocation8_spill] sm:$0xff] }
 0x15c   :  { %v2008_v25 = vpop.eup %2007 }
 0x15d   :  { %v818_v24 = vmul.f32 %v2008_v25, %v817_v51  ;;  %v3658_v51 = vld [vmem:[#allocation10_spill] sm:$0xff]  ;;  %v3660_v25 = vld [vmem:[#allocation12_spill] sm:$0xff] }
 0x15f   :  { %v2859_v53 = vadd.f32 %v819_v57, %v818_v24  ;;  %v3661_v24 = vld [vmem:[#allocation13_spill] sm:$0xff]  ;;  %v3662_v57 = vld [vmem:[#allocation14_spill] sm:$0xff] }
 0x161   :  { %v831_v0 = vrot.slane %v2859_v53, %v2836_v29 }
 0x163   :  { %v832_v55 = vcombine.high %v831_v0, %v831_v0  ;;  %v2863_v60 = vpack.c.bf16 %v831_v0, %v831_v0  ;;  %v3667_v0 = vld [vmem:[#allocation19_spill] sm:$0xff] }
 0x165   :  { %v836_v40 = vpack.c.bf16 %v832_v55, %v832_v55  ;;  %v3668_v55 = vld [vmem:[#allocation20_spill] sm:$0xff] }
 0x167   :  { %869 = vmatprep.mubr.bf16.mxu1 %v836_v40  ;;  %910 = vmatprep.mubr.bf16.mxu0 %v836_v40 }
 0x168   :  { %870 = vmatmul.mubr.bf16.vlgmr.msra.gmra.mxu1 %v2863_v60  ;;  %911 = vmatmul.mubr.bf16.vlgmr.msra.gmra.mxu0 %v2863_v60 }
 0x169   :  { %920 = vmatpush1.bf16.msra.mxu1 %v3629_v32  ;;  %951 = vmatprep.mubr.bf16.mxu1 %v836_v40  ;;  %v3669_v40 = vld [vmem:[#allocation21_spill] sm:$0xff] }
 0x16a   :  { %921 = vmatprep.subr.bf16.mxu1 %v3630_v49  ;;  %1034 = vmatpush1.bf16.msra.mxu0 %v2187_v1  ;;  %v3636_v1 = vld [vmem:[#allocation44_spill] sm:$0xff] }
 0x16b   :  { %1035 = vmatprep.subr.bf16.mxu0 %v2195_v3  ;;  %v3637_v3 = vld [vmem:[#allocation45_spill] sm:$0xff] }
 0x16d   :  { %922 = vmatpush1.bf16.msra.mxu1 %v3631_v33 }
 0x16e   :  { %923 = vmatprep.subr.bf16.mxu1 %v3632_v41  ;;  %1036 = vmatpush1.bf16.msra.mxu0 %v2201_v4  ;;  %v3638_v4 = vld [vmem:[#allocation46_spill] sm:$0xff] }
 0x16f   :  { %1037 = vmatprep.subr.bf16.mxu0 %v2207_v5  ;;  %v3639_v5 = vld [vmem:[#allocation47_spill] sm:$0xff] }
 0x171   :  { %924 = vmatpush1.bf16.msra.mxu1 %v3633_v45 }
 0x172   :  { %925 = vmatprep.subr.bf16.mxu1 %v3634_v37  ;;  %1038 = vmatpush1.bf16.msra.mxu0 %v2213_v6  ;;  %v3640_v6 = vld [vmem:[#allocation48_spill] sm:$0xff] }
 0x173   :  { %1039 = vmatprep.subr.bf16.mxu0 %v2219_v7  ;;  %v3641_v7 = vld [vmem:[#allocation49_spill] sm:$0xff] }
 0x175   :  { %926 = vmatpush1.bf16.msra.mxu1 %v3635_v43 }
 0x176   :  { %927 = vmatprep.subr.bf16.mxu1 %v3636_v1  ;;  %1040 = vmatpush1.bf16.msra.mxu0 %v2225_v8  ;;  %v3642_v8 = vld [vmem:[#allocation50_spill] sm:$0xff] }
 0x177   :  { %1041 = vmatprep.subr.bf16.mxu0 %v2231_v9  ;;  %v3643_v9 = vld [vmem:[#allocation51_spill] sm:$0xff] }
 0x179   :  { %928 = vmatpush1.bf16.msra.mxu1 %v3637_v3 }
 0x17a   :  { %929 = vmatprep.subr.bf16.mxu1 %v3638_v4  ;;  %1042 = vmatpush1.bf16.msra.mxu0 %v2237_v10  ;;  %v3644_v10 = vld [vmem:[#allocation52_spill] sm:$0xff] }
 0x17b   :  { %1043 = vmatprep.subr.bf16.mxu0 %v2253_v13  ;;  %v3645_v13 = vld [vmem:[#allocation53_spill] sm:$0xff] }
 0x17d   :  { %930 = vmatpush1.bf16.msra.mxu1 %v3639_v5 }
 0x17e   :  { %931 = vmatprep.subr.bf16.mxu1 %v3640_v6  ;;  %1044 = vmatpush1.bf16.msra.mxu0 %v2271_v16  ;;  %v3646_v16 = vld [vmem:[#allocation54_spill] sm:$0xff] }
 0x17f   :  { %1045 = vmatprep.subr.bf16.mxu0 %v2278_v17  ;;  %v3647_v17 = vld [vmem:[#allocation55_spill] sm:$0xff] }
 0x181   :  { %932 = vmatpush1.bf16.msra.mxu1 %v3641_v7 }
 0x182   :  { %933 = vmatprep.subr.bf16.mxu1 %v3642_v8  ;;  %1046 = vmatpush1.bf16.msra.mxu0 %v2295_v20  ;;  %v3648_v20 = vld [vmem:[#allocation56_spill] sm:$0xff] }
 0x183   :  { %1047 = vmatprep.subr.bf16.mxu0 %v2307_v22  ;;  %v3649_v22 = vld [vmem:[#allocation57_spill] sm:$0xff] }
 0x185   :  { %934 = vmatpush1.bf16.msra.mxu1 %v3643_v9 }
 0x186   :  { %935 = vmatprep.subr.bf16.mxu1 %v3644_v10  ;;  %1048 = vmatpush1.bf16.msra.mxu0 %v2312_v23  ;;  %v3650_v23 = vld [vmem:[#allocation58_spill] sm:$0xff] }
 0x187   :  { %1049 = vmatprep.subr.bf16.mxu0 %v2331_v26  ;;  %v3651_v26 = vld [vmem:[#allocation59_spill] sm:$0xff] }
 0x189   :  { %936 = vmatpush2.bf16.msra.mxu1 %v3645_v13 }
 0x18a   :  { %937 = vmatprep.subr.bf16.mxu1 %v3646_v16  ;;  %1050 = vmatpush2.bf16.msra.mxu0 %v2343_v28  ;;  %v3652_v28 = vld [vmem:[#allocation60_spill] sm:$0xff] }
 0x18b   :  { %1051 = vmatprep.subr.bf16.mxu0 %v2355_v30  ;;  %v3653_v30 = vld [vmem:[#allocation61_spill] sm:$0xff] }
 0x18d   :  { %938 = vmatpush2.bf16.msra.mxu1 %v3647_v17 }
 0x18e   :  { %939 = vmatprep.subr.bf16.mxu1 %v3648_v20  ;;  %1052 = vmatpush2.bf16.msra.mxu0 %v2360_v31  ;;  %v3654_v31 = vld [vmem:[#allocation62_spill] sm:$0xff] }
 0x18f   :  { %1053 = vmatprep.subr.bf16.mxu0 %v2379_v34  ;;  %v3655_v34 = vld [vmem:[#allocation63_spill] sm:$0xff] }
 0x191   :  { %940 = vmatpush2.bf16.msra.mxu1 %v3649_v22 }
 0x192   :  { %941 = vmatprep.subr.bf16.mxu1 %v3650_v23  ;;  %1054 = vmatpush2.bf16.msra.mxu0 %v2391_v36 }
 0x193   :  { %1055 = vmatprep.subr.bf16.mxu0 %v2403_v38 }
 0x195   :  { %942 = vmatpush2.bf16.msra.mxu1 %v3651_v26 }
 0x196   :  { %943 = vmatprep.subr.bf16.mxu1 %v3652_v28  ;;  %1056 = vmatpush2.bf16.msra.mxu0 %v2408_v39 }
 0x197   :  { %1057 = vmatprep.subr.bf16.mxu0 %v2427_v42 }
 0x199   :  { %944 = vmatpush2.bf16.msra.mxu1 %v3653_v30 }
 0x19a   :  { %945 = vmatprep.subr.bf16.mxu1 %v3654_v31  ;;  %1058 = vmatpush2.bf16.msra.mxu0 %v2439_v44 }
 0x19b   :  { %1059 = vmatprep.subr.bf16.mxu0 %v2451_v46 }
 0x19d   :  { %946 = vmatpush2.bf16.msra.mxu1 %v3655_v34 }
 0x19e   :  { %947 = vmatprep.subr.bf16.mxu1 %v2757_v59  ;;  %1060 = vmatpush2.bf16.msra.mxu0 %v2456_v47 }
 0x19f   :  { %1061 = vmatprep.subr.bf16.mxu0 %v2475_v50 }
 0x1a1   :  { %948 = vmatpush2.bf16.msra.mxu1 %v2764_v62 }
 0x1a2   :  { %949 = vmatprep.subr.bf16.mxu1 %v2771_v63  ;;  %1062 = vmatpush2.bf16.msra.mxu0 %v2487_v52 }
 0x1a3   :  { %1063 = vmatprep.subr.bf16.mxu0 %v2499_v54 }
 0x1a5   :  { %950 = vmatpush2.bf16.msra.mxu1 %v2778_v2 }
 0x1a6   :  { %1074 = vmatprep.subr.bf16.mxu1 %v2242_v11  ;;  %1064 = vmatpush2.bf16.msra.mxu0 %v2511_v56  ;;  %v3659_v11 = vld [vmem:[#allocation11_spill] sm:$0xff] }
 0x1a7   :  { %1115 = vmatprep.subr.bf16.mxu0 %v2523_v58  ;;  %v1767_v58 = vld [vmem:[%s3450_s0 + $0xc] sm:$0xff] }
 0x1a8   :  { %952 = vmatmul.mubr.bf16.vlgmr.msra.gmra.mxu1 %v2863_v60  ;;  %v3670_v60 = vld [vmem:[#allocation22_spill] sm:$0xff] }
 0x1a9   :  { %1075 = vmatpush1.bf16.msra.mxu1 %v2247_v12  ;;  %v3663_v12 = vld [vmem:[#allocation15_spill] sm:$0xff] }
 0x1aa   :  { %1076 = vmatprep.subr.bf16.mxu1 %v2259_v14  ;;  %v3664_v14 = vld [vmem:[#allocation16_spill] sm:$0xff] }
 0x1ad   :  { %1077 = vmatpush1.bf16.msra.mxu1 %v2265_v15  ;;  %v3665_v15 = vld [vmem:[#allocation17_spill] sm:$0xff] }
 0x1ae   :  { %1078 = vmatprep.subr.bf16.mxu1 %v2283_v18  ;;  %v3666_v18 = vld [vmem:[#allocation18_spill] sm:$0xff] }
 0x1b1   :  { %1079 = vmatpush1.bf16.msra.mxu1 %v3656_v35  ;;  %v3671_v35 = vld [vmem:[#allocation23_spill] sm:$0xff] }
 0x1b2   :  { %1080 = vmatprep.subr.bf16.mxu1 %v3657_v27  ;;  %v3672_v27 = vld [vmem:[#allocation24_spill] sm:$0xff] }
 0x1b5   :  { %1081 = vmatpush1.bf16.msra.mxu1 %v3658_v51  ;;  %v3673_v51 = vld [vmem:[#allocation25_spill] sm:$0xff] }
 0x1b6   :  { %1082 = vmatprep.subr.bf16.mxu1 %v3659_v11  ;;  %v3674_v11 = vld [vmem:[#allocation26_spill] sm:$0xff] }
 0x1b9   :  { %1083 = vmatpush1.bf16.msra.mxu1 %v3660_v25  ;;  %v3675_v25 = vld [vmem:[#allocation28_spill] sm:$0xff] }
 0x1ba   :  { %1084 = vmatprep.subr.bf16.mxu1 %v3661_v24  ;;  %v3676_v24 = vld [vmem:[#allocation30_spill] sm:$0xff] }
 0x1bd   :  { %1085 = vmatpush1.bf16.msra.mxu1 %v3662_v57  ;;  %v3677_v57 = vld [vmem:[#allocation32_spill] sm:$0xff] }
 0x1be   :  { %1086 = vmatprep.subr.bf16.mxu1 %v3663_v12  ;;  %v3678_v12 = vld [vmem:[#allocation34_spill] sm:$0xff] }
 0x1c1   :  { %1087 = vmatpush1.bf16.msra.mxu1 %v3664_v14  ;;  %v3679_v14 = vld [vmem:[#allocation36_spill] sm:$0xff] }
 0x1c2   :  { %1088 = vmatprep.subr.bf16.mxu1 %v3665_v15  ;;  %v3680_v15 = vld [vmem:[#allocation38_spill] sm:$0xff] }
 0x1c5   :  { %1089 = vmatpush1.bf16.msra.mxu1 %v3666_v18  ;;  %v3681_v18 = vld [vmem:[#allocation40_spill] sm:$0xff] }
 0x1c6   :  { %1090 = vmatprep.subr.bf16.mxu1 %v3667_v0  ;;  %v3682_v0 = vld [vmem:[#allocation42_spill] sm:$0xff] }
 0x1c9   :  { %1091 = vmatpush2.bf16.msra.mxu1 %v3668_v55  ;;  %v2039_v55 = vld [vmem:[%s3451_s1 + $0x154] ss:$24 sps:$4 sm:$0xff]  }
 0x1ca   :  { %1092 = vmatprep.subr.bf16.mxu1 %v3669_v40 }
 0x1cd   :  { %1093 = vmatpush2.bf16.msra.mxu1 %v3670_v60 }
 0x1ce   :  { %1094 = vmatprep.subr.bf16.mxu1 %v3671_v35 }
 0x1d1   :  { %1095 = vmatpush2.bf16.msra.mxu1 %v3672_v27 }
 0x1d2   :  { %1096 = vmatprep.subr.bf16.mxu1 %v3673_v51 }
 0x1d5   :  { %1097 = vmatpush2.bf16.msra.mxu1 %v3674_v11 }
 0x1d6   :  { %1098 = vmatprep.subr.bf16.mxu1 %v3675_v25 }
 0x1d9   :  { %1099 = vmatpush2.bf16.msra.mxu1 %v3676_v24 }
 0x1da   :  { %1100 = vmatprep.subr.bf16.mxu1 %v3677_v57 }
 0x1dd   :  { %1101 = vmatpush2.bf16.msra.mxu1 %v3678_v12 }
 0x1de   :  { %1102 = vmatprep.subr.bf16.mxu1 %v3679_v14  ;;  %v3683_v14 = vld [vmem:[#allocation66_spill] sm:$0xff] }
 0x1e1   :  { %1103 = vmatpush2.bf16.msra.mxu1 %v3680_v15  ;;  %v3684_v15 = vld [vmem:[#allocation65_spill] sm:$0xff] }
 0x1e2   :  { %1104 = vmatprep.subr.bf16.mxu1 %v3681_v18 }
 0x1e5   :  { %1105 = vmatpush2.bf16.msra.mxu1 %v3682_v0 }
 0x1e6   :  { %1229 = vmatprep.subr.bf16.mxu1 %v2039_v55 }
 0x228   :  { %v871_v40 = vpop.f32.mrf.mxu1  ;;  %v912_v25 = vpop.f32.mrf.mxu0 }
 0x229   :  { %v872_v60 = vadd.f32 %v871_v40, %v3684_v15  ;;  %v913_v2 = vadd.f32 %v912_v25, %v2842_v61 }
 0x22a   :  { %v873_v24 = vpop.f32.mrf.mxu1  ;;  %v914_v11 = vpop.f32.mrf.mxu0 }
 0x22b   :  { %v874_v35 = vadd.f32 %v873_v24, %v3683_v14  ;;  %v915_v56 = vadd.f32 %v914_v11, %v2844_v21 }
 0x22c   :  { %v875_v57 = vpop.f32.mrf.mxu1  ;;  %v916_v51 = vpop.f32.mrf.mxu0 }
 0x22d   :  { %v962_v18 = vcombine.low %v872_v60, %v874_v35  ;;  %v983_v51 = vcombine.low %v913_v2, %v915_v56 }
 0x22e   :  { %v876_v12 = vpop.f32.mrf.mxu1  ;;  %v917_v27 = vpop.f32.mrf.mxu0 }
 0x22f   :  { %v969_v0 = vrot.slane %v962_v18, %v2836_v29  ;;  %v979_v27 = vrot.slane %v1767_v58, 4  ;;  %v990_v24 = vrot.slane %v983_v51, %v2836_v29  ;;  %v1768_v51 = vld [vmem:[%s3450_s0 + $0x14] sm:$0xf] }
 0x231   :  { %v971_v55 = vadd.f32 %v1767_v58, %v969_v0  ;;  %v992_v12 = vadd.f32 %v990_v24, %v979_v27 }
 0x233   :  { %v1769_v57 = vmul.f32 -1.442695, %v971_v55  ;;  %v1770_v40 = vmul.f32 -1.442695, %v992_v12 }
 0x235   :  { %2009 = vpow2.f32 %v1769_v57 }
 0x236   :  { %2011 = vpow2.f32 %v1770_v40 }
 0x242   :  { %v2010_v60 = vpop.eup %2009 }
 0x243   :  { %v975_v35 = vadd.f32 1.0, %v2010_v60  ;;  %v2012_v15 = vpop.eup %2011 }
 0x244   :  { %v996_v55 = vadd.f32 1.0, %v2012_v15 }
 0x245   :  { %2013 = vrcp.f32 %v975_v35 }
 0x246   :  { %2015 = vrcp.f32 %v996_v55  ;;  %v2041_v55 = vld [vmem:[%s3451_s1 + $0x124] ss:$24 sps:$4 sm:$0xff]  }
 0x252   :  { %v2014_v57 = vpop.eup %2013 }
 0x253   :  { %v2016_v12 = vpop.eup %2015 }
 0x254   :  { %v1013_v40 = vsub.f32 1.0, %v2016_v12 }
 0x268   :  { %v953_v18 = vpop.f32.mrf.mxu1 }
 0x269   :  { %v954_v0 = vadd.f32 %v953_v18, %v2849_v19 }
 0x26a   :  { %v955_v14 = vpop.f32.mrf.mxu1 }
 0x26b   :  { %v956_v11 = vadd.f32 %v955_v14, %v2851_v48  ;;  %v1015_v14 = vmul.f32 %v2016_v12, %v2859_v53  ;;  %v2040_v53 = vld [vmem:[%s3451_s1 + $0x150] ss:$24 sps:$4 sm:$0xff]  }
 0x26c   :  { %v957_v25 = vpop.f32.mrf.mxu1  ;;  %v2056_v12 = vld [vmem:[%s3451_s1 + $0x2d0] ss:$24 sps:$4 sm:$0xff]  }
 0x26d   :  { %v1001_v2 = vcombine.low %v954_v0, %v956_v11 }
 0x26e   :  { %v958_v56 = vpop.f32.mrf.mxu1 }
 0x26f   :  { %v1008_v58 = vrot.slane %v1001_v2, %v2836_v29  ;;  %v2049_v2 = vld [vmem:[%s3451_s1 + $0x64] ss:$24 sps:$4 sm:$0xff]   ;;  %v2050_v56 = vld [vmem:[%s3451_s1 + $0x60] ss:$24 sps:$4 sm:$0xff]  }
 0x271   :  { %v1010_v27 = vmul.f32 %v2014_v57, %v1008_v58  ;;  %v2051_v58 = vld [vmem:[%s3451_s1 + $0x34] ss:$24 sps:$4 sm:$0xff]   ;;  %v2052_v57 = vld [vmem:[%s3451_s1 + $0x30] ss:$24 sps:$4 sm:$0xff]  }
 0x273   :  { %v1011_v24 = vadd.f32 %v1768_v51, %v1010_v27  ;;  %v2053_v51 = vld [vmem:[%s3451_s1 + $0x4] ss:$24 sps:$4 sm:$0xff]   ;;  %v2054_v27 = vld [vmem:[%s3451_s1] ss:$24 sps:$4 sm:$0xff]  }
 0x275   :  { %2017 = vtanh.f32 %v1011_v24  ;;  %v2055_v24 = vld [vmem:[%s3451_s1 + $0x2d4] ss:$24 sps:$4 sm:$0xff]  }
 0x282   :  { %v2018_v60 = vpop.eup %2017 }
 0x283   :  { %v1014_v35 = vmul.f32 %v2018_v60, %v1013_v40  ;;  %v2057_v40 = vld [vmem:[%s3451_s1 + $0x2a4] ss:$24 sps:$4 sm:$0xff]   ;;  %v2058_v60 = vld [vmem:[%s3451_s1 + $0x2a0] ss:$24 sps:$4 sm:$0xff]  }
 0x285   :  { %v2982_v15 = vadd.f32 %v1015_v14, %v1014_v35  ;;  %v2059_v35 = vld [vmem:[%s3451_s1 + $0x274] ss:$24 sps:$4 sm:$0xff]   ;;  %v2067_v14 = vld [vmem:[%s3451_s1 + $0xc8] ss:$24 sps:$4 sm:$0xff]  }
 0x287   :  { %v1027_v18 = vrot.slane %v2982_v15, %v2836_v29 }
 0x289   :  { %v1028_v0 = vcombine.high %v1027_v18, %v1027_v18  ;;  %v2986_v25 = vpack.c.bf16 %v1027_v18, %v1027_v18  ;;  %v2068_v18 = vld [vmem:[%s3451_s1 + $0x9c] ss:$24 sps:$4 sm:$0xff]  }
 0x28b   :  { %v1032_v11 = vpack.c.bf16 %v1028_v0, %v1028_v0  ;;  %v2069_v0 = vld [vmem:[%s3451_s1 + $0x98] ss:$24 sps:$4 sm:$0xff]  }
 0x28d   :  { %1065 = vmatprep.mubr.bf16.mxu0 %v1032_v11  ;;  %1106 = vmatprep.mubr.bf16.mxu1 %v1032_v11 }
 0x28e   :  { %1066 = vmatmul.mubr.bf16.vlgmr.msra.gmra.mxu0 %v2986_v25  ;;  %1107 = vmatmul.mubr.bf16.vlgmr.msra.gmra.mxu1 %v2986_v25 }
 0x28f   :  { %1116 = vmatpush1.bf16.msra.mxu0 %v3629_v32  ;;  %1147 = vmatprep.mubr.bf16.mxu0 %v1032_v11  ;;  %v2042_v32 = vld [vmem:[%s3451_s1 + $0x120] ss:$24 sps:$4 sm:$0xff]   ;;  %v2070_v11 = vld [vmem:[%s3451_s1 + $0x6c] ss:$24 sps:$4 sm:$0xff]  }
 0x290   :  { %1117 = vmatprep.subr.bf16.mxu0 %v3630_v49  ;;  %1230 = vmatpush1.bf16.msra.mxu1 %v2040_v53  ;;  %v2043_v49 = vld [vmem:[%s3451_s1 + $0xf4] ss:$24 sps:$4 sm:$0xff]  }
 0x291   :  { %1231 = vmatprep.subr.bf16.mxu1 %v2041_v55  ;;  %v2072_v53 = vld [vmem:[%s3451_s1 + $0x3c] ss:$24 sps:$4 sm:$0xff]   ;;  %v2073_v55 = vld [vmem:[%s3451_s1 + $0x38] ss:$24 sps:$4 sm:$0xff]  }
 0x293   :  { %1118 = vmatpush1.bf16.msra.mxu0 %v3631_v33  ;;  %v2044_v33 = vld [vmem:[%s3451_s1 + $0xf0] ss:$24 sps:$4 sm:$0xff]  }
 0x294   :  { %1119 = vmatprep.subr.bf16.mxu0 %v3632_v41  ;;  %1232 = vmatpush1.bf16.msra.mxu1 %v2042_v32  ;;  %v2045_v41 = vld [vmem:[%s3451_s1 + $0xc4] ss:$24 sps:$4 sm:$0xff]  }
 0x295   :  { %1233 = vmatprep.subr.bf16.mxu1 %v2043_v49  ;;  %v2074_v32 = vld [vmem:[%s3451_s1 + $0xc] ss:$24 sps:$4 sm:$0xff]   ;;  %v2075_v49 = vld [vmem:[%s3451_s1 + $0x8] ss:$24 sps:$4 sm:$0xff]  }
 0x297   :  { %1120 = vmatpush1.bf16.msra.mxu0 %v3633_v45  ;;  %v2046_v45 = vld [vmem:[%s3451_s1 + $0xc0] ss:$24 sps:$4 sm:$0xff]  }
 0x298   :  { %1121 = vmatprep.subr.bf16.mxu0 %v3634_v37  ;;  %1234 = vmatpush1.bf16.msra.mxu1 %v2044_v33  ;;  %v2047_v37 = vld [vmem:[%s3451_s1 + $0x94] ss:$24 sps:$4 sm:$0xff]  }
 0x299   :  { %1235 = vmatprep.subr.bf16.mxu1 %v2045_v41  ;;  %v2076_v33 = vld [vmem:[%s3451_s1 + $0x2dc] ss:$24 sps:$4 sm:$0xff]   ;;  %v2077_v41 = vld [vmem:[%s3451_s1 + $0x2d8] ss:$24 sps:$4 sm:$0xff]  }
 0x29b   :  { %1122 = vmatpush1.bf16.msra.mxu0 %v3635_v43  ;;  %v2048_v43 = vld [vmem:[%s3451_s1 + $0x90] ss:$24 sps:$4 sm:$0xff]  }
 0x29c   :  { %1123 = vmatprep.subr.bf16.mxu0 %v3636_v1  ;;  %1236 = vmatpush1.bf16.msra.mxu1 %v2046_v45  ;;  %v2078_v45 = vld [vmem:[%s3451_s1 + $0x2ac] ss:$24 sps:$4 sm:$0xff]  }
 0x29d   :  { %1237 = vmatprep.subr.bf16.mxu1 %v2047_v37  ;;  %v3688_v37 = vld [vmem:[#allocation22_spill] sm:$0xff] }
 0x29f   :  { %1124 = vmatpush1.bf16.msra.mxu0 %v3637_v3 }
 0x2a0   :  { %1125 = vmatprep.subr.bf16.mxu0 %v3638_v4  ;;  %1238 = vmatpush1.bf16.msra.mxu1 %v2048_v43  ;;  %v3689_v43 = vld [vmem:[#allocation23_spill] sm:$0xff] }
 0x2a1   :  { %1239 = vmatprep.subr.bf16.mxu1 %v2049_v2  ;;  %v3690_v2 = vld [vmem:[#allocation24_spill] sm:$0xff] }
 0x2a3   :  { %1126 = vmatpush1.bf16.msra.mxu0 %v3639_v5 }
 0x2a4   :  { %1127 = vmatprep.subr.bf16.mxu0 %v3640_v6  ;;  %1240 = vmatpush1.bf16.msra.mxu1 %v2050_v56  ;;  %v3691_v56 = vld [vmem:[#allocation25_spill] sm:$0xff] }
 0x2a5   :  { %1241 = vmatprep.subr.bf16.mxu1 %v2051_v58  ;;  %v3692_v58 = vld [vmem:[#allocation26_spill] sm:$0xff] }
 0x2a7   :  { %1128 = vmatpush1.bf16.msra.mxu0 %v3641_v7 }
 0x2a8   :  { %1129 = vmatprep.subr.bf16.mxu0 %v3642_v8  ;;  %1242 = vmatpush1.bf16.msra.mxu1 %v2052_v57  ;;  %v3693_v57 = vld [vmem:[#allocation28_spill] sm:$0xff] }
 0x2a9   :  { %1243 = vmatprep.subr.bf16.mxu1 %v2053_v51  ;;  %v3694_v51 = vld [vmem:[#allocation30_spill] sm:$0xff] }
 0x2ab   :  { %1130 = vmatpush1.bf16.msra.mxu0 %v3643_v9 }
 0x2ac   :  { %1131 = vmatprep.subr.bf16.mxu0 %v3644_v10  ;;  %1244 = vmatpush1.bf16.msra.mxu1 %v2054_v27  ;;  %v3695_v27 = vld [vmem:[#allocation32_spill] sm:$0xff] }
 0x2ad   :  { %1245 = vmatprep.subr.bf16.mxu1 %v2055_v24  ;;  %v3696_v24 = vld [vmem:[#allocation34_spill] sm:$0xff] }
 0x2af   :  { %1132 = vmatpush2.bf16.msra.mxu0 %v3645_v13 }
 0x2b0   :  { %1133 = vmatprep.subr.bf16.mxu0 %v3646_v16  ;;  %1246 = vmatpush2.bf16.msra.mxu1 %v2056_v12  ;;  %v3697_v12 = vld [vmem:[#allocation36_spill] sm:$0xff] }
 0x2b1   :  { %1247 = vmatprep.subr.bf16.mxu1 %v2057_v40  ;;  %v3698_v40 = vld [vmem:[#allocation38_spill] sm:$0xff] }
 0x2b3   :  { %1134 = vmatpush2.bf16.msra.mxu0 %v3647_v17 }
 0x2b4   :  { %1135 = vmatprep.subr.bf16.mxu0 %v3648_v20  ;;  %1248 = vmatpush2.bf16.msra.mxu1 %v2058_v60  ;;  %v3699_v60 = vld [vmem:[#allocation40_spill] sm:$0xff] }
 0x2b5   :  { %1249 = vmatprep.subr.bf16.mxu1 %v2059_v35  ;;  %v3700_v35 = vld [vmem:[#allocation42_spill] sm:$0xff] }
 0x2b7   :  { %1136 = vmatpush2.bf16.msra.mxu0 %v3649_v22 }
 0x2b8   :  { %1137 = vmatprep.subr.bf16.mxu0 %v3650_v23  ;;  %1250 = vmatpush2.bf16.msra.mxu1 %v2391_v36  ;;  %v3685_v36 = vld [vmem:[#allocation64_spill] sm:$0xff] }
 0x2b9   :  { %1251 = vmatprep.subr.bf16.mxu1 %v2403_v38  ;;  %v2060_v38 = vld [vmem:[%s3451_s1 + $0x15c] ss:$24 sps:$4 sm:$0xff]  }
 0x2bb   :  { %1138 = vmatpush2.bf16.msra.mxu0 %v3651_v26 }
 0x2bc   :  { %1139 = vmatprep.subr.bf16.mxu0 %v3652_v28  ;;  %1252 = vmatpush2.bf16.msra.mxu1 %v2408_v39  ;;  %v3686_v39 = vld [vmem:[#allocation27_spill] sm:$0xff] }
 0x2bd   :  { %1253 = vmatprep.subr.bf16.mxu1 %v2427_v42  ;;  %v3687_v42 = vld [vmem:[#allocation29_spill] sm:$0xff] }
 0x2bf   :  { %1140 = vmatpush2.bf16.msra.mxu0 %v3653_v30 }
 0x2c0   :  { %1141 = vmatprep.subr.bf16.mxu0 %v3654_v31  ;;  %1254 = vmatpush2.bf16.msra.mxu1 %v2439_v44  ;;  %v2061_v44 = vld [vmem:[%s3451_s1 + $0x158] ss:$24 sps:$4 sm:$0xff]  }
 0x2c1   :  { %1255 = vmatprep.subr.bf16.mxu1 %v2451_v46  ;;  %v2062_v46 = vld [vmem:[%s3451_s1 + $0x12c] ss:$24 sps:$4 sm:$0xff]  }
 0x2c3   :  { %1142 = vmatpush2.bf16.msra.mxu0 %v3655_v34 }
 0x2c4   :  { %1143 = vmatprep.subr.bf16.mxu0 %v2757_v59  ;;  %1256 = vmatpush2.bf16.msra.mxu1 %v2456_v47  ;;  %v2063_v47 = vld [vmem:[%s3451_s1 + $0x128] ss:$24 sps:$4 sm:$0xff]  }
 0x2c5   :  { %1257 = vmatprep.subr.bf16.mxu1 %v2475_v50  ;;  %v2064_v50 = vld [vmem:[%s3451_s1 + $0xfc] ss:$24 sps:$4 sm:$0xff]  }
 0x2c7   :  { %1144 = vmatpush2.bf16.msra.mxu0 %v2764_v62 }
 0x2c8   :  { %1145 = vmatprep.subr.bf16.mxu0 %v2771_v63  ;;  %1258 = vmatpush2.bf16.msra.mxu1 %v2487_v52  ;;  %v2065_v52 = vld [vmem:[%s3451_s1 + $0xf8] ss:$24 sps:$4 sm:$0xff]  }
 0x2c9   :  { %1259 = vmatprep.subr.bf16.mxu1 %v2499_v54  ;;  %v2066_v54 = vld [vmem:[%s3451_s1 + $0xcc] ss:$24 sps:$4 sm:$0xff]  }
 0x2cb   :  { %1146 = vmatpush2.bf16.msra.mxu0 %v3685_v36 }
 0x2cc   :  { %1270 = vmatprep.subr.bf16.mxu0 %v2060_v38  ;;  %1260 = vmatpush2.bf16.msra.mxu1 %v3686_v39 }
 0x2cd   :  { %1311 = vmatprep.subr.bf16.mxu1 %v3687_v42 }
 0x2ce   :  { %1148 = vmatmul.mubr.bf16.vlgmr.msra.gmra.mxu0 %v2986_v25  ;;  %v2071_v25 = vld [vmem:[%s3451_s1 + $0x68] ss:$24 sps:$4 sm:$0xff]  }
 0x2cf   :  { %1271 = vmatpush1.bf16.msra.mxu0 %v2061_v44 }
 0x2d0   :  { %1272 = vmatprep.subr.bf16.mxu0 %v2062_v46 }
 0x2d3   :  { %1273 = vmatpush1.bf16.msra.mxu0 %v2063_v47 }
 0x2d4   :  { %1274 = vmatprep.subr.bf16.mxu0 %v2064_v50 }
 0x2d7   :  { %1275 = vmatpush1.bf16.msra.mxu0 %v2065_v52 }
 0x2d8   :  { %1276 = vmatprep.subr.bf16.mxu0 %v2066_v54  ;;  %v3701_v54 = vld [vmem:[#allocation66_spill] sm:$0xff] }
 0x2db   :  { %1277 = vmatpush1.bf16.msra.mxu0 %v2067_v14 }
 0x2dc   :  { %1278 = vmatprep.subr.bf16.mxu0 %v2068_v18  ;;  %v3702_v18 = vld [vmem:[#allocation65_spill] sm:$0xff] }
 0x2df   :  { %1279 = vmatpush1.bf16.msra.mxu0 %v2069_v0 }
 0x2e0   :  { %1280 = vmatprep.subr.bf16.mxu0 %v2070_v11 }
 0x2e3   :  { %1281 = vmatpush1.bf16.msra.mxu0 %v2071_v25 }
 0x2e4   :  { %1282 = vmatprep.subr.bf16.mxu0 %v2072_v53  ;;  %v1771_v53 = vld [vmem:[%s3450_s0 + $0x18] sm:$0xff] }
 0x2e7   :  { %1283 = vmatpush1.bf16.msra.mxu0 %v2073_v55 }
 0x2e8   :  { %1284 = vmatprep.subr.bf16.mxu0 %v2074_v32 }
 0x2eb   :  { %1285 = vmatpush1.bf16.msra.mxu0 %v2075_v49 }
 0x2ec   :  { %1286 = vmatprep.subr.bf16.mxu0 %v2076_v33 }
 0x2ef   :  { %1287 = vmatpush2.bf16.msra.mxu0 %v2077_v41 }
 0x2f0   :  { %1288 = vmatprep.subr.bf16.mxu0 %v2078_v45  ;;  %v1175_v45 = vrot.slane %v1771_v53, 4 }
 0x2f3   :  { %1289 = vmatpush2.bf16.msra.mxu0 %v3688_v37 }
 0x2f4   :  { %1290 = vmatprep.subr.bf16.mxu0 %v3689_v43 }
 0x2f7   :  { %1291 = vmatpush2.bf16.msra.mxu0 %v3690_v2 }
 0x2f8   :  { %1292 = vmatprep.subr.bf16.mxu0 %v3691_v56 }
 0x2fb   :  { %1293 = vmatpush2.bf16.msra.mxu0 %v3692_v58 }
 0x2fc   :  { %1294 = vmatprep.subr.bf16.mxu0 %v3693_v57 }
 0x2ff   :  { %1295 = vmatpush2.bf16.msra.mxu0 %v3694_v51 }
 0x300   :  { %1296 = vmatprep.subr.bf16.mxu0 %v3695_v27 }
 0x303   :  { %1297 = vmatpush2.bf16.msra.mxu0 %v3696_v24 }
 0x304   :  { %1298 = vmatprep.subr.bf16.mxu0 %v3697_v12 }
 0x307   :  { %1299 = vmatpush2.bf16.msra.mxu0 %v3698_v40 }
 0x308   :  { %1300 = vmatprep.subr.bf16.mxu0 %v3699_v60 }
 0x30b   :  { %1301 = vmatpush2.bf16.msra.mxu0 %v3700_v35 }
 0x34e   :  { %v1067_v38 = vpop.f32.mrf.mxu0  ;;  %v1108_v39 = vpop.f32.mrf.mxu1 }
 0x34f   :  { %v1068_v0 = vadd.f32 %v1067_v38, %v3702_v18  ;;  %v1109_v49 = vadd.f32 %v1108_v39, %v2842_v61 }
 0x350   :  { %v1069_v42 = vpop.f32.mrf.mxu0  ;;  %v1110_v44 = vpop.f32.mrf.mxu1 }
 0x351   :  { %v1070_v14 = vadd.f32 %v1069_v42, %v3701_v54  ;;  %v1111_v32 = vadd.f32 %v1110_v44, %v2844_v21  ;;  %v1772_v44 = vld [vmem:[%s3450_s0 + $0x20] sm:$0xf] }
 0x352   :  { %v1071_v46 = vpop.f32.mrf.mxu0  ;;  %v1112_v47 = vpop.f32.mrf.mxu1 }
 0x353   :  { %v1158_v11 = vcombine.low %v1068_v0, %v1070_v14  ;;  %v1179_v41 = vcombine.low %v1109_v49, %v1111_v32 }
 0x354   :  { %v1072_v50 = vpop.f32.mrf.mxu0  ;;  %v1113_v52 = vpop.f32.mrf.mxu1 }
 0x355   :  { %v1165_v25 = vrot.slane %v1158_v11, %v2836_v29  ;;  %v1186_v37 = vrot.slane %v1179_v41, %v2836_v29  ;;  %v2081_v41 = vld [vmem:[%s3451_s1 + $0x130] ss:$24 sps:$4 sm:$0xff]  }
 0x357   :  { %v1167_v55 = vadd.f32 %v1771_v53, %v1165_v25  ;;  %v1188_v43 = vadd.f32 %v1186_v37, %v1175_v45  ;;  %v2082_v45 = vld [vmem:[%s3451_s1 + $0x104] ss:$24 sps:$4 sm:$0xff]   ;;  %v2083_v37 = vld [vmem:[%s3451_s1 + $0x100] ss:$24 sps:$4 sm:$0xff]  }
 0x359   :  { %v1773_v33 = vmul.f32 -1.442695, %v1167_v55  ;;  %v1774_v2 = vmul.f32 -1.442695, %v1188_v43  ;;  %v2084_v43 = vld [vmem:[%s3451_s1 + $0xd4] ss:$24 sps:$4 sm:$0xff]  }
 0x35b   :  { %2019 = vpow2.f32 %v1773_v33  ;;  %v2079_v33 = vld [vmem:[%s3451_s1 + $0x160] ss:$24 sps:$4 sm:$0xff]  }
 0x35c   :  { %2021 = vpow2.f32 %v1774_v2  ;;  %v2085_v2 = vld [vmem:[%s3451_s1 + $0xd0] ss:$24 sps:$4 sm:$0xff]  }
 0x368   :  { %v2020_v56 = vpop.eup %2019 }
 0x369   :  { %v1171_v58 = vadd.f32 1.0, %v2020_v56  ;;  %v2022_v51 = vpop.eup %2021  ;;  %v1434_v56 = vld [vmem:[%s3453_s3 + $0xc8] sm:$0xff] }
 0x36a   :  { %v1192_v60 = vadd.f32 1.0, %v2022_v51  ;;  %v1540_v51 = vld [vmem:[%s3455_s5 + $0x48] sm:$0xff] }
 0x36b   :  { %2023 = vrcp.f32 %v1171_v58  ;;  %v1556_v58 = vld [vmem:[%s3455_s5 + $0xc8] sm:$0xff] }
 0x36c   :  { %2025 = vrcp.f32 %v1192_v60  ;;  %v1432_v60 = vld [vmem:[%s3453_s3 + $0xb8] sm:$0xff] }
 0x378   :  { %v2024_v42 = vpop.eup %2023 }
 0x379   :  { %v2026_v50 = vpop.eup %2025 }
 0x37a   :  { %v1209_v52 = vsub.f32 1.0, %v2026_v50  ;;  %v1211_v11 = vmul.f32 %v2026_v50, %v2982_v15  ;;  %v2080_v15 = vld [vmem:[%s3451_s1 + $0x134] ss:$24 sps:$4 sm:$0xff]  }
 0x37b   :  { %v1430_v50 = vld [vmem:[%s3453_s3 + $0xa8] sm:$0xff] }
 0x38e   :  { %v1149_v57 = vpop.f32.mrf.mxu0 }
 0x38f   :  { %v1150_v24 = vadd.f32 %v1149_v57, %v2849_v19  ;;  %v1418_v57 = vld [vmem:[%s3453_s3 + $0x48] sm:$0xff] }
 0x390   :  { %v1151_v27 = vpop.f32.mrf.mxu0 }
 0x391   :  { %v1152_v12 = vadd.f32 %v1151_v27, %v2851_v48  ;;  %v1433_v27 = vld [vmem:[%s3453_s3 + $0xc0] sm:$0xff] }
 0x392   :  { %v1153_v40 = vpop.f32.mrf.mxu0 }
 0x393   :  { %v1197_v35 = vcombine.low %v1150_v24, %v1152_v12  ;;  %v1555_v24 = vld [vmem:[%s3455_s5 + $0xc0] sm:$0xff] }
 0x394   :  { %v1154_v38 = vpop.f32.mrf.mxu0  ;;  %v1417_v12 = vld [vmem:[%s3453_s3 + $0x40] sm:$0xff] }
 0x395   :  { %v1204_v39 = vrot.slane %v1197_v35, %v2836_v29  ;;  %v1539_v40 = vld [vmem:[%s3455_s5 + $0x40] sm:$0xff]  ;;  %v1554_v35 = vld [vmem:[%s3455_s5 + $0xb8] sm:$0xff] }
 0x396   :  { %v1416_v38 = vld [vmem:[%s3453_s3 + $0x38] sm:$0xff] }
 0x397   :  { %v1206_v46 = vmul.f32 %v2024_v42, %v1204_v39  ;;  %v1538_v39 = vld [vmem:[%s3455_s5 + $0x38] sm:$0xff]  ;;  %v1431_v42 = vld [vmem:[%s3453_s3 + $0xb0] sm:$0xff] }
 0x399   :  { %v1207_v47 = vadd.f32 %v1772_v44, %v1206_v46  ;;  %v1553_v44 = vld [vmem:[%s3455_s5 + $0xb0] sm:$0xff] }
 0x39a   :  { %v1415_v46 = vld [vmem:[%s3453_s3 + $0x30] sm:$0xff] }
 0x39b   :  { %2027 = vtanh.f32 %v1207_v47  ;;  %v1537_v47 = vld [vmem:[%s3455_s5 + $0x30] sm:$0xff] }
 0x3a8   :  { %v2028_v14 = vpop.eup %2027 }
 0x3a9   :  { %v1210_v0 = vmul.f32 %v2028_v14, %v1209_v52  ;;  %v1552_v52 = vld [vmem:[%s3455_s5 + $0xa8] sm:$0xff] }
 0x3aa   :  { %v1414_v14 = vld [vmem:[%s3453_s3 + $0x28] sm:$0xff] }
 0x3ab   :  { %v3180_v25 = vadd.f32 %v1211_v11, %v1210_v0  ;;  %v1536_v0 = vld [vmem:[%s3455_s5 + $0x28] sm:$0xff]  ;;  %v1429_v11 = vld [vmem:[%s3453_s3 + $0xa0] sm:$0xff] }
 0x3ad   :  { %v1223_v53 = vrot.slane %v3180_v25, %v2836_v29 }
 0x3af   :  { %v1224_v55 = vcombine.high %v1223_v53, %v1223_v53  ;;  %v1227_v49 = vpack.c.bf16 %v1223_v53, %v1223_v53  ;;  %v1551_v53 = vld [vmem:[%s3455_s5 + $0xa0] sm:$0xff] }
 0x3b1   :  { %v1228_v32 = vpack.c.bf16 %v1224_v55, %v1224_v55  ;;  %v1413_v55 = vld [vmem:[%s3453_s3 + $0x20] sm:$0xff] }
 0x3b3   :  { %1261 = vmatprep.mubr.bf16.mxu1 %v1228_v32  ;;  %1302 = vmatprep.mubr.bf16.mxu0 %v1228_v32 }
 0x3b4   :  { %1262 = vmatmul.mubr.bf16.vlgmr.msra.gmra.mxu1 %v1227_v49  ;;  %1303 = vmatmul.mubr.bf16.vlgmr.msra.gmra.mxu0 %v1227_v49 }
 0x3b5   :  { %1312 = vmatpush1.bf16.msra.mxu1 %v2079_v33  ;;  %1343 = vmatprep.mubr.bf16.mxu1 %v1228_v32  ;;  %v1535_v32 = vld [vmem:[%s3455_s5 + $0x20] sm:$0xff]  ;;  %v1550_v33 = vld [vmem:[%s3455_s5 + $0x98] sm:$0xff] }
 0x3b6   :  { %1313 = vmatprep.subr.bf16.mxu1 %v2080_v15  ;;  %v1412_v15 = vld [vmem:[%s3453_s3 + $0x18] sm:$0xff] }
 0x3b9   :  { %1314 = vmatpush1.bf16.msra.mxu1 %v2081_v41  ;;  %v1534_v41 = vld [vmem:[%s3455_s5 + $0x18] sm:$0xff] }
 0x3ba   :  { %1315 = vmatprep.subr.bf16.mxu1 %v2082_v45  ;;  %v1427_v45 = vld [vmem:[%s3453_s3 + $0x90] sm:$0xff] }
 0x3bd   :  { %1316 = vmatpush1.bf16.msra.mxu1 %v2083_v37  ;;  %v1549_v37 = vld [vmem:[%s3455_s5 + $0x90] sm:$0xff] }
 0x3be   :  { %1317 = vmatprep.subr.bf16.mxu1 %v2084_v43  ;;  %v1411_v43 = vld [vmem:[%s3453_s3 + $0x10] sm:$0xff] }
 0x3c1   :  { %1318 = vmatpush1.bf16.msra.mxu1 %v2085_v2  ;;  %v1533_v2 = vld [vmem:[%s3455_s5 + $0x10] sm:$0xff] }
 0x3c2   :  { %1319 = vmatprep.subr.bf16.mxu1 %v3636_v1  ;;  %v1440_v1 = vld [vmem:[%s3453_s3 + $0xf8] sm:$0xff] }
 0x3c3   :  { %1781 = vmatprep.subr.mxu0 %v1440_v1  ;;  %v1426_v1 = vld [vmem:[%s3453_s3 + $0x88] sm:$0xff] }
 0x3c5   :  { %1320 = vmatpush1.bf16.msra.mxu1 %v3637_v3  ;;  %v1562_v3 = vld [vmem:[%s3455_s5 + $0xf8] sm:$0xff] }
 0x3c6   :  { %1321 = vmatprep.subr.bf16.mxu1 %v3638_v4  ;;  %v1561_v4 = vld [vmem:[%s3455_s5 + $0xf0] sm:$0xff] }
 0x3c9   :  { %1322 = vmatpush1.bf16.msra.mxu1 %v3639_v5  ;;  %v1423_v5 = vld [vmem:[%s3453_s3 + $0x70] sm:$0xff] }
 0x3ca   :  { %1323 = vmatprep.subr.bf16.mxu1 %v3640_v6  ;;  %v1545_v6 = vld [vmem:[%s3455_s5 + $0x70] sm:$0xff] }
 0x3cd   :  { %1324 = vmatpush1.bf16.msra.mxu1 %v3641_v7  ;;  %v1438_v7 = vld [vmem:[%s3453_s3 + $0xe8] sm:$0xff] }
 0x3ce   :  { %1325 = vmatprep.subr.bf16.mxu1 %v3642_v8  ;;  %v1560_v8 = vld [vmem:[%s3455_s5 + $0xe8] sm:$0xff] }
 0x3d1   :  { %1326 = vmatpush1.bf16.msra.mxu1 %v3643_v9  ;;  %v1422_v9 = vld [vmem:[%s3453_s3 + $0x68] sm:$0xff] }
 0x3d2   :  { %1327 = vmatprep.subr.bf16.mxu1 %v3644_v10  ;;  %v1544_v10 = vld [vmem:[%s3455_s5 + $0x68] sm:$0xff] }
 0x3d5   :  { %1328 = vmatpush2.bf16.msra.mxu1 %v3645_v13  ;;  %v1437_v13 = vld [vmem:[%s3453_s3 + $0xe0] sm:$0xff] }
 0x3d6   :  { %1329 = vmatprep.subr.bf16.mxu1 %v3646_v16  ;;  %v1559_v16 = vld [vmem:[%s3455_s5 + $0xe0] sm:$0xff] }
 0x3d9   :  { %1330 = vmatpush2.bf16.msra.mxu1 %v3647_v17  ;;  %v1421_v17 = vld [vmem:[%s3453_s3 + $0x60] sm:$0xff] }
 0x3da   :  { %1331 = vmatprep.subr.bf16.mxu1 %v3648_v20  ;;  %v1543_v20 = vld [vmem:[%s3455_s5 + $0x60] sm:$0xff] }
 0x3dd   :  { %1332 = vmatpush2.bf16.msra.mxu1 %v3649_v22  ;;  %v1436_v22 = vld [vmem:[%s3453_s3 + $0xd8] sm:$0xff] }
 0x3de   :  { %1333 = vmatprep.subr.bf16.mxu1 %v3650_v23  ;;  %v1558_v23 = vld [vmem:[%s3455_s5 + $0xd8] sm:$0xff] }
 0x3e1   :  { %1334 = vmatpush2.bf16.msra.mxu1 %v3651_v26  ;;  %v1420_v26 = vld [vmem:[%s3453_s3 + $0x58] sm:$0xff] }
 0x3e2   :  { %1335 = vmatprep.subr.bf16.mxu1 %v3652_v28  ;;  %v1542_v28 = vld [vmem:[%s3455_s5 + $0x58] sm:$0xff] }
 0x3e5   :  { %1336 = vmatpush2.bf16.msra.mxu1 %v3653_v30  ;;  %v1435_v30 = vld [vmem:[%s3453_s3 + $0xd0] sm:$0xff] }
 0x3e6   :  { %1337 = vmatprep.subr.bf16.mxu1 %v3654_v31  ;;  %v1557_v31 = vld [vmem:[%s3455_s5 + $0xd0] sm:$0xff] }
 0x3e9   :  { %1338 = vmatpush2.bf16.msra.mxu1 %v3655_v34  ;;  %v1419_v34 = vld [vmem:[%s3453_s3 + $0x50] sm:$0xff] }
 0x3ea   :  { %1339 = vmatprep.subr.bf16.mxu1 %v2757_v59  ;;  %v1424_v59 = vld [vmem:[%s3453_s3 + $0x78] sm:$0xff] }
 0x3eb   :  { %1782 = vmatpush3.msra.mxu0 %v1424_v59  ;;  %v1410_v59 = vld [vmem:[%s3453_s3 + $0x8] sm:$0xff] }
 0x3ed   :  { %1340 = vmatpush2.bf16.msra.mxu1 %v2764_v62  ;;  %v1546_v62 = vld [vmem:[%s3455_s5 + $0x78] sm:$0xff] }
 0x3ee   :  { %1341 = vmatprep.subr.bf16.mxu1 %v2771_v63  ;;  %v1439_v63 = vld [vmem:[%s3453_s3 + $0xf0] sm:$0xff] }
 0x3ef   :  { %1783 = vmatprep.subr.mxu0 %v1439_v63  ;;  %v1425_v63 = vld [vmem:[%s3453_s3 + $0x80] sm:$0xff] }
 0x3f0   :  { %1784 = vmatpush3.msra.mxu0 %v1423_v5  ;;  %v1409_v5 = vld [vmem:[%s3453_s3] sm:$0xff] }
 0x3f1   :  { %1342 = vmatpush2.bf16.msra.mxu1 %v3685_v36  ;;  %1785 = vmatprep.subr.mxu0 %v1438_v7  ;;  %v1541_v36 = vld [vmem:[%s3455_s5 + $0x50] sm:$0xff] }
 0x3f2   :  { %1816 = vmatprep.subr.mxu1 %v1562_v3  ;;  %1786 = vmatpush3.msra.mxu0 %v1422_v9  ;;  %v1548_v3 = vld [vmem:[%s3455_s5 + $0x88] sm:$0xff] }
 0x3f3   :  { %1787 = vmatprep.subr.mxu0 %v1437_v13 }
 0x3f4   :  { %1344 = vmatmul.mubr.bf16.vlgmr.msra.gmra.mxu1 %v1227_v49  ;;  %1788 = vmatpush3.msra.mxu0 %v1421_v17  ;;  %v1428_v49 = vld [vmem:[%s3453_s3 + $0x98] sm:$0xff] }
 0x3f5   :  { %1817 = vmatpush3.msra.mxu1 %v1546_v62  ;;  %1789 = vmatprep.subr.mxu0 %v1436_v22  ;;  %v1532_v62 = vld [vmem:[%s3455_s5 + $0x8] sm:$0xff] }
 0x3f6   :  { %1818 = vmatprep.subr.mxu1 %v1561_v4  ;;  %1790 = vmatpush3.msra.mxu0 %v1420_v26  ;;  %v1547_v4 = vld [vmem:[%s3455_s5 + $0x80] sm:$0xff] }
 0x3f7   :  { %1819 = vmatpush3.msra.mxu1 %v1545_v6  ;;  %1791 = vmatprep.subr.mxu0 %v1435_v30  ;;  %v1531_v6 = vld [vmem:[%s3455_s5] sm:$0xff] }
 0x3f8   :  { %1820 = vmatprep.subr.mxu1 %v1560_v8  ;;  %1792 = vmatpush3.msra.mxu0 %v1419_v34  ;;  %v1775_v30 = vld [vmem:[%s3450_s0 + $0x24] sm:$0xff] }
 0x3f9   :  { %1821 = vmatpush3.msra.mxu1 %v1544_v10  ;;  %1793 = vmatprep.subr.mxu0 %v1434_v56 }
 0x3fa   :  { %1822 = vmatprep.subr.mxu1 %v1559_v16  ;;  %1794 = vmatpush3.msra.mxu0 %v1418_v57  ;;  %v1371_v57 = vrot.slane %v1775_v30, 4 }
 0x3fb   :  { %1823 = vmatpush3.msra.mxu1 %v1543_v20  ;;  %1795 = vmatprep.subr.mxu0 %v1433_v27 }
 0x3fc   :  { %1824 = vmatprep.subr.mxu1 %v1558_v23  ;;  %1796 = vmatpush3.msra.mxu0 %v1417_v12 }
 0x3fd   :  { %1825 = vmatpush3.msra.mxu1 %v1542_v28  ;;  %1797 = vmatprep.subr.mxu0 %v1432_v60 }
 0x3fe   :  { %1826 = vmatprep.subr.mxu1 %v1557_v31  ;;  %1798 = vmatpush3.msra.mxu0 %v1416_v38 }
 0x3ff   :  { %1827 = vmatpush3.msra.mxu1 %v1541_v36  ;;  %1799 = vmatprep.subr.mxu0 %v1431_v42 }
 0x400   :  { %1828 = vmatprep.subr.mxu1 %v1556_v58  ;;  %1800 = vmatpush3.msra.mxu0 %v1415_v46 }
 0x401   :  { %1829 = vmatpush3.msra.mxu1 %v1540_v51  ;;  %1801 = vmatprep.subr.mxu0 %v1430_v50 }
 0x402   :  { %1830 = vmatprep.subr.mxu1 %v1555_v24  ;;  %1802 = vmatpush3.msra.mxu0 %v1414_v14 }
 0x403   :  { %1831 = vmatpush3.msra.mxu1 %v1539_v40  ;;  %1803 = vmatprep.subr.mxu0 %v1429_v11 }
 0x404   :  { %1832 = vmatprep.subr.mxu1 %v1554_v35  ;;  %1804 = vmatpush3.msra.mxu0 %v1413_v55 }
 0x405   :  { %1833 = vmatpush3.msra.mxu1 %v1538_v39  ;;  %1805 = vmatprep.subr.mxu0 %v1428_v49 }
 0x406   :  { %1834 = vmatprep.subr.mxu1 %v1553_v44  ;;  %1806 = vmatpush3.msra.mxu0 %v1412_v15 }
 0x407   :  { %1835 = vmatpush3.msra.mxu1 %v1537_v47  ;;  %1807 = vmatprep.subr.mxu0 %v1427_v45  ;;  %v1776_v47 = vld [vmem:[%s3450_s0 + $0x2c] sm:$0xf] }
 0x408   :  { %1836 = vmatprep.subr.mxu1 %v1552_v52  ;;  %1808 = vmatpush3.msra.mxu0 %v1411_v43 }
 0x409   :  { %1837 = vmatpush3.msra.mxu1 %v1536_v0  ;;  %1809 = vmatprep.subr.mxu0 %v1426_v1 }
 0x40a   :  { %1838 = vmatprep.subr.mxu1 %v1551_v53  ;;  %1810 = vmatpush3.msra.mxu0 %v1410_v59 }
 0x40b   :  { %1839 = vmatpush3.msra.mxu1 %v1535_v32  ;;  %1811 = vmatprep.subr.mxu0 %v1425_v63 }
 0x40c   :  { %1840 = vmatprep.subr.mxu1 %v1550_v33  ;;  %1812 = vmatpush3.msra.mxu0 %v1409_v5 }
 0x40d   :  { %1841 = vmatpush3.msra.mxu1 %v1534_v41  ;;  %v1780_v41 = vld [vmem:[%s3456_s6] ss:$0 sm:$0xff] }
 0x40e   :  { %1842 = vmatprep.subr.mxu1 %v1549_v37 }
 0x40f   :  { %1843 = vmatpush3.msra.mxu1 %v1533_v2 }
 0x410   :  { %1844 = vmatprep.subr.mxu1 %v1548_v3 }
 0x411   :  { %1845 = vmatpush3.msra.mxu1 %v1532_v62 }
 0x412   :  { %1846 = vmatprep.subr.mxu1 %v1547_v4 }
 0x413   :  { %1847 = vmatpush3.msra.mxu1 %v1531_v6 }
 0x474   :  { %v1263_v7 = vpop.f32.mrf.mxu1  ;;  %v1304_v8 = vpop.f32.mrf.mxu0 }
 0x475   :  { %v1264_v23 = vadd.f32 %v1263_v7, %v3702_v18  ;;  %v1305_v36 = vadd.f32 %v1304_v8, %v2842_v61 }
 0x476   :  { %v1265_v9 = vpop.f32.mrf.mxu1  ;;  %v1306_v10 = vpop.f32.mrf.mxu0 }
 0x477   :  { %v1266_v22 = vadd.f32 %v1265_v9, %v3701_v54  ;;  %v1307_v34 = vadd.f32 %v1306_v10, %v2844_v21 }
 0x478   :  { %v1267_v13 = vpop.f32.mrf.mxu1  ;;  %v1308_v16 = vpop.f32.mrf.mxu0 }
 0x479   :  { %v1354_v26 = vcombine.low %v1264_v23, %v1266_v22  ;;  %v1375_v58 = vcombine.low %v1305_v36, %v1307_v34 }
 0x47a   :  { %v1268_v17 = vpop.f32.mrf.mxu1  ;;  %v1309_v20 = vpop.f32.mrf.mxu0 }
 0x47b   :  { %v1361_v28 = vrot.slane %v1354_v26, %v2836_v29  ;;  %v1382_v54 = vrot.slane %v1375_v58, %v2836_v29 }
 0x47d   :  { %v1363_v31 = vadd.f32 %v1775_v30, %v1361_v28  ;;  %v1384_v51 = vadd.f32 %v1382_v54, %v1371_v57 }
 0x47f   :  { %v1777_v56 = vmul.f32 -1.442695, %v1363_v31  ;;  %v1778_v18 = vmul.f32 -1.442695, %v1384_v51 }
 0x481   :  { %2029 = vpow2.f32 %v1777_v56 }
 0x482   :  { %2031 = vpow2.f32 %v1778_v18 }
 0x48e   :  { %v2030_v27 = vpop.eup %2029 }
 0x48f   :  { %v1367_v24 = vadd.f32 1.0, %v2030_v27  ;;  %v2032_v40 = vpop.eup %2031 }
 0x490   :  { %v1388_v38 = vadd.f32 1.0, %v2032_v40 }
 0x491   :  { %2033 = vrcp.f32 %v1367_v24 }
 0x492   :  { %2035 = vrcp.f32 %v1388_v38 }
 0x49e   :  { %v2034_v46 = vpop.eup %2033 }
 0x49f   :  { %v2036_v14 = vpop.eup %2035 }
 0x4a0   :  { %v1405_v0 = vsub.f32 1.0, %v2036_v14 }
 0x4b4   :  { %v1345_v12 = vpop.f32.mrf.mxu1 }
 0x4b5   :  { %v1346_v35 = vadd.f32 %v1345_v12, %v2849_v19 }
 0x4b6   :  { %v1347_v60 = vpop.f32.mrf.mxu1 }
 0x4b7   :  { %v1348_v21 = vadd.f32 %v1347_v60, %v2851_v48  ;;  %v1407_v48 = vmul.f32 %v2036_v14, %v3180_v25  ;;  %v1779_v25 = vld [vmem:[%s3454_s4] ss:$0 sm:$0xff] }
 0x4b8   :  { %v1349_v61 = vpop.f32.mrf.mxu1 }
 0x4b9   :  { %v1393_v39 = vcombine.low %v1346_v35, %v1348_v21 }
 0x4ba   :  { %v1350_v42 = vpop.f32.mrf.mxu1 }
 0x4bb   :  { %v1400_v44 = vrot.slane %v1393_v39, %v2836_v29 }
 0x4bd   :  { %v1402_v50 = vmul.f32 %v2034_v46, %v1400_v44 }
 0x4bf   :  { %v1403_v52 = vadd.f32 %v1776_v47, %v1402_v50 }
 0x4c1   :  { %2037 = vtanh.f32 %v1403_v52 }
 0x4ce   :  { %v2038_v19 = vpop.eup %2037 }
 0x4cf   :  { %v1406_v11 = vmul.f32 %v2038_v19, %v1405_v0 }
 0x4d1   :  { %v1408_v53 = vadd.f32 %v1407_v48, %v1406_v11 }
 0x4d3   :  { %v1455_v55 = vrot.slane %v1408_v53, %v2836_v29 }
 0x4d5   :  { %v1456_v32 = vcombine.high %v1455_v55, %v1455_v55 }
 0x4d7   :  { %1523 = vmatprep.mubr.f32.mxu0 %v1456_v32  ;;  %1634 = vmatprep.mubr.f32.mxu1 %v1456_v32 }
 0x4d8   :  { %1524 = vmatmul.mubr.f32.vlgmr.msra.gmra.mxu0 %v1455_v55  ;;  %1635 = vmatmul.mubr.f32.vlgmr.msra.gmra.mxu1 %v1455_v55 }
 0x598   :  { %v1813_v49 = vpop.f32.mrf.mxu0  ;;  %v1848_v33 = vpop.f32.mrf.mxu1 }
 0x59a   :  { %v1814_v15 = vpop.f32.mrf.mxu0  ;;  %v1849_v45 = vpop.f32.mrf.mxu1 }
 0x59b   :  { %v1815_v29 = vadd.f32 %v1814_v15, %v1813_v49  ;;  %v1850_v37 = vadd.f32 %v1849_v45, %v1848_v33 }
 0x59d   :  { %v1637_v43 = vadd.f32 %v1850_v37, %v1780_v41  ;;  %v1526_v2 = vadd.f32 %v1815_v29, %v1779_v25 }
 0x59f   :  { %1530 = vst.msk [vmem:[#allocation2] sm:$0x3] %vm1529_vm0, %v1526_v2  ;;  %1640 = vst.msk [vmem:[#allocation4] sm:$0x3] %vm1529_vm0, %v1637_v43 }
 0x5a0   :  { %2097 = shalt.err (!%p2094_p4)
}
 0x5a1   :  { %1650 = dma.vmem_to_hbm [thread:$0]  %s1648_s26, 32, %s3457_s7, [#allocation3]  }
 0x5a2   :  { %s2106_s30 = scalar_lea.vmem %s1658_s28, 32  ;;  %p2111_p6 = scmp.lt.s32.totalorder %s1658_s28, %s1658_s28 }
 0x5a3   :  { %p2107_p5 = scmp.ne.s32.totalorder %s1658_s28, %s2106_s30  ;;  %p2112_p7 = scmp.lt.s32.totalorder %s2106_s30, %s2106_s30 }
 0x5a5   :  { %p2113_p8 = por %p2112_p7, %p2111_p6 }
 0x5a7   :  { %p2114_p9 = pnand %p2113_p8, %p2107_p5 }
 0x5a9   :  { %2117 = shalt.err (!%p2114_p9)
}
 0x5aa   :  { %1660 = dma.vmem_to_hbm [thread:$0]  %s1658_s28, 32, %s3458_s8, [#allocation5]  }
 0x5ab   :  { %2126 = dma.done.wait [#allocation3], 32  }
 0x5ac   :  { %2127 = vsyncadd [#allocation3], 4294967264 }
 0x5ad   :  { %2128 = dma.done.wait [#allocation5], 32  }
 0x5ae   :  { %2129 = vsyncadd [#allocation5], 4294967264 }
 0x5af   :  { %1667 = vsyncpa [#allocation3], 1 }
 0x5b0   :  { %1668 = vsyncpa [#allocation5], 1 }

// kernel: reference_encoder_forward.8
= control target key start
LH: loop header
LB: loop body
LE: loop exit
PB: predicated region body
PF: predicated region fallthrough
CT: control target
= control target key end

     0   :  { %s6490_s1 = inlined_call_operand.vmem [shape: bf16[1280,768], index: 1, kind: input, shape index: {}]   ;;  %s6491_s0 = inlined_call_operand.vmem [shape: bf16[8,1280], index: 0, kind: input, shape index: {}]   ;;  %s6492_s2 = inlined_call_operand.vmem [shape: f32[1,768], index: 2, kind: input, shape index: {}]   ;;  %s6493_s3 = inlined_call_operand.vmem [shape: f32[1,768], index: 3, kind: input, shape index: {}]   ;;  %s6494_s4 = inlined_call_operand.vmem [shape: f32[8,768], index: 4, kind: output, shape index: {}]  }
   0x1   :  { %v4128_v0 = vld [vmem:[%s6490_s1 + $0x154] ss:$24 sps:$4 sm:$0xff]   ;;  %v4132_v2 = vld [vmem:[%s6490_s1 + $0x150] ss:$24 sps:$4 sm:$0xff]   ;;  %v4134_v4 = vld [vmem:[%s6490_s1 + $0x124] ss:$24 sps:$4 sm:$0xff]  }
   0x2   :  { %v4130_v1 = vld [vmem:[%s6490_s1 + $0x454] ss:$24 sps:$4 sm:$0xff]   ;;  %2937 = vmatprep.subr.bf16.mxu0 %v4128_v0  ;;  %v4133_v3 = vld [vmem:[%s6490_s1 + $0x450] ss:$24 sps:$4 sm:$0xff]   ;;  %v4136_v5 = vld [vmem:[%s6490_s1 + $0x424] ss:$24 sps:$4 sm:$0xff]  }
   0x3   :  { %2978 = vmatprep.subr.bf16.mxu1 %v4130_v1  ;;  %2938 = vmatpush1.bf16.msra.mxu0 %v4132_v2  ;;  %v4138_v6 = vld [vmem:[%s6490_s1 + $0x120] ss:$24 sps:$4 sm:$0xff]   ;;  %v4140_v8 = vld [vmem:[%s6490_s1 + $0xf4] ss:$24 sps:$4 sm:$0xff]   ;;  %v4144_v10 = vld [vmem:[%s6490_s1 + $0xf0] ss:$24 sps:$4 sm:$0xff]  }
   0x4   :  { %2979 = vmatpush1.bf16.msra.mxu1 %v4133_v3  ;;  %2939 = vmatprep.subr.bf16.mxu0 %v4134_v4  ;;  %v4139_v7 = vld [vmem:[%s6490_s1 + $0x420] ss:$24 sps:$4 sm:$0xff]   ;;  %v4142_v9 = vld [vmem:[%s6490_s1 + $0x3f4] ss:$24 sps:$4 sm:$0xff]   ;;  %v4145_v11 = vld [vmem:[%s6490_s1 + $0x3f0] ss:$24 sps:$4 sm:$0xff]  }
   0x5   :  { %2980 = vmatprep.subr.bf16.mxu1 %v4136_v5  ;;  %v4146_v12 = vld [vmem:[%s6490_s1 + $0xc4] ss:$24 sps:$4 sm:$0xff]   ;;  %v4150_v14 = vld [vmem:[%s6490_s1 + $0xc0] ss:$24 sps:$4 sm:$0xff]   ;;  %v4152_v16 = vld [vmem:[%s6490_s1 + $0x94] ss:$24 sps:$4 sm:$0xff]  }
   0x6   :  { %v4148_v13 = vld [vmem:[%s6490_s1 + $0x3c4] ss:$24 sps:$4 sm:$0xff]   ;;  %v4151_v15 = vld [vmem:[%s6490_s1 + $0x3c0] ss:$24 sps:$4 sm:$0xff]   ;;  %v4154_v17 = vld [vmem:[%s6490_s1 + $0x394] ss:$24 sps:$4 sm:$0xff]  }
   0x7   :  { %2940 = vmatpush1.bf16.msra.mxu0 %v4138_v6  ;;  %v4156_v18 = vld [vmem:[%s6490_s1 + $0x90] ss:$24 sps:$4 sm:$0xff]   ;;  %v4158_v20 = vld [vmem:[%s6490_s1 + $0x64] ss:$24 sps:$4 sm:$0xff]   ;;  %v4162_v22 = vld [vmem:[%s6490_s1 + $0x60] ss:$24 sps:$4 sm:$0xff]  }
   0x8   :  { %2981 = vmatpush1.bf16.msra.mxu1 %v4139_v7  ;;  %2941 = vmatprep.subr.bf16.mxu0 %v4140_v8  ;;  %v4157_v19 = vld [vmem:[%s6490_s1 + $0x390] ss:$24 sps:$4 sm:$0xff]   ;;  %v4160_v21 = vld [vmem:[%s6490_s1 + $0x364] ss:$24 sps:$4 sm:$0xff]   ;;  %v4163_v23 = vld [vmem:[%s6490_s1 + $0x360] ss:$24 sps:$4 sm:$0xff]  }
   0x9   :  { %2982 = vmatprep.subr.bf16.mxu1 %v4142_v9  ;;  %v4164_v24 = vld [vmem:[%s6490_s1 + $0x34] ss:$24 sps:$4 sm:$0xff]   ;;  %v4168_v26 = vld [vmem:[%s6490_s1 + $0x30] ss:$24 sps:$4 sm:$0xff]   ;;  %v4170_v28 = vld [vmem:[%s6490_s1 + $0x4] ss:$24 sps:$4 sm:$0xff]  }
   0xa   :  { %v4166_v25 = vld [vmem:[%s6490_s1 + $0x334] ss:$24 sps:$4 sm:$0xff]   ;;  %v4169_v27 = vld [vmem:[%s6490_s1 + $0x330] ss:$24 sps:$4 sm:$0xff]   ;;  %v4172_v29 = vld [vmem:[%s6490_s1 + $0x304] ss:$24 sps:$4 sm:$0xff]  }
   0xb   :  { %2942 = vmatpush1.bf16.msra.mxu0 %v4144_v10  ;;  %v4174_v30 = vld [vmem:[%s6490_s1] ss:$24 sps:$4 sm:$0xff]   ;;  %v4176_v32 = vld [vmem:[%s6490_s1 + $0x2d4] ss:$24 sps:$4 sm:$0xff]   ;;  %v4180_v34 = vld [vmem:[%s6490_s1 + $0x2d0] ss:$24 sps:$4 sm:$0xff]  }
   0xc   :  { %2983 = vmatpush1.bf16.msra.mxu1 %v4145_v11  ;;  %2943 = vmatprep.subr.bf16.mxu0 %v4146_v12  ;;  %v4175_v31 = vld [vmem:[%s6490_s1 + $0x300] ss:$24 sps:$4 sm:$0xff]   ;;  %v4178_v33 = vld [vmem:[%s6490_s1 + $0x5d4] ss:$24 sps:$4 sm:$0xff]   ;;  %v4181_v35 = vld [vmem:[%s6490_s1 + $0x5d0] ss:$24 sps:$4 sm:$0xff]  }
   0xd   :  { %2984 = vmatprep.subr.bf16.mxu1 %v4148_v13  ;;  %v4182_v36 = vld [vmem:[%s6490_s1 + $0x2a4] ss:$24 sps:$4 sm:$0xff]   ;;  %v4186_v38 = vld [vmem:[%s6490_s1 + $0x2a0] ss:$24 sps:$4 sm:$0xff]   ;;  %v4188_v40 = vld [vmem:[%s6490_s1 + $0x274] ss:$24 sps:$4 sm:$0xff]  }
   0xe   :  { %v4184_v37 = vld [vmem:[%s6490_s1 + $0x5a4] ss:$24 sps:$4 sm:$0xff]   ;;  %v4187_v39 = vld [vmem:[%s6490_s1 + $0x5a0] ss:$24 sps:$4 sm:$0xff]   ;;  %v4190_v41 = vld [vmem:[%s6490_s1 + $0x574] ss:$24 sps:$4 sm:$0xff]  }
   0xf   :  { %2944 = vmatpush1.bf16.msra.mxu0 %v4150_v14  ;;  %v4192_v42 = vld [vmem:[%s6490_s1 + $0x270] ss:$24 sps:$4 sm:$0xff]   ;;  %v4194_v44 = vld [vmem:[%s6490_s1 + $0x244] ss:$24 sps:$4 sm:$0xff]   ;;  %v4198_v49 = vld [vmem:[%s6490_s1 + $0x240] ss:$24 sps:$4 sm:$0xff]  }
  0x10   :  { %2985 = vmatpush1.bf16.msra.mxu1 %v4151_v15  ;;  %2945 = vmatprep.subr.bf16.mxu0 %v4152_v16  ;;  %v4193_v43 = vld [vmem:[%s6490_s1 + $0x570] ss:$24 sps:$4 sm:$0xff]   ;;  %v4196_v45 = vld [vmem:[%s6490_s1 + $0x544] ss:$24 sps:$4 sm:$0xff]   ;;  %v4199_v50 = vld [vmem:[%s6490_s1 + $0x540] ss:$24 sps:$4 sm:$0xff]  }
  0x11   :  { %2986 = vmatprep.subr.bf16.mxu1 %v4154_v17  ;;  %v17_v46 = vld [vmem:[%s6491_s0] sm:$0xff]  ;;  %v18_v48 = vld [vmem:[%s6491_s0 + $0x8] sm:$0xff] }
  0x12   :  { %v5024_v47 = vcombine.high %v17_v46, %v17_v46  ;;  %v5035_v51 = vcombine.high %v18_v48, %v18_v48  ;;  %v4200_v52 = vld [vmem:[%s6490_s1 + $0x214] ss:$24 sps:$4 sm:$0xff]   ;;  %v4204_v54 = vld [vmem:[%s6490_s1 + $0x210] ss:$24 sps:$4 sm:$0xff]   ;;  %v4206_v56 = vld [vmem:[%s6490_s1 + $0x1e4] ss:$24 sps:$4 sm:$0xff]   ;;  %v5093_v6 = vcombine.low %v17_v46, %v17_v46  ;;  %v5095_v7 = vcombine.low %v18_v48, %v18_v48 }
  0x13   :  { %2946 = vmatpush1.bf16.msra.mxu0 %v4156_v18  ;;  %v4202_v53 = vld [vmem:[%s6490_s1 + $0x514] ss:$24 sps:$4 sm:$0xff]   ;;  %v4205_v55 = vld [vmem:[%s6490_s1 + $0x510] ss:$24 sps:$4 sm:$0xff]   ;;  %v4208_v57 = vld [vmem:[%s6490_s1 + $0x4e4] ss:$24 sps:$4 sm:$0xff]  }
  0x14   :  { %2987 = vmatpush1.bf16.msra.mxu1 %v4157_v19  ;;  %2947 = vmatprep.subr.bf16.mxu0 %v4158_v20  ;;  %v4210_v58 = vld [vmem:[%s6490_s1 + $0x1e0] ss:$24 sps:$4 sm:$0xff]   ;;  %v4212_v60 = vld [vmem:[%s6490_s1 + $0x1b4] ss:$24 sps:$4 sm:$0xff]   ;;  %v4216_v62 = vld [vmem:[%s6490_s1 + $0x1b0] ss:$24 sps:$4 sm:$0xff]  }
  0x15   :  { %2988 = vmatprep.subr.bf16.mxu1 %v4160_v21  ;;  %2969 = vmatprep.mubr.bf16.mxu0 %v5024_v47  ;;  %v4211_v59 = vld [vmem:[%s6490_s1 + $0x4e0] ss:$24 sps:$4 sm:$0xff]   ;;  %v4214_v61 = vld [vmem:[%s6490_s1 + $0x4b4] ss:$24 sps:$4 sm:$0xff]   ;;  %v4217_v63 = vld [vmem:[%s6490_s1 + $0x4b0] ss:$24 sps:$4 sm:$0xff]  }
  0x16   :  { %3010 = vmatprep.mubr.bf16.mxu1 %v5035_v51  ;;  %v4218_v0 = vld [vmem:[%s6490_s1 + $0x184] ss:$24 sps:$4 sm:$0xff]   ;;  %v4222_v2 = vld [vmem:[%s6490_s1 + $0x180] ss:$24 sps:$4 sm:$0xff]   ;;  %v4230_v4 = vld [vmem:[%s6490_s1 + $0x754] ss:$24 sps:$4 sm:$0xff]  }
  0x17   :  { %2948 = vmatpush1.bf16.msra.mxu0 %v4162_v22  ;;  %v4220_v1 = vld [vmem:[%s6490_s1 + $0x484] ss:$24 sps:$4 sm:$0xff]   ;;  %v4223_v3 = vld [vmem:[%s6490_s1 + $0x480] ss:$24 sps:$4 sm:$0xff]   ;;  %v4233_v5 = vld [vmem:[%s6490_s1 + $0xa54] ss:$24 sps:$4 sm:$0xff]  }
  0x18   :  { %2989 = vmatpush1.bf16.msra.mxu1 %v4163_v23  ;;  %2949 = vmatprep.subr.bf16.mxu0 %v4164_v24  ;;  %v4228_v8 = vld [vmem:[%s6490_s1 + $0x750] ss:$24 sps:$4 sm:$0xff]   ;;  %v4236_v10 = vld [vmem:[%s6490_s1 + $0x724] ss:$24 sps:$4 sm:$0xff]   ;;  %v4234_v12 = vld [vmem:[%s6490_s1 + $0x720] ss:$24 sps:$4 sm:$0xff]  }
  0x19   :  { %2990 = vmatprep.subr.bf16.mxu1 %v4166_v25  ;;  %v4231_v9 = vld [vmem:[%s6490_s1 + $0xa50] ss:$24 sps:$4 sm:$0xff]   ;;  %v4239_v11 = vld [vmem:[%s6490_s1 + $0xa24] ss:$24 sps:$4 sm:$0xff]   ;;  %v4237_v13 = vld [vmem:[%s6490_s1 + $0xa20] ss:$24 sps:$4 sm:$0xff]  }
  0x1a   :  { %v4242_v14 = vld [vmem:[%s6490_s1 + $0x6f4] ss:$24 sps:$4 sm:$0xff]   ;;  %v4240_v16 = vld [vmem:[%s6490_s1 + $0x6f0] ss:$24 sps:$4 sm:$0xff]   ;;  %v4248_v18 = vld [vmem:[%s6490_s1 + $0x6c4] ss:$24 sps:$4 sm:$0xff]  }
  0x1b   :  { %2950 = vmatpush1.bf16.msra.mxu0 %v4168_v26  ;;  %v4245_v15 = vld [vmem:[%s6490_s1 + $0x9f4] ss:$24 sps:$4 sm:$0xff]   ;;  %v4243_v17 = vld [vmem:[%s6490_s1 + $0x9f0] ss:$24 sps:$4 sm:$0xff]   ;;  %v4251_v19 = vld [vmem:[%s6490_s1 + $0x9c4] ss:$24 sps:$4 sm:$0xff]  }
  0x1c   :  { %2991 = vmatpush1.bf16.msra.mxu1 %v4169_v27  ;;  %2951 = vmatprep.subr.bf16.mxu0 %v4170_v28  ;;  %v4246_v20 = vld [vmem:[%s6490_s1 + $0x6c0] ss:$24 sps:$4 sm:$0xff]   ;;  %v4254_v22 = vld [vmem:[%s6490_s1 + $0x694] ss:$24 sps:$4 sm:$0xff]   ;;  %v4252_v24 = vld [vmem:[%s6490_s1 + $0x690] ss:$24 sps:$4 sm:$0xff]  }
  0x1d   :  { %2992 = vmatprep.subr.bf16.mxu1 %v4172_v29  ;;  %v4249_v21 = vld [vmem:[%s6490_s1 + $0x9c0] ss:$24 sps:$4 sm:$0xff]   ;;  %v4257_v23 = vld [vmem:[%s6490_s1 + $0x994] ss:$24 sps:$4 sm:$0xff]   ;;  %v4255_v25 = vld [vmem:[%s6490_s1 + $0x990] ss:$24 sps:$4 sm:$0xff]  }
  0x1e   :  { %v4260_v26 = vld [vmem:[%s6490_s1 + $0x664] ss:$24 sps:$4 sm:$0xff]   ;;  %v4258_v28 = vld [vmem:[%s6490_s1 + $0x660] ss:$24 sps:$4 sm:$0xff]  }
  0x1f   :  { %2952 = vmatpush1.bf16.msra.mxu0 %v4174_v30  ;;  %v4263_v27 = vld [vmem:[%s6490_s1 + $0x964] ss:$24 sps:$4 sm:$0xff]   ;;  %v4261_v29 = vld [vmem:[%s6490_s1 + $0x960] ss:$24 sps:$4 sm:$0xff]   ;;  %v4266_v30 = vld [vmem:[%s6490_s1 + $0x634] ss:$24 sps:$4 sm:$0xff]  }
  0x20   :  { %2993 = vmatpush1.bf16.msra.mxu1 %v4175_v31  ;;  %2953 = vmatprep.subr.bf16.mxu0 %v4176_v32  ;;  %v4269_v31 = vld [vmem:[%s6490_s1 + $0x934] ss:$24 sps:$4 sm:$0xff]   ;;  %v4284_v46 = vld [vmem:[%s6490_s1 + $0x8a4] ss:$24 sps:$4 sm:$0xff]  }
  0x21   :  { %2994 = vmatprep.subr.bf16.mxu1 %v4178_v33  ;;  %v5174_v32 = vld [vmem:[%s6491_s0 + $0x10] sm:$0xff]  ;;  %v5179_v33 = vld [vmem:[%s6491_s0 + $0x18] sm:$0xff] }
  0x22   :  { %v4287_v48 = vld [vmem:[%s6490_s1 + $0xba4] ss:$24 sps:$4 sm:$0xff]  }
  0x23   :  { %2954 = vmatpush2.bf16.msra.mxu0 %v4180_v34  ;;  %v4264_v34 = vld [vmem:[%s6490_s1 + $0x630] ss:$24 sps:$4 sm:$0xff]  }
  0x24   :  { %2995 = vmatpush2.bf16.msra.mxu1 %v4181_v35  ;;  %2955 = vmatprep.subr.bf16.mxu0 %v4182_v36  ;;  %v4267_v35 = vld [vmem:[%s6490_s1 + $0x930] ss:$24 sps:$4 sm:$0xff]   ;;  %v5189_v36 = vcombine.high %v5174_v32, %v5174_v32 }
  0x25   :  { %2996 = vmatprep.subr.bf16.mxu1 %v4184_v37  ;;  %v5193_v37 = vcombine.high %v5179_v33, %v5179_v33 }
  0x27   :  { %2956 = vmatpush2.bf16.msra.mxu0 %v4186_v38  ;;  %v4272_v38 = vld [vmem:[%s6490_s1 + $0x604] ss:$24 sps:$4 sm:$0xff]  }
  0x28   :  { %2997 = vmatpush2.bf16.msra.mxu1 %v4187_v39  ;;  %2957 = vmatprep.subr.bf16.mxu0 %v4188_v40  ;;  %v4275_v39 = vld [vmem:[%s6490_s1 + $0x904] ss:$24 sps:$4 sm:$0xff]   ;;  %v4270_v40 = vld [vmem:[%s6490_s1 + $0x600] ss:$24 sps:$4 sm:$0xff]  }
  0x29   :  { %2998 = vmatprep.subr.bf16.mxu1 %v4190_v41  ;;  %v4273_v41 = vld [vmem:[%s6490_s1 + $0x900] ss:$24 sps:$4 sm:$0xff]  }
  0x2b   :  { %2958 = vmatpush2.bf16.msra.mxu0 %v4192_v42  ;;  %v4278_v42 = vld [vmem:[%s6490_s1 + $0x8d4] ss:$24 sps:$4 sm:$0xff]  }
  0x2c   :  { %2999 = vmatpush2.bf16.msra.mxu1 %v4193_v43  ;;  %2959 = vmatprep.subr.bf16.mxu0 %v4194_v44  ;;  %v4281_v43 = vld [vmem:[%s6490_s1 + $0xbd4] ss:$24 sps:$4 sm:$0xff]   ;;  %v4276_v44 = vld [vmem:[%s6490_s1 + $0x8d0] ss:$24 sps:$4 sm:$0xff]  }
  0x2d   :  { %3000 = vmatprep.subr.bf16.mxu1 %v4196_v45  ;;  %v4279_v45 = vld [vmem:[%s6490_s1 + $0xbd0] ss:$24 sps:$4 sm:$0xff]  }
  0x2f   :  { %2960 = vmatpush2.bf16.msra.mxu0 %v4198_v49  ;;  %v4282_v49 = vld [vmem:[%s6490_s1 + $0x8a0] ss:$24 sps:$4 sm:$0xff]  }
  0x30   :  { %3001 = vmatpush2.bf16.msra.mxu1 %v4199_v50  ;;  %2961 = vmatprep.subr.bf16.mxu0 %v4200_v52  ;;  %v4285_v50 = vld [vmem:[%s6490_s1 + $0xba0] ss:$24 sps:$4 sm:$0xff]   ;;  %v4290_v52 = vld [vmem:[%s6490_s1 + $0x874] ss:$24 sps:$4 sm:$0xff]  }
  0x31   :  { %3002 = vmatprep.subr.bf16.mxu1 %v4202_v53  ;;  %v4293_v53 = vld [vmem:[%s6490_s1 + $0xb74] ss:$24 sps:$4 sm:$0xff]  }
  0x33   :  { %2962 = vmatpush2.bf16.msra.mxu0 %v4204_v54  ;;  %v4288_v54 = vld [vmem:[%s6490_s1 + $0x870] ss:$24 sps:$4 sm:$0xff]  }
  0x34   :  { %3003 = vmatpush2.bf16.msra.mxu1 %v4205_v55  ;;  %2963 = vmatprep.subr.bf16.mxu0 %v4206_v56  ;;  %v4291_v55 = vld [vmem:[%s6490_s1 + $0xb70] ss:$24 sps:$4 sm:$0xff]   ;;  %v4296_v56 = vld [vmem:[%s6490_s1 + $0x844] ss:$24 sps:$4 sm:$0xff]  }
  0x35   :  { %3004 = vmatprep.subr.bf16.mxu1 %v4208_v57  ;;  %v4299_v57 = vld [vmem:[%s6490_s1 + $0xb44] ss:$24 sps:$4 sm:$0xff]  }
  0x37   :  { %2964 = vmatpush2.bf16.msra.mxu0 %v4210_v58  ;;  %v4294_v58 = vld [vmem:[%s6490_s1 + $0x840] ss:$24 sps:$4 sm:$0xff]  }
  0x38   :  { %3005 = vmatpush2.bf16.msra.mxu1 %v4211_v59  ;;  %2965 = vmatprep.subr.bf16.mxu0 %v4212_v60  ;;  %v4297_v59 = vld [vmem:[%s6490_s1 + $0xb40] ss:$24 sps:$4 sm:$0xff]   ;;  %v4302_v60 = vld [vmem:[%s6490_s1 + $0x814] ss:$24 sps:$4 sm:$0xff]  }
  0x39   :  { %3006 = vmatprep.subr.bf16.mxu1 %v4214_v61  ;;  %v4305_v61 = vld [vmem:[%s6490_s1 + $0xb14] ss:$24 sps:$4 sm:$0xff]  }
  0x3b   :  { %2966 = vmatpush2.bf16.msra.mxu0 %v4216_v62  ;;  %v4300_v62 = vld [vmem:[%s6490_s1 + $0x810] ss:$24 sps:$4 sm:$0xff]  }
  0x3c   :  { %3007 = vmatpush2.bf16.msra.mxu1 %v4217_v63  ;;  %2967 = vmatprep.subr.bf16.mxu0 %v4218_v0  ;;  %v4303_v63 = vld [vmem:[%s6490_s1 + $0xb10] ss:$24 sps:$4 sm:$0xff]   ;;  %v4308_v0 = vld [vmem:[%s6490_s1 + $0x7e4] ss:$24 sps:$4 sm:$0xff]  }
  0x3d   :  { %3008 = vmatprep.subr.bf16.mxu1 %v4220_v1  ;;  %v4311_v1 = vld [vmem:[%s6490_s1 + $0xae4] ss:$24 sps:$4 sm:$0xff]  }
  0x3f   :  { %2968 = vmatpush2.bf16.msra.mxu0 %v4222_v2  ;;  %v4306_v2 = vld [vmem:[%s6490_s1 + $0x7e0] ss:$24 sps:$4 sm:$0xff]  }
  0x40   :  { %3009 = vmatpush2.bf16.msra.mxu1 %v4223_v3  ;;  %3019 = vmatprep.subr.bf16.mxu0 %v4230_v4  ;;  %v4309_v3 = vld [vmem:[%s6490_s1 + $0xae0] ss:$24 sps:$4 sm:$0xff]   ;;  %v4314_v4 = vld [vmem:[%s6490_s1 + $0x7b4] ss:$24 sps:$4 sm:$0xff]  }
  0x41   :  { %3060 = vmatprep.subr.bf16.mxu1 %v4233_v5  ;;  %v4317_v5 = vld [vmem:[%s6490_s1 + $0xab4] ss:$24 sps:$4 sm:$0xff]  }
  0x42   :  { %2970 = vmatmul.mubr.bf16.vlgmr.msra.gmra.mxu0 %v5093_v6 }
  0x43   :  { %3011 = vmatmul.mubr.bf16.vlgmr.msra.gmra.mxu1 %v5095_v7  ;;  %3020 = vmatpush1.bf16.msra.mxu0 %v4228_v8  ;;  %v4312_v8 = vld [vmem:[%s6490_s1 + $0x7b0] ss:$24 sps:$4 sm:$0xff]  }
  0x44   :  { %3061 = vmatpush1.bf16.msra.mxu1 %v4231_v9  ;;  %3021 = vmatprep.subr.bf16.mxu0 %v4236_v10  ;;  %v4315_v9 = vld [vmem:[%s6490_s1 + $0xab0] ss:$24 sps:$4 sm:$0xff]   ;;  %v4320_v10 = vld [vmem:[%s6490_s1 + $0x784] ss:$24 sps:$4 sm:$0xff]  }
  0x45   :  { %3062 = vmatprep.subr.bf16.mxu1 %v4239_v11  ;;  %3051 = vmatprep.mubr.bf16.mxu0 %v5189_v36  ;;  %v4323_v11 = vld [vmem:[%s6490_s1 + $0xa84] ss:$24 sps:$4 sm:$0xff]  }
  0x46   :  { %3092 = vmatprep.mubr.bf16.mxu1 %v5193_v37 }
  0x47   :  { %3022 = vmatpush1.bf16.msra.mxu0 %v4234_v12  ;;  %v4318_v12 = vld [vmem:[%s6490_s1 + $0x780] ss:$24 sps:$4 sm:$0xff]  }
  0x48   :  { %3063 = vmatpush1.bf16.msra.mxu1 %v4237_v13  ;;  %3023 = vmatprep.subr.bf16.mxu0 %v4242_v14  ;;  %v4321_v13 = vld [vmem:[%s6490_s1 + $0xa80] ss:$24 sps:$4 sm:$0xff]   ;;  %v4330_v14 = vld [vmem:[%s6490_s1 + $0xd54] ss:$24 sps:$4 sm:$0xff]  }
  0x49   :  { %3064 = vmatprep.subr.bf16.mxu1 %v4245_v15  ;;  %v4333_v15 = vld [vmem:[%s6490_s1 + $0x15c] ss:$24 sps:$4 sm:$0xff]  }
  0x4b   :  { %3024 = vmatpush1.bf16.msra.mxu0 %v4240_v16  ;;  %v5313_v16 = vcombine.low %v5174_v32, %v5174_v32  ;;  %v4346_v32 = vld [vmem:[%s6490_s1 + $0xcc0] ss:$24 sps:$4 sm:$0xff]  }
  0x4c   :  { %3065 = vmatpush1.bf16.msra.mxu1 %v4243_v17  ;;  %3025 = vmatprep.subr.bf16.mxu0 %v4248_v18  ;;  %v5317_v17 = vcombine.low %v5179_v33, %v5179_v33  ;;  %v4328_v18 = vld [vmem:[%s6490_s1 + $0xd50] ss:$24 sps:$4 sm:$0xff]  }
  0x4d   :  { %3066 = vmatprep.subr.bf16.mxu1 %v4251_v19  ;;  %v4331_v19 = vld [vmem:[%s6490_s1 + $0x158] ss:$24 sps:$4 sm:$0xff]   ;;  %v4349_v33 = vld [vmem:[%s6490_s1 + $0xc8] ss:$24 sps:$4 sm:$0xff]  }
  0x4f   :  { %3026 = vmatpush1.bf16.msra.mxu0 %v4246_v20  ;;  %v4336_v20 = vld [vmem:[%s6490_s1 + $0xd24] ss:$24 sps:$4 sm:$0xff]  }
  0x50   :  { %3067 = vmatpush1.bf16.msra.mxu1 %v4249_v21  ;;  %3027 = vmatprep.subr.bf16.mxu0 %v4254_v22  ;;  %v4339_v21 = vld [vmem:[%s6490_s1 + $0x12c] ss:$24 sps:$4 sm:$0xff]  }
  0x51   :  { %3068 = vmatprep.subr.bf16.mxu1 %v4257_v23  ;;  %v5334_v22 = vld [vmem:[%s6491_s0 + $0x20] sm:$0xff] }
  0x52   :  { %v5338_v23 = vcombine.high %v5334_v22, %v5334_v22 }
  0x53   :  { %3028 = vmatpush1.bf16.msra.mxu0 %v4252_v24  ;;  %v4334_v24 = vld [vmem:[%s6490_s1 + $0xd20] ss:$24 sps:$4 sm:$0xff]  }
  0x54   :  { %3069 = vmatpush1.bf16.msra.mxu1 %v4255_v25  ;;  %3029 = vmatprep.subr.bf16.mxu0 %v4260_v26  ;;  %v4337_v25 = vld [vmem:[%s6490_s1 + $0x128] ss:$24 sps:$4 sm:$0xff]   ;;  %v4342_v26 = vld [vmem:[%s6490_s1 + $0xcf4] ss:$24 sps:$4 sm:$0xff]  }
  0x55   :  { %3070 = vmatprep.subr.bf16.mxu1 %v4263_v27  ;;  %v4345_v27 = vld [vmem:[%s6490_s1 + $0xfc] ss:$24 sps:$4 sm:$0xff]  }
  0x57   :  { %3030 = vmatpush1.bf16.msra.mxu0 %v4258_v28  ;;  %v4340_v28 = vld [vmem:[%s6490_s1 + $0xcf0] ss:$24 sps:$4 sm:$0xff]  }
  0x58   :  { %3071 = vmatpush1.bf16.msra.mxu1 %v4261_v29  ;;  %3031 = vmatprep.subr.bf16.mxu0 %v4266_v30  ;;  %v4343_v29 = vld [vmem:[%s6490_s1 + $0xf8] ss:$24 sps:$4 sm:$0xff]   ;;  %v4348_v30 = vld [vmem:[%s6490_s1 + $0xcc4] ss:$24 sps:$4 sm:$0xff]  }
  0x59   :  { %3072 = vmatprep.subr.bf16.mxu1 %v4269_v31  ;;  %v4351_v31 = vld [vmem:[%s6490_s1 + $0xcc] ss:$24 sps:$4 sm:$0xff]  }
  0x5b   :  { %3032 = vmatpush1.bf16.msra.mxu0 %v4264_v34  ;;  %v4354_v34 = vld [vmem:[%s6490_s1 + $0xc94] ss:$24 sps:$4 sm:$0xff]  }
  0x5c   :  { %3073 = vmatpush1.bf16.msra.mxu1 %v4267_v35  ;;  %3033 = vmatprep.subr.bf16.mxu0 %v4272_v38  ;;  %v4357_v35 = vld [vmem:[%s6490_s1 + $0x9c] ss:$24 sps:$4 sm:$0xff]   ;;  %v4352_v38 = vld [vmem:[%s6490_s1 + $0xc90] ss:$24 sps:$4 sm:$0xff]  }
  0x5d   :  { %3074 = vmatprep.subr.bf16.mxu1 %v4275_v39  ;;  %v4355_v39 = vld [vmem:[%s6490_s1 + $0x98] ss:$24 sps:$4 sm:$0xff]  }
  0x5f   :  { %3034 = vmatpush1.bf16.msra.mxu0 %v4270_v40  ;;  %v4360_v40 = vld [vmem:[%s6490_s1 + $0xc64] ss:$24 sps:$4 sm:$0xff]  }
  0x60   :  { %3075 = vmatpush1.bf16.msra.mxu1 %v4273_v41  ;;  %3035 = vmatprep.subr.bf16.mxu0 %v4278_v42  ;;  %v4363_v41 = vld [vmem:[%s6490_s1 + $0x6c] ss:$24 sps:$4 sm:$0xff]   ;;  %v4358_v42 = vld [vmem:[%s6490_s1 + $0xc60] ss:$24 sps:$4 sm:$0xff]  }
  0x61   :  { %3076 = vmatprep.subr.bf16.mxu1 %v4281_v43  ;;  %v4361_v43 = vld [vmem:[%s6490_s1 + $0x68] ss:$24 sps:$4 sm:$0xff]  }
  0x63   :  { %3036 = vmatpush2.bf16.msra.mxu0 %v4276_v44  ;;  %v4366_v44 = vld [vmem:[%s6490_s1 + $0xc34] ss:$24 sps:$4 sm:$0xff]  }
  0x64   :  { %3077 = vmatpush2.bf16.msra.mxu1 %v4279_v45  ;;  %3037 = vmatprep.subr.bf16.mxu0 %v4284_v46  ;;  %v4369_v45 = vld [vmem:[%s6490_s1 + $0x3c] ss:$24 sps:$4 sm:$0xff]   ;;  %v4364_v46 = vld [vmem:[%s6490_s1 + $0xc30] ss:$24 sps:$4 sm:$0xff]  }
  0x65   :  { %3078 = vmatprep.subr.bf16.mxu1 %v4287_v48  ;;  %v4367_v48 = vld [vmem:[%s6490_s1 + $0x38] ss:$24 sps:$4 sm:$0xff]  }
  0x67   :  { %3038 = vmatpush2.bf16.msra.mxu0 %v4282_v49  ;;  %v4372_v49 = vld [vmem:[%s6490_s1 + $0xc04] ss:$24 sps:$4 sm:$0xff]  }
  0x68   :  { %3079 = vmatpush2.bf16.msra.mxu1 %v4285_v50  ;;  %3039 = vmatprep.subr.bf16.mxu0 %v4290_v52  ;;  %v4375_v50 = vld [vmem:[%s6490_s1 + $0xc] ss:$24 sps:$4 sm:$0xff]   ;;  %v4370_v52 = vld [vmem:[%s6490_s1 + $0xc00] ss:$24 sps:$4 sm:$0xff]  }
  0x69   :  { %3080 = vmatprep.subr.bf16.mxu1 %v4293_v53  ;;  %v4373_v53 = vld [vmem:[%s6490_s1 + $0x8] ss:$24 sps:$4 sm:$0xff]  }
  0x6b   :  { %3040 = vmatpush2.bf16.msra.mxu0 %v4288_v54  ;;  %v4378_v54 = vld [vmem:[%s6490_s1 + $0xed4] ss:$24 sps:$4 sm:$0xff]  }
  0x6c   :  { %3081 = vmatpush2.bf16.msra.mxu1 %v4291_v55  ;;  %3041 = vmatprep.subr.bf16.mxu0 %v4296_v56  ;;  %v4381_v55 = vld [vmem:[%s6490_s1 + $0x2dc] ss:$24 sps:$4 sm:$0xff]   ;;  %v4376_v56 = vld [vmem:[%s6490_s1 + $0xed0] ss:$24 sps:$4 sm:$0xff]  }
  0x6d   :  { %3082 = vmatprep.subr.bf16.mxu1 %v4299_v57  ;;  %v4379_v57 = vld [vmem:[%s6490_s1 + $0x2d8] ss:$24 sps:$4 sm:$0xff]  }
  0x6f   :  { %3042 = vmatpush2.bf16.msra.mxu0 %v4294_v58  ;;  %v4384_v58 = vld [vmem:[%s6490_s1 + $0xea4] ss:$24 sps:$4 sm:$0xff]  }
  0x70   :  { %3083 = vmatpush2.bf16.msra.mxu1 %v4297_v59  ;;  %3043 = vmatprep.subr.bf16.mxu0 %v4302_v60  ;;  %v4387_v59 = vld [vmem:[%s6490_s1 + $0x2ac] ss:$24 sps:$4 sm:$0xff]   ;;  %v4382_v60 = vld [vmem:[%s6490_s1 + $0xea0] ss:$24 sps:$4 sm:$0xff]  }
  0x71   :  { %3084 = vmatprep.subr.bf16.mxu1 %v4305_v61  ;;  %v4385_v61 = vld [vmem:[%s6490_s1 + $0x2a8] ss:$24 sps:$4 sm:$0xff]  }
  0x73   :  { %3044 = vmatpush2.bf16.msra.mxu0 %v4300_v62  ;;  %v4390_v62 = vld [vmem:[%s6490_s1 + $0xe74] ss:$24 sps:$4 sm:$0xff]  }
  0x74   :  { %3085 = vmatpush2.bf16.msra.mxu1 %v4303_v63  ;;  %3045 = vmatprep.subr.bf16.mxu0 %v4308_v0  ;;  %v4393_v63 = vld [vmem:[%s6490_s1 + $0x27c] ss:$24 sps:$4 sm:$0xff]   ;;  %v4388_v0 = vld [vmem:[%s6490_s1 + $0xe70] ss:$24 sps:$4 sm:$0xff]  }
  0x75   :  { %3086 = vmatprep.subr.bf16.mxu1 %v4311_v1  ;;  %v4391_v1 = vld [vmem:[%s6490_s1 + $0x278] ss:$24 sps:$4 sm:$0xff]  }
  0x77   :  { %3046 = vmatpush2.bf16.msra.mxu0 %v4306_v2  ;;  %v4396_v2 = vld [vmem:[%s6490_s1 + $0xe44] ss:$24 sps:$4 sm:$0xff]  }
  0x78   :  { %3087 = vmatpush2.bf16.msra.mxu1 %v4309_v3  ;;  %3047 = vmatprep.subr.bf16.mxu0 %v4314_v4  ;;  %v4399_v3 = vld [vmem:[%s6490_s1 + $0x24c] ss:$24 sps:$4 sm:$0xff]   ;;  %v4394_v4 = vld [vmem:[%s6490_s1 + $0xe40] ss:$24 sps:$4 sm:$0xff]  }
  0x79   :  { %3088 = vmatprep.subr.bf16.mxu1 %v4317_v5  ;;  %v4397_v5 = vld [vmem:[%s6490_s1 + $0x248] ss:$24 sps:$4 sm:$0xff]  }
  0x7b   :  { %3048 = vmatpush2.bf16.msra.mxu0 %v4312_v8  ;;  %v4402_v8 = vld [vmem:[%s6490_s1 + $0xe14] ss:$24 sps:$4 sm:$0xff]  }
  0x7c   :  { %3089 = vmatpush2.bf16.msra.mxu1 %v4315_v9  ;;  %3049 = vmatprep.subr.bf16.mxu0 %v4320_v10  ;;  %v4405_v9 = vld [vmem:[%s6490_s1 + $0x21c] ss:$24 sps:$4 sm:$0xff]   ;;  %v4400_v10 = vld [vmem:[%s6490_s1 + $0xe10] ss:$24 sps:$4 sm:$0xff]  }
  0x7d   :  { %3090 = vmatprep.subr.bf16.mxu1 %v4323_v11  ;;  %v4403_v11 = vld [vmem:[%s6490_s1 + $0x218] ss:$24 sps:$4 sm:$0xff]  }
  0x7f   :  { %3050 = vmatpush2.bf16.msra.mxu0 %v4318_v12  ;;  %v4408_v12 = vld [vmem:[%s6490_s1 + $0xde4] ss:$24 sps:$4 sm:$0xff]  }
  0x80   :  { %3091 = vmatpush2.bf16.msra.mxu1 %v4321_v13  ;;  %3101 = vmatprep.subr.bf16.mxu0 %v4330_v14  ;;  %v4411_v13 = vld [vmem:[%s6490_s1 + $0x1ec] ss:$24 sps:$4 sm:$0xff]   ;;  %v4406_v14 = vld [vmem:[%s6490_s1 + $0xde0] ss:$24 sps:$4 sm:$0xff]  }
  0x81   :  { %3142 = vmatprep.subr.bf16.mxu1 %v4333_v15  ;;  %v4409_v15 = vld [vmem:[%s6490_s1 + $0x1e8] ss:$24 sps:$4 sm:$0xff]  }
  0x82   :  { %3052 = vmatmul.mubr.bf16.vlgmr.msra.gmra.mxu0 %v5313_v16 }
  0x83   :  { %3093 = vmatmul.mubr.bf16.vlgmr.msra.gmra.mxu1 %v5317_v17  ;;  %3102 = vmatpush1.bf16.msra.mxu0 %v4328_v18  ;;  %v4414_v18 = vld [vmem:[%s6490_s1 + $0xdb4] ss:$24 sps:$4 sm:$0xff]  }
  0x84   :  { %3143 = vmatpush1.bf16.msra.mxu1 %v4331_v19  ;;  %3103 = vmatprep.subr.bf16.mxu0 %v4336_v20  ;;  %v4417_v19 = vld [vmem:[%s6490_s1 + $0x1bc] ss:$24 sps:$4 sm:$0xff]   ;;  %v4412_v20 = vld [vmem:[%s6490_s1 + $0xdb0] ss:$24 sps:$4 sm:$0xff]  }
  0x85   :  { %3144 = vmatprep.subr.bf16.mxu1 %v4339_v21  ;;  %3133 = vmatprep.mubr.bf16.mxu0 %v5338_v23  ;;  %v4415_v21 = vld [vmem:[%s6490_s1 + $0x1b8] ss:$24 sps:$4 sm:$0xff]  }
  0x86   :  { %3174 = vmatprep.mubr.bf16.mxu1 %v5024_v47 }
  0x87   :  { %3104 = vmatpush1.bf16.msra.mxu0 %v4334_v24  ;;  %v4420_v24 = vld [vmem:[%s6490_s1 + $0xd84] ss:$24 sps:$4 sm:$0xff]  }
  0x88   :  { %3145 = vmatpush1.bf16.msra.mxu1 %v4337_v25  ;;  %3105 = vmatprep.subr.bf16.mxu0 %v4342_v26  ;;  %v4423_v25 = vld [vmem:[%s6490_s1 + $0x18c] ss:$24 sps:$4 sm:$0xff]   ;;  %v4418_v26 = vld [vmem:[%s6490_s1 + $0xd80] ss:$24 sps:$4 sm:$0xff]  }
  0x89   :  { %3146 = vmatprep.subr.bf16.mxu1 %v4345_v27  ;;  %v4421_v27 = vld [vmem:[%s6490_s1 + $0x188] ss:$24 sps:$4 sm:$0xff]  }
  0x8b   :  { %3106 = vmatpush1.bf16.msra.mxu0 %v4340_v28  ;;  %v4428_v28 = vld [vmem:[%s6490_s1 + $0x45c] ss:$24 sps:$4 sm:$0xff]  }
  0x8c   :  { %3147 = vmatpush1.bf16.msra.mxu1 %v4343_v29  ;;  %3107 = vmatprep.subr.bf16.mxu0 %v4348_v30  ;;  %v4431_v29 = vld [vmem:[%s6490_s1 + $0x75c] ss:$24 sps:$4 sm:$0xff]   ;;  %v5526_v30 = vcombine.low %v5334_v22, %v5334_v22  ;;  %v4437_v22 = vld [vmem:[%s6490_s1 + $0x72c] ss:$24 sps:$4 sm:$0xff]  }
  0x8d   :  { %3148 = vmatprep.subr.bf16.mxu1 %v4351_v31  ;;  %v4426_v31 = vld [vmem:[%s6490_s1 + $0x458] ss:$24 sps:$4 sm:$0xff]  }
  0x8f   :  { %3108 = vmatpush1.bf16.msra.mxu0 %v4346_v32  ;;  %v4429_v32 = vld [vmem:[%s6490_s1 + $0x758] ss:$24 sps:$4 sm:$0xff]  }
  0x90   :  { %3149 = vmatpush1.bf16.msra.mxu1 %v4349_v33  ;;  %3109 = vmatprep.subr.bf16.mxu0 %v4354_v34  ;;  %v4434_v33 = vld [vmem:[%s6490_s1 + $0x42c] ss:$24 sps:$4 sm:$0xff]   ;;  %v4432_v34 = vld [vmem:[%s6490_s1 + $0x428] ss:$24 sps:$4 sm:$0xff]  }
  0x91   :  { %3150 = vmatprep.subr.bf16.mxu1 %v4357_v35  ;;  %v4435_v35 = vld [vmem:[%s6490_s1 + $0x728] ss:$24 sps:$4 sm:$0xff]  }
  0x93   :  { %3110 = vmatpush1.bf16.msra.mxu0 %v4352_v38  ;;  %v4440_v38 = vld [vmem:[%s6490_s1 + $0x3fc] ss:$24 sps:$4 sm:$0xff]  }
  0x94   :  { %3151 = vmatpush1.bf16.msra.mxu1 %v4355_v39  ;;  %3111 = vmatprep.subr.bf16.mxu0 %v4360_v40  ;;  %v4443_v39 = vld [vmem:[%s6490_s1 + $0x6fc] ss:$24 sps:$4 sm:$0xff]   ;;  %v4438_v40 = vld [vmem:[%s6490_s1 + $0x3f8] ss:$24 sps:$4 sm:$0xff]  }
  0x95   :  { %3152 = vmatprep.subr.bf16.mxu1 %v4363_v41  ;;  %v4441_v41 = vld [vmem:[%s6490_s1 + $0x6f8] ss:$24 sps:$4 sm:$0xff]  }
  0x97   :  { %3112 = vmatpush1.bf16.msra.mxu0 %v4358_v42  ;;  %v4446_v42 = vld [vmem:[%s6490_s1 + $0x3cc] ss:$24 sps:$4 sm:$0xff]  }
  0x98   :  { %3153 = vmatpush1.bf16.msra.mxu1 %v4361_v43  ;;  %3113 = vmatprep.subr.bf16.mxu0 %v4366_v44  ;;  %v4449_v43 = vld [vmem:[%s6490_s1 + $0x6cc] ss:$24 sps:$4 sm:$0xff]   ;;  %v4444_v44 = vld [vmem:[%s6490_s1 + $0x3c8] ss:$24 sps:$4 sm:$0xff]  }
  0x99   :  { %3154 = vmatprep.subr.bf16.mxu1 %v4369_v45  ;;  %v4447_v45 = vld [vmem:[%s6490_s1 + $0x6c8] ss:$24 sps:$4 sm:$0xff]  }
  0x9b   :  { %3114 = vmatpush1.bf16.msra.mxu0 %v4364_v46  ;;  %v4452_v46 = vld [vmem:[%s6490_s1 + $0x39c] ss:$24 sps:$4 sm:$0xff]  }
  0x9c   :  { %3155 = vmatpush1.bf16.msra.mxu1 %v4367_v48  ;;  %3115 = vmatprep.subr.bf16.mxu0 %v4372_v49  ;;  %v4455_v48 = vld [vmem:[%s6490_s1 + $0x69c] ss:$24 sps:$4 sm:$0xff]   ;;  %v4450_v49 = vld [vmem:[%s6490_s1 + $0x398] ss:$24 sps:$4 sm:$0xff]  }
  0x9d   :  { %3156 = vmatprep.subr.bf16.mxu1 %v4375_v50  ;;  %v4453_v50 = vld [vmem:[%s6490_s1 + $0x698] ss:$24 sps:$4 sm:$0xff]  }
  0x9f   :  { %3116 = vmatpush1.bf16.msra.mxu0 %v4370_v52  ;;  %v4458_v52 = vld [vmem:[%s6490_s1 + $0x36c] ss:$24 sps:$4 sm:$0xff]  }
  0xa0   :  { %3157 = vmatpush1.bf16.msra.mxu1 %v4373_v53  ;;  %3117 = vmatprep.subr.bf16.mxu0 %v4378_v54  ;;  %v4461_v53 = vld [vmem:[%s6490_s1 + $0x66c] ss:$24 sps:$4 sm:$0xff]   ;;  %v4456_v54 = vld [vmem:[%s6490_s1 + $0x368] ss:$24 sps:$4 sm:$0xff]  }
  0xa1   :  { %3158 = vmatprep.subr.bf16.mxu1 %v4381_v55  ;;  %v4459_v55 = vld [vmem:[%s6490_s1 + $0x668] ss:$24 sps:$4 sm:$0xff]  }
  0xa3   :  { %3118 = vmatpush2.bf16.msra.mxu0 %v4376_v56  ;;  %v4464_v56 = vld [vmem:[%s6490_s1 + $0x33c] ss:$24 sps:$4 sm:$0xff]  }
  0xa4   :  { %3159 = vmatpush2.bf16.msra.mxu1 %v4379_v57  ;;  %3119 = vmatprep.subr.bf16.mxu0 %v4384_v58  ;;  %v4467_v57 = vld [vmem:[%s6490_s1 + $0x63c] ss:$24 sps:$4 sm:$0xff]   ;;  %v4462_v58 = vld [vmem:[%s6490_s1 + $0x338] ss:$24 sps:$4 sm:$0xff]  }
  0xa5   :  { %3160 = vmatprep.subr.bf16.mxu1 %v4387_v59  ;;  %v4465_v59 = vld [vmem:[%s6490_s1 + $0x638] ss:$24 sps:$4 sm:$0xff]  }
  0xa7   :  { %3120 = vmatpush2.bf16.msra.mxu0 %v4382_v60  ;;  %v4470_v60 = vld [vmem:[%s6490_s1 + $0x30c] ss:$24 sps:$4 sm:$0xff]  }
  0xa8   :  { %3161 = vmatpush2.bf16.msra.mxu1 %v4385_v61  ;;  %3121 = vmatprep.subr.bf16.mxu0 %v4390_v62  ;;  %v4473_v61 = vld [vmem:[%s6490_s1 + $0x60c] ss:$24 sps:$4 sm:$0xff]   ;;  %v4468_v62 = vld [vmem:[%s6490_s1 + $0x308] ss:$24 sps:$4 sm:$0xff]  }
  0xa9   :  { %3162 = vmatprep.subr.bf16.mxu1 %v4393_v63  ;;  %v4471_v63 = vld [vmem:[%s6490_s1 + $0x608] ss:$24 sps:$4 sm:$0xff]  }
  0xab   :  { %3122 = vmatpush2.bf16.msra.mxu0 %v4388_v0  ;;  %v4476_v0 = vld [vmem:[%s6490_s1 + $0x5dc] ss:$24 sps:$4 sm:$0xff]  }
  0xac   :  { %3163 = vmatpush2.bf16.msra.mxu1 %v4391_v1  ;;  %3123 = vmatprep.subr.bf16.mxu0 %v4396_v2  ;;  %v4479_v1 = vld [vmem:[%s6490_s1 + $0x8dc] ss:$24 sps:$4 sm:$0xff]   ;;  %v4474_v2 = vld [vmem:[%s6490_s1 + $0x5d8] ss:$24 sps:$4 sm:$0xff]  }
  0xad   :  { %3164 = vmatprep.subr.bf16.mxu1 %v4399_v3  ;;  %v4477_v3 = vld [vmem:[%s6490_s1 + $0x8d8] ss:$24 sps:$4 sm:$0xff]  }
  0xaf   :  { %3124 = vmatpush2.bf16.msra.mxu0 %v4394_v4  ;;  %v4482_v4 = vld [vmem:[%s6490_s1 + $0x5ac] ss:$24 sps:$4 sm:$0xff]  }
  0xb0   :  { %3165 = vmatpush2.bf16.msra.mxu1 %v4397_v5  ;;  %3125 = vmatprep.subr.bf16.mxu0 %v4402_v8  ;;  %v4485_v5 = vld [vmem:[%s6490_s1 + $0x8ac] ss:$24 sps:$4 sm:$0xff]   ;;  %v4480_v8 = vld [vmem:[%s6490_s1 + $0x5a8] ss:$24 sps:$4 sm:$0xff]  }
  0xb1   :  { %3166 = vmatprep.subr.bf16.mxu1 %v4405_v9  ;;  %v4483_v9 = vld [vmem:[%s6490_s1 + $0x8a8] ss:$24 sps:$4 sm:$0xff]  }
  0xb3   :  { %3126 = vmatpush2.bf16.msra.mxu0 %v4400_v10  ;;  %v4488_v10 = vld [vmem:[%s6490_s1 + $0x57c] ss:$24 sps:$4 sm:$0xff]  }
  0xb4   :  { %3167 = vmatpush2.bf16.msra.mxu1 %v4403_v11  ;;  %3127 = vmatprep.subr.bf16.mxu0 %v4408_v12  ;;  %v4491_v11 = vld [vmem:[%s6490_s1 + $0x87c] ss:$24 sps:$4 sm:$0xff]   ;;  %v4486_v12 = vld [vmem:[%s6490_s1 + $0x578] ss:$24 sps:$4 sm:$0xff]  }
  0xb5   :  { %3168 = vmatprep.subr.bf16.mxu1 %v4411_v13  ;;  %v4489_v13 = vld [vmem:[%s6490_s1 + $0x878] ss:$24 sps:$4 sm:$0xff]  }
  0xb7   :  { %3128 = vmatpush2.bf16.msra.mxu0 %v4406_v14  ;;  %v4494_v14 = vld [vmem:[%s6490_s1 + $0x54c] ss:$24 sps:$4 sm:$0xff]  }
  0xb8   :  { %3169 = vmatpush2.bf16.msra.mxu1 %v4409_v15  ;;  %3129 = vmatprep.subr.bf16.mxu0 %v4414_v18  ;;  %v4497_v15 = vld [vmem:[%s6490_s1 + $0x84c] ss:$24 sps:$4 sm:$0xff]   ;;  %v4492_v18 = vld [vmem:[%s6490_s1 + $0x548] ss:$24 sps:$4 sm:$0xff]  }
  0xb9   :  { %3170 = vmatprep.subr.bf16.mxu1 %v4417_v19  ;;  %v4495_v19 = vld [vmem:[%s6490_s1 + $0x848] ss:$24 sps:$4 sm:$0xff]  }
  0xbb   :  { %3130 = vmatpush2.bf16.msra.mxu0 %v4412_v20  ;;  %v4500_v20 = vld [vmem:[%s6490_s1 + $0x51c] ss:$24 sps:$4 sm:$0xff]  }
  0xbc   :  { %3171 = vmatpush2.bf16.msra.mxu1 %v4415_v21  ;;  %3131 = vmatprep.subr.bf16.mxu0 %v4420_v24  ;;  %v4503_v21 = vld [vmem:[%s6490_s1 + $0x81c] ss:$24 sps:$4 sm:$0xff]   ;;  %v4498_v24 = vld [vmem:[%s6490_s1 + $0x518] ss:$24 sps:$4 sm:$0xff]  }
  0xbd   :  { %3172 = vmatprep.subr.bf16.mxu1 %v4423_v25  ;;  %v4501_v25 = vld [vmem:[%s6490_s1 + $0x818] ss:$24 sps:$4 sm:$0xff]  }
  0xbf   :  { %3132 = vmatpush2.bf16.msra.mxu0 %v4418_v26  ;;  %v4506_v26 = vld [vmem:[%s6490_s1 + $0x4ec] ss:$24 sps:$4 sm:$0xff]  }
  0xc0   :  { %3173 = vmatpush2.bf16.msra.mxu1 %v4421_v27  ;;  %3183 = vmatprep.subr.bf16.mxu0 %v4428_v28  ;;  %v4509_v27 = vld [vmem:[%s6490_s1 + $0x7ec] ss:$24 sps:$4 sm:$0xff]   ;;  %v4504_v28 = vld [vmem:[%s6490_s1 + $0x4e8] ss:$24 sps:$4 sm:$0xff]  }
  0xc1   :  { %3224 = vmatprep.subr.bf16.mxu1 %v4431_v29  ;;  %v4507_v29 = vld [vmem:[%s6490_s1 + $0x7e8] ss:$24 sps:$4 sm:$0xff]  }
  0xc2   :  { %3134 = vmatmul.mubr.bf16.vlgmr.msra.gmra.mxu0 %v5526_v30 }
  0xc3   :  { %3175 = vmatmul.mubr.bf16.vlgmr.msra.gmra.mxu1 %v5093_v6  ;;  %3184 = vmatpush1.bf16.msra.mxu0 %v4426_v31  ;;  %v4512_v31 = vld [vmem:[%s6490_s1 + $0x4bc] ss:$24 sps:$4 sm:$0xff]  }
  0xc4   :  { %3225 = vmatpush1.bf16.msra.mxu1 %v4429_v32  ;;  %3185 = vmatprep.subr.bf16.mxu0 %v4434_v33  ;;  %v4515_v32 = vld [vmem:[%s6490_s1 + $0x7bc] ss:$24 sps:$4 sm:$0xff]   ;;  %v4510_v33 = vld [vmem:[%s6490_s1 + $0x4b8] ss:$24 sps:$4 sm:$0xff]  }
  0xc5   :  { %3226 = vmatprep.subr.bf16.mxu1 %v4437_v22  ;;  %3215 = vmatprep.mubr.bf16.mxu0 %v5035_v51  ;;  %v4513_v22 = vld [vmem:[%s6490_s1 + $0x7b8] ss:$24 sps:$4 sm:$0xff]  }
  0xc6   :  { %3256 = vmatprep.mubr.bf16.mxu1 %v5189_v36 }
  0xc7   :  { %3186 = vmatpush1.bf16.msra.mxu0 %v4432_v34  ;;  %v4518_v34 = vld [vmem:[%s6490_s1 + $0x48c] ss:$24 sps:$4 sm:$0xff]  }
  0xc8   :  { %3227 = vmatpush1.bf16.msra.mxu1 %v4435_v35  ;;  %3187 = vmatprep.subr.bf16.mxu0 %v4440_v38  ;;  %v4521_v35 = vld [vmem:[%s6490_s1 + $0x78c] ss:$24 sps:$4 sm:$0xff]   ;;  %v4516_v38 = vld [vmem:[%s6490_s1 + $0x488] ss:$24 sps:$4 sm:$0xff]  }
  0xc9   :  { %3228 = vmatprep.subr.bf16.mxu1 %v4443_v39  ;;  %v4519_v39 = vld [vmem:[%s6490_s1 + $0x788] ss:$24 sps:$4 sm:$0xff]  }
  0xcb   :  { %3188 = vmatpush1.bf16.msra.mxu0 %v4438_v40  ;;  %v4524_v40 = vld [vmem:[%s6490_s1 + $0xa5c] ss:$24 sps:$4 sm:$0xff]  }
  0xcc   :  { %3229 = vmatpush1.bf16.msra.mxu1 %v4441_v41  ;;  %3189 = vmatprep.subr.bf16.mxu0 %v4446_v42  ;;  %v4527_v41 = vld [vmem:[%s6490_s1 + $0xd5c] ss:$24 sps:$4 sm:$0xff]   ;;  %v4522_v42 = vld [vmem:[%s6490_s1 + $0xa58] ss:$24 sps:$4 sm:$0xff]  }
  0xcd   :  { %3230 = vmatprep.subr.bf16.mxu1 %v4449_v43  ;;  %v4525_v43 = vld [vmem:[%s6490_s1 + $0xd58] ss:$24 sps:$4 sm:$0xff]  }
  0xcf   :  { %3190 = vmatpush1.bf16.msra.mxu0 %v4444_v44  ;;  %v4530_v44 = vld [vmem:[%s6490_s1 + $0xa2c] ss:$24 sps:$4 sm:$0xff]  }
  0xd0   :  { %3231 = vmatpush1.bf16.msra.mxu1 %v4447_v45  ;;  %3191 = vmatprep.subr.bf16.mxu0 %v4452_v46  ;;  %v4533_v45 = vld [vmem:[%s6490_s1 + $0xd2c] ss:$24 sps:$4 sm:$0xff]  }
  0xd1   :  { %3232 = vmatprep.subr.bf16.mxu1 %v4455_v48 }
  0xd3   :  { %3192 = vmatpush1.bf16.msra.mxu0 %v4450_v49 }
  0xd4   :  { %3233 = vmatpush1.bf16.msra.mxu1 %v4453_v50  ;;  %3193 = vmatprep.subr.bf16.mxu0 %v4458_v52  ;;  %v4528_v50 = vld [vmem:[%s6490_s1 + $0xa28] ss:$24 sps:$4 sm:$0xff]  }
  0xd5   :  { %3234 = vmatprep.subr.bf16.mxu1 %v4461_v53  ;;  %v4531_v52 = vld [vmem:[%s6490_s1 + $0xd28] ss:$24 sps:$4 sm:$0xff]  }
  0xd7   :  { %3194 = vmatpush1.bf16.msra.mxu0 %v4456_v54 }
  0xd8   :  { %3235 = vmatpush1.bf16.msra.mxu1 %v4459_v55  ;;  %3195 = vmatprep.subr.bf16.mxu0 %v4464_v56  ;;  %v4536_v55 = vld [vmem:[%s6490_s1 + $0x9fc] ss:$24 sps:$4 sm:$0xff]  }
  0xd9   :  { %3236 = vmatprep.subr.bf16.mxu1 %v4467_v57  ;;  %v4539_v56 = vld [vmem:[%s6490_s1 + $0xcfc] ss:$24 sps:$4 sm:$0xff]  }
  0xdb   :  { %3196 = vmatpush1.bf16.msra.mxu0 %v4462_v58  ;;  %v4534_v58 = vld [vmem:[%s6490_s1 + $0x9f8] ss:$24 sps:$4 sm:$0xff]  }
  0xdc   :  { %3237 = vmatpush1.bf16.msra.mxu1 %v4465_v59  ;;  %3197 = vmatprep.subr.bf16.mxu0 %v4470_v60  ;;  %v4537_v60 = vld [vmem:[%s6490_s1 + $0xcf8] ss:$24 sps:$4 sm:$0xff]  }
  0xdd   :  { %3238 = vmatprep.subr.bf16.mxu1 %v4473_v61 }
  0xdf   :  { %3198 = vmatpush1.bf16.msra.mxu0 %v4468_v62  ;;  %v4542_v62 = vld [vmem:[%s6490_s1 + $0x9cc] ss:$24 sps:$4 sm:$0xff]  }
  0xe0   :  { %3239 = vmatpush1.bf16.msra.mxu1 %v4471_v63  ;;  %3199 = vmatprep.subr.bf16.mxu0 %v4476_v0  ;;  %v4545_v0 = vld [vmem:[%s6490_s1 + $0xccc] ss:$24 sps:$4 sm:$0xff]  }
  0xe1   :  { %3240 = vmatprep.subr.bf16.mxu1 %v4479_v1 }
  0xe3   :  { %3200 = vmatpush2.bf16.msra.mxu0 %v4474_v2  ;;  %v4540_v2 = vld [vmem:[%s6490_s1 + $0x9c8] ss:$24 sps:$4 sm:$0xff]  }
  0xe4   :  { %3241 = vmatpush2.bf16.msra.mxu1 %v4477_v3  ;;  %3201 = vmatprep.subr.bf16.mxu0 %v4482_v4  ;;  %v4543_v3 = vld [vmem:[%s6490_s1 + $0xcc8] ss:$24 sps:$4 sm:$0xff]   ;;  %v4548_v4 = vld [vmem:[%s6490_s1 + $0x99c] ss:$24 sps:$4 sm:$0xff]  }
  0xe5   :  { %3242 = vmatprep.subr.bf16.mxu1 %v4485_v5  ;;  %v4551_v5 = vld [vmem:[%s6490_s1 + $0xc9c] ss:$24 sps:$4 sm:$0xff]  }
  0xe7   :  { %3202 = vmatpush2.bf16.msra.mxu0 %v4480_v8  ;;  %v4546_v8 = vld [vmem:[%s6490_s1 + $0x998] ss:$24 sps:$4 sm:$0xff]  }
  0xe8   :  { %3243 = vmatpush2.bf16.msra.mxu1 %v4483_v9  ;;  %3203 = vmatprep.subr.bf16.mxu0 %v4488_v10  ;;  %v4549_v9 = vld [vmem:[%s6490_s1 + $0xc98] ss:$24 sps:$4 sm:$0xff]   ;;  %v4554_v10 = vld [vmem:[%s6490_s1 + $0x96c] ss:$24 sps:$4 sm:$0xff]  }
  0xe9   :  { %3244 = vmatprep.subr.bf16.mxu1 %v4491_v11  ;;  %v4557_v11 = vld [vmem:[%s6490_s1 + $0xc6c] ss:$24 sps:$4 sm:$0xff]  }
  0xeb   :  { %3204 = vmatpush2.bf16.msra.mxu0 %v4486_v12  ;;  %v4552_v12 = vld [vmem:[%s6490_s1 + $0x968] ss:$24 sps:$4 sm:$0xff]  }
  0xec   :  { %3245 = vmatpush2.bf16.msra.mxu1 %v4489_v13  ;;  %3205 = vmatprep.subr.bf16.mxu0 %v4494_v14  ;;  %v4555_v13 = vld [vmem:[%s6490_s1 + $0xc68] ss:$24 sps:$4 sm:$0xff]   ;;  %v4560_v14 = vld [vmem:[%s6490_s1 + $0x93c] ss:$24 sps:$4 sm:$0xff]  }
  0xed   :  { %3246 = vmatprep.subr.bf16.mxu1 %v4497_v15  ;;  %v4563_v15 = vld [vmem:[%s6490_s1 + $0xc3c] ss:$24 sps:$4 sm:$0xff]  }
  0xef   :  { %3206 = vmatpush2.bf16.msra.mxu0 %v4492_v18  ;;  %v4558_v18 = vld [vmem:[%s6490_s1 + $0x938] ss:$24 sps:$4 sm:$0xff]  }
  0xf0   :  { %3247 = vmatpush2.bf16.msra.mxu1 %v4495_v19  ;;  %3207 = vmatprep.subr.bf16.mxu0 %v4500_v20  ;;  %v4561_v19 = vld [vmem:[%s6490_s1 + $0xc38] ss:$24 sps:$4 sm:$0xff]   ;;  %v4566_v20 = vld [vmem:[%s6490_s1 + $0x90c] ss:$24 sps:$4 sm:$0xff]  }
  0xf1   :  { %3248 = vmatprep.subr.bf16.mxu1 %v4503_v21  ;;  %v4569_v21 = vld [vmem:[%s6490_s1 + $0xc0c] ss:$24 sps:$4 sm:$0xff]  }
  0xf3   :  { %3208 = vmatpush2.bf16.msra.mxu0 %v4498_v24  ;;  %v4564_v24 = vld [vmem:[%s6490_s1 + $0x908] ss:$24 sps:$4 sm:$0xff]  }
  0xf4   :  { %3249 = vmatpush2.bf16.msra.mxu1 %v4501_v25  ;;  %3209 = vmatprep.subr.bf16.mxu0 %v4506_v26  ;;  %v4567_v25 = vld [vmem:[%s6490_s1 + $0xc08] ss:$24 sps:$4 sm:$0xff]   ;;  %v4572_v26 = vld [vmem:[%s6490_s1 + $0xbdc] ss:$24 sps:$4 sm:$0xff]  }
  0xf5   :  { %3250 = vmatprep.subr.bf16.mxu1 %v4509_v27  ;;  %v4575_v27 = vld [vmem:[%s6490_s1 + $0xedc] ss:$24 sps:$4 sm:$0xff]  }
  0xf7   :  { %3210 = vmatpush2.bf16.msra.mxu0 %v4504_v28  ;;  %v4570_v28 = vld [vmem:[%s6490_s1 + $0xbd8] ss:$24 sps:$4 sm:$0xff]  }
  0xf8   :  { %3251 = vmatpush2.bf16.msra.mxu1 %v4507_v29  ;;  %3211 = vmatprep.subr.bf16.mxu0 %v4512_v31  ;;  %v4573_v29 = vld [vmem:[%s6490_s1 + $0xed8] ss:$24 sps:$4 sm:$0xff]   ;;  %v4578_v31 = vld [vmem:[%s6490_s1 + $0xbac] ss:$24 sps:$4 sm:$0xff]  }
  0xf9   :  { %3252 = vmatprep.subr.bf16.mxu1 %v4515_v32  ;;  %v4581_v32 = vld [vmem:[%s6490_s1 + $0xeac] ss:$24 sps:$4 sm:$0xff]  }
  0xfb   :  { %3212 = vmatpush2.bf16.msra.mxu0 %v4510_v33  ;;  %v4576_v33 = vld [vmem:[%s6490_s1 + $0xba8] ss:$24 sps:$4 sm:$0xff]  }
  0xfc   :  { %3253 = vmatpush2.bf16.msra.mxu1 %v4513_v22  ;;  %3213 = vmatprep.subr.bf16.mxu0 %v4518_v34  ;;  %v4579_v22 = vld [vmem:[%s6490_s1 + $0xea8] ss:$24 sps:$4 sm:$0xff]   ;;  %v4584_v34 = vld [vmem:[%s6490_s1 + $0xb7c] ss:$24 sps:$4 sm:$0xff]  }
  0xfd   :  { %3254 = vmatprep.subr.bf16.mxu1 %v4521_v35  ;;  %v4587_v35 = vld [vmem:[%s6490_s1 + $0xe7c] ss:$24 sps:$4 sm:$0xff]  }
  0xff   :  { %3214 = vmatpush2.bf16.msra.mxu0 %v4516_v38  ;;  %v4582_v38 = vld [vmem:[%s6490_s1 + $0xb78] ss:$24 sps:$4 sm:$0xff]  }
 0x100   :  { %3255 = vmatpush2.bf16.msra.mxu1 %v4519_v39  ;;  %3265 = vmatprep.subr.bf16.mxu0 %v4524_v40  ;;  %v4585_v39 = vld [vmem:[%s6490_s1 + $0xe78] ss:$24 sps:$4 sm:$0xff]   ;;  %v4590_v40 = vld [vmem:[%s6490_s1 + $0xb4c] ss:$24 sps:$4 sm:$0xff]  }
 0x101   :  { %3306 = vmatprep.subr.bf16.mxu1 %v4527_v41  ;;  %v4593_v41 = vld [vmem:[%s6490_s1 + $0xe4c] ss:$24 sps:$4 sm:$0xff]  }
 0x102   :  { %v2971_v46 = vpop.f32.mrf.mxu0  ;;  %3216 = vmatmul.mubr.bf16.vlgmr.msra.gmra.mxu0 %v5095_v7 }
 0x103   :  { %v3012_v48 = vpop.f32.mrf.mxu1  ;;  %3257 = vmatmul.mubr.bf16.vlgmr.msra.gmra.mxu1 %v5313_v16  ;;  %3266 = vmatpush1.bf16.msra.mxu0 %v4522_v42  ;;  %v4588_v42 = vld [vmem:[%s6490_s1 + $0xb48] ss:$24 sps:$4 sm:$0xff]  }
 0x104   :  { %v5738_v49 = vadd.f32 %v3012_v48, %v2971_v46  ;;  %3307 = vmatpush1.bf16.msra.mxu1 %v4525_v43  ;;  %v2973_v53 = vpop.f32.mrf.mxu0  ;;  %3267 = vmatprep.subr.bf16.mxu0 %v4530_v44  ;;  %v4591_v43 = vld [vmem:[%s6490_s1 + $0xe48] ss:$24 sps:$4 sm:$0xff]   ;;  %v4596_v44 = vld [vmem:[%s6490_s1 + $0xb1c] ss:$24 sps:$4 sm:$0xff]   ;;  %v4594_v46 = vld [vmem:[%s6490_s1 + $0xb18] ss:$24 sps:$4 sm:$0xff]  }
 0x105   :  { %v3014_v54 = vpop.f32.mrf.mxu1  ;;  %3308 = vmatprep.subr.bf16.mxu1 %v4533_v45  ;;  %3297 = vmatprep.mubr.bf16.mxu0 %v5193_v37  ;;  %v4599_v45 = vld [vmem:[%s6490_s1 + $0xe1c] ss:$24 sps:$4 sm:$0xff]   ;;  %v4597_v48 = vld [vmem:[%s6490_s1 + $0xe18] ss:$24 sps:$4 sm:$0xff]  }
 0x106   :  { %v5752_v57 = vadd.f32 %v3014_v54, %v2973_v53  ;;  %3338 = vmatprep.mubr.bf16.mxu1 %v5338_v23  ;;  %v2975_v59 = vpop.f32.mrf.mxu0  ;;  %v4600_v53 = vld [vmem:[%s6490_s1 + $0xae8] ss:$24 sps:$4 sm:$0xff]  }
 0x107   :  { %v3016_v61 = vpop.f32.mrf.mxu1  ;;  %3268 = vmatpush1.bf16.msra.mxu0 %v4528_v50  ;;  %v4602_v50 = vld [vmem:[%s6490_s1 + $0xaec] ss:$24 sps:$4 sm:$0xff]   ;;  %v4603_v54 = vld [vmem:[%s6490_s1 + $0xde8] ss:$24 sps:$4 sm:$0xff]   ;;  %v4609_v59 = vld [vmem:[%s6490_s1 + $0xdb8] ss:$24 sps:$4 sm:$0xff]  }
 0x108   :  { %3309 = vmatpush1.bf16.msra.mxu1 %v4531_v52  ;;  %v2976_v63 = vpop.f32.mrf.mxu0  ;;  %3269 = vmatprep.subr.bf16.mxu0 %v4536_v55  ;;  %v4605_v52 = vld [vmem:[%s6490_s1 + $0xdec] ss:$24 sps:$4 sm:$0xff]   ;;  %v4608_v55 = vld [vmem:[%s6490_s1 + $0xabc] ss:$24 sps:$4 sm:$0xff]  }
 0x109   :  { %3310 = vmatprep.subr.bf16.mxu1 %v4539_v56  ;;  %v3017_v1 = vpop.f32.mrf.mxu1  ;;  %v4611_v56 = vld [vmem:[%s6490_s1 + $0xdbc] ss:$24 sps:$4 sm:$0xff]   ;;  %v4617_v61 = vld [vmem:[%s6490_s1 + $0xd8c] ss:$24 sps:$4 sm:$0xff]   ;;  %v4615_v63 = vld [vmem:[%s6490_s1 + $0xd88] ss:$24 sps:$4 sm:$0xff]  }
 0x10a   :  { %v4623_v1 = vld [vmem:[%s6490_s1 + $0x464] ss:$24 sps:$4 sm:$0xff]  }
 0x10b   :  { %3270 = vmatpush1.bf16.msra.mxu0 %v4534_v58  ;;  %v4606_v58 = vld [vmem:[%s6490_s1 + $0xab8] ss:$24 sps:$4 sm:$0xff]  }
 0x10c   :  { %3311 = vmatpush1.bf16.msra.mxu1 %v4537_v60  ;;  %3271 = vmatprep.subr.bf16.mxu0 %v4542_v62  ;;  %v4614_v60 = vld [vmem:[%s6490_s1 + $0xa8c] ss:$24 sps:$4 sm:$0xff]   ;;  %v4612_v62 = vld [vmem:[%s6490_s1 + $0xa88] ss:$24 sps:$4 sm:$0xff]  }
 0x10d   :  { %3312 = vmatprep.subr.bf16.mxu1 %v4545_v0  ;;  %v4620_v0 = vld [vmem:[%s6490_s1 + $0x164] ss:$24 sps:$4 sm:$0xff]  }
 0x10f   :  { %3272 = vmatpush1.bf16.msra.mxu0 %v4540_v2  ;;  %v4618_v2 = vld [vmem:[%s6490_s1 + $0x160] ss:$24 sps:$4 sm:$0xff]  }
 0x110   :  { %3313 = vmatpush1.bf16.msra.mxu1 %v4543_v3  ;;  %3273 = vmatprep.subr.bf16.mxu0 %v4548_v4  ;;  %v4621_v3 = vld [vmem:[%s6490_s1 + $0x460] ss:$24 sps:$4 sm:$0xff]   ;;  %v4626_v4 = vld [vmem:[%s6490_s1 + $0x134] ss:$24 sps:$4 sm:$0xff]  }
 0x111   :  { %3314 = vmatprep.subr.bf16.mxu1 %v4551_v5  ;;  %v4629_v5 = vld [vmem:[%s6490_s1 + $0x434] ss:$24 sps:$4 sm:$0xff]  }
 0x113   :  { %3274 = vmatpush1.bf16.msra.mxu0 %v4546_v8 }
 0x114   :  { %3315 = vmatpush1.bf16.msra.mxu1 %v4549_v9  ;;  %3275 = vmatprep.subr.bf16.mxu0 %v4554_v10  ;;  %v4624_v10 = vld [vmem:[%s6490_s1 + $0x130] ss:$24 sps:$4 sm:$0xff]  }
 0x115   :  { %3316 = vmatprep.subr.bf16.mxu1 %v4557_v11  ;;  %v4627_v11 = vld [vmem:[%s6490_s1 + $0x430] ss:$24 sps:$4 sm:$0xff]  }
 0x117   :  { %3276 = vmatpush1.bf16.msra.mxu0 %v4552_v12 }
 0x118   :  { %3317 = vmatpush1.bf16.msra.mxu1 %v4555_v13  ;;  %3277 = vmatprep.subr.bf16.mxu0 %v4560_v14  ;;  %v4632_v14 = vld [vmem:[%s6490_s1 + $0x104] ss:$24 sps:$4 sm:$0xff]  }
 0x119   :  { %3318 = vmatprep.subr.bf16.mxu1 %v4563_v15  ;;  %v4635_v15 = vld [vmem:[%s6490_s1 + $0x404] ss:$24 sps:$4 sm:$0xff]  }
 0x11b   :  { %3278 = vmatpush1.bf16.msra.mxu0 %v4558_v18 }
 0x11c   :  { %3319 = vmatpush1.bf16.msra.mxu1 %v4561_v19  ;;  %3279 = vmatprep.subr.bf16.mxu0 %v4566_v20  ;;  %v4630_v20 = vld [vmem:[%s6490_s1 + $0x100] ss:$24 sps:$4 sm:$0xff]  }
 0x11d   :  { %3320 = vmatprep.subr.bf16.mxu1 %v4569_v21  ;;  %v4633_v21 = vld [vmem:[%s6490_s1 + $0x400] ss:$24 sps:$4 sm:$0xff]  }
 0x11f   :  { %3280 = vmatpush1.bf16.msra.mxu0 %v4564_v24 }
 0x120   :  { %3321 = vmatpush1.bf16.msra.mxu1 %v4567_v25  ;;  %3281 = vmatprep.subr.bf16.mxu0 %v4572_v26  ;;  %v4636_v26 = vld [vmem:[%s6490_s1 + $0xd0] ss:$24 sps:$4 sm:$0xff]  }
 0x121   :  { %3322 = vmatprep.subr.bf16.mxu1 %v4575_v27  ;;  %v4639_v27 = vld [vmem:[%s6490_s1 + $0x3d0] ss:$24 sps:$4 sm:$0xff]  }
 0x123   :  { %3282 = vmatpush2.bf16.msra.mxu0 %v4570_v28  ;;  %v4644_v28 = vld [vmem:[%s6490_s1 + $0xa4] ss:$24 sps:$4 sm:$0xff]  }
 0x124   :  { %3323 = vmatpush2.bf16.msra.mxu1 %v4573_v29  ;;  %3283 = vmatprep.subr.bf16.mxu0 %v4578_v31  ;;  %v4647_v29 = vld [vmem:[%s6490_s1 + $0x3a4] ss:$24 sps:$4 sm:$0xff]   ;;  %v4642_v31 = vld [vmem:[%s6490_s1 + $0xa0] ss:$24 sps:$4 sm:$0xff]  }
 0x125   :  { %3324 = vmatprep.subr.bf16.mxu1 %v4581_v32  ;;  %v4645_v32 = vld [vmem:[%s6490_s1 + $0x3a0] ss:$24 sps:$4 sm:$0xff]  }
 0x127   :  { %3284 = vmatpush2.bf16.msra.mxu0 %v4576_v33  ;;  %v4650_v33 = vld [vmem:[%s6490_s1 + $0x74] ss:$24 sps:$4 sm:$0xff]  }
 0x128   :  { %3325 = vmatpush2.bf16.msra.mxu1 %v4579_v22  ;;  %3285 = vmatprep.subr.bf16.mxu0 %v4584_v34  ;;  %v4653_v22 = vld [vmem:[%s6490_s1 + $0x374] ss:$24 sps:$4 sm:$0xff]   ;;  %v4648_v34 = vld [vmem:[%s6490_s1 + $0x70] ss:$24 sps:$4 sm:$0xff]  }
 0x129   :  { %3326 = vmatprep.subr.bf16.mxu1 %v4587_v35  ;;  %v4651_v35 = vld [vmem:[%s6490_s1 + $0x370] ss:$24 sps:$4 sm:$0xff]  }
 0x12b   :  { %3286 = vmatpush2.bf16.msra.mxu0 %v4582_v38  ;;  %v4656_v38 = vld [vmem:[%s6490_s1 + $0x44] ss:$24 sps:$4 sm:$0xff]  }
 0x12c   :  { %3327 = vmatpush2.bf16.msra.mxu1 %v4585_v39  ;;  %3287 = vmatprep.subr.bf16.mxu0 %v4590_v40  ;;  %v4659_v39 = vld [vmem:[%s6490_s1 + $0x344] ss:$24 sps:$4 sm:$0xff]   ;;  %v4654_v40 = vld [vmem:[%s6490_s1 + $0x40] ss:$24 sps:$4 sm:$0xff]  }
 0x12d   :  { %3328 = vmatprep.subr.bf16.mxu1 %v4593_v41  ;;  %v4657_v41 = vld [vmem:[%s6490_s1 + $0x340] ss:$24 sps:$4 sm:$0xff]  }
 0x12f   :  { %3288 = vmatpush2.bf16.msra.mxu0 %v4588_v42  ;;  %v4662_v42 = vld [vmem:[%s6490_s1 + $0x14] ss:$24 sps:$4 sm:$0xff]  }
 0x130   :  { %3329 = vmatpush2.bf16.msra.mxu1 %v4591_v43  ;;  %3289 = vmatprep.subr.bf16.mxu0 %v4596_v44  ;;  %v4665_v43 = vld [vmem:[%s6490_s1 + $0x314] ss:$24 sps:$4 sm:$0xff]   ;;  %v4660_v44 = vld [vmem:[%s6490_s1 + $0x10] ss:$24 sps:$4 sm:$0xff]  }
 0x131   :  { %3330 = vmatprep.subr.bf16.mxu1 %v4599_v45  ;;  %v4663_v45 = vld [vmem:[%s6490_s1 + $0x310] ss:$24 sps:$4 sm:$0xff]  }
 0x133   :  { %3290 = vmatpush2.bf16.msra.mxu0 %v4594_v46  ;;  %v4668_v46 = vld [vmem:[%s6490_s1 + $0x2e4] ss:$24 sps:$4 sm:$0xff]  }
 0x134   :  { %3331 = vmatpush2.bf16.msra.mxu1 %v4597_v48  ;;  %3291 = vmatprep.subr.bf16.mxu0 %v4602_v50  ;;  %v4671_v48 = vld [vmem:[%s6490_s1 + $0x5e4] ss:$24 sps:$4 sm:$0xff]   ;;  %v4666_v50 = vld [vmem:[%s6490_s1 + $0x2e0] ss:$24 sps:$4 sm:$0xff]  }
 0x135   :  { %3332 = vmatprep.subr.bf16.mxu1 %v4605_v52  ;;  %v4669_v52 = vld [vmem:[%s6490_s1 + $0x5e0] ss:$24 sps:$4 sm:$0xff]  }
 0x137   :  { %3292 = vmatpush2.bf16.msra.mxu0 %v4600_v53  ;;  %v4674_v53 = vld [vmem:[%s6490_s1 + $0x2b4] ss:$24 sps:$4 sm:$0xff]  }
 0x138   :  { %3333 = vmatpush2.bf16.msra.mxu1 %v4603_v54  ;;  %3293 = vmatprep.subr.bf16.mxu0 %v4608_v55  ;;  %v4677_v54 = vld [vmem:[%s6490_s1 + $0x5b4] ss:$24 sps:$4 sm:$0xff]   ;;  %v4672_v55 = vld [vmem:[%s6490_s1 + $0x2b0] ss:$24 sps:$4 sm:$0xff]  }
 0x139   :  { %3334 = vmatprep.subr.bf16.mxu1 %v4611_v56  ;;  %v4675_v56 = vld [vmem:[%s6490_s1 + $0x5b0] ss:$24 sps:$4 sm:$0xff]  }
 0x13b   :  { %3294 = vmatpush2.bf16.msra.mxu0 %v4606_v58  ;;  %v4680_v58 = vld [vmem:[%s6490_s1 + $0x284] ss:$24 sps:$4 sm:$0xff]  }
 0x13c   :  { %3335 = vmatpush2.bf16.msra.mxu1 %v4609_v59  ;;  %3295 = vmatprep.subr.bf16.mxu0 %v4614_v60  ;;  %v4683_v59 = vld [vmem:[%s6490_s1 + $0x584] ss:$24 sps:$4 sm:$0xff]   ;;  %v4678_v60 = vld [vmem:[%s6490_s1 + $0x280] ss:$24 sps:$4 sm:$0xff]  }
 0x13d   :  { %3336 = vmatprep.subr.bf16.mxu1 %v4617_v61  ;;  %v4681_v61 = vld [vmem:[%s6490_s1 + $0x580] ss:$24 sps:$4 sm:$0xff]  }
 0x13f   :  { %3296 = vmatpush2.bf16.msra.mxu0 %v4612_v62  ;;  %v4686_v62 = vld [vmem:[%s6490_s1 + $0x254] ss:$24 sps:$4 sm:$0xff]  }
 0x140   :  { %3337 = vmatpush2.bf16.msra.mxu1 %v4615_v63  ;;  %3347 = vmatprep.subr.bf16.mxu0 %v4620_v0  ;;  %v4689_v63 = vld [vmem:[%s6490_s1 + $0x554] ss:$24 sps:$4 sm:$0xff]   ;;  %v4684_v0 = vld [vmem:[%s6490_s1 + $0x250] ss:$24 sps:$4 sm:$0xff]  }
 0x141   :  { %3388 = vmatprep.subr.bf16.mxu1 %v4623_v1  ;;  %v4687_v1 = vld [vmem:[%s6490_s1 + $0x550] ss:$24 sps:$4 sm:$0xff]  }
 0x142   :  { %v5936_v8 = vpop.f32.mrf.mxu0  ;;  %3298 = vmatmul.mubr.bf16.vlgmr.msra.gmra.mxu0 %v5317_v17 }
 0x143   :  { %3339 = vmatmul.mubr.bf16.vlgmr.msra.gmra.mxu1 %v5526_v30  ;;  %v5940_v9 = vpop.f32.mrf.mxu1  ;;  %3348 = vmatpush1.bf16.msra.mxu0 %v4618_v2  ;;  %v4692_v2 = vld [vmem:[%s6490_s1 + $0x224] ss:$24 sps:$4 sm:$0xff]  }
 0x144   :  { %3389 = vmatpush1.bf16.msra.mxu1 %v4621_v3  ;;  %v5948_v12 = vpop.f32.mrf.mxu0  ;;  %3349 = vmatprep.subr.bf16.mxu0 %v4626_v4  ;;  %v4695_v3 = vld [vmem:[%s6490_s1 + $0x524] ss:$24 sps:$4 sm:$0xff]   ;;  %v4690_v4 = vld [vmem:[%s6490_s1 + $0x220] ss:$24 sps:$4 sm:$0xff]  }
 0x145   :  { %v5950_v13 = vpop.f32.mrf.mxu1  ;;  %3390 = vmatprep.subr.bf16.mxu1 %v4629_v5  ;;  %3379 = vmatprep.mubr.bf16.mxu0 %v5024_v47  ;;  %v4638_v47 = vld [vmem:[%s6490_s1 + $0xd4] ss:$24 sps:$4 sm:$0xff]   ;;  %v4693_v5 = vld [vmem:[%s6490_s1 + $0x520] ss:$24 sps:$4 sm:$0xff]  }
 0x146   :  { %3420 = vmatprep.mubr.bf16.mxu1 %v5035_v51  ;;  %v3057_v18 = vpop.f32.mrf.mxu0  ;;  %v4641_v51 = vld [vmem:[%s6490_s1 + $0x3d4] ss:$24 sps:$4 sm:$0xff]  }
 0x147   :  { %v3098_v19 = vpop.f32.mrf.mxu1  ;;  %3350 = vmatpush1.bf16.msra.mxu0 %v4624_v10  ;;  %v4698_v10 = vld [vmem:[%s6490_s1 + $0x1f4] ss:$24 sps:$4 sm:$0xff]   ;;  %v4704_v18 = vld [vmem:[%s6490_s1 + $0x1c4] ss:$24 sps:$4 sm:$0xff]  }
 0x148   :  { %3391 = vmatpush1.bf16.msra.mxu1 %v4627_v11  ;;  %v3058_v24 = vpop.f32.mrf.mxu0  ;;  %3351 = vmatprep.subr.bf16.mxu0 %v4632_v14  ;;  %v4701_v11 = vld [vmem:[%s6490_s1 + $0x4f4] ss:$24 sps:$4 sm:$0xff]   ;;  %v4696_v14 = vld [vmem:[%s6490_s1 + $0x1f0] ss:$24 sps:$4 sm:$0xff]   ;;  %v4707_v19 = vld [vmem:[%s6490_s1 + $0x4c4] ss:$24 sps:$4 sm:$0xff]  }
 0x149   :  { %3392 = vmatprep.subr.bf16.mxu1 %v4635_v15  ;;  %v3099_v25 = vpop.f32.mrf.mxu1  ;;  %v4699_v15 = vld [vmem:[%s6490_s1 + $0x4f0] ss:$24 sps:$4 sm:$0xff]   ;;  %v4705_v24 = vld [vmem:[%s6490_s1 + $0x4c0] ss:$24 sps:$4 sm:$0xff]  }
 0x14b   :  { %3352 = vmatpush1.bf16.msra.mxu0 %v4630_v20  ;;  %v3554_v20 = vlaneseq }
 0x14c   :  { %3393 = vmatpush1.bf16.msra.mxu1 %v4633_v21  ;;  %3353 = vmatprep.subr.bf16.mxu0 %v4638_v47  ;;  %v4702_v21 = vld [vmem:[%s6490_s1 + $0x1c0] ss:$24 sps:$4 sm:$0xff]   ;;  %v4710_v47 = vld [vmem:[%s6490_s1 + $0x194] ss:$24 sps:$4 sm:$0xff]  }
 0x14d   :  { %3394 = vmatprep.subr.bf16.mxu1 %v4641_v51  ;;  %v4713_v51 = vld [vmem:[%s6490_s1 + $0x494] ss:$24 sps:$4 sm:$0xff]   ;;  %v6116_v25 = vshrl.u32 %v3554_v20, 7  ;;  %v4750_v20 = vld [vmem:[%s6490_s1 + $0x640] ss:$24 sps:$4 sm:$0xff]  }
 0x14f   :  { %3354 = vmatpush1.bf16.msra.mxu0 %v4636_v26  ;;  %v4708_v26 = vld [vmem:[%s6490_s1 + $0x190] ss:$24 sps:$4 sm:$0xff]  }
 0x150   :  { %3395 = vmatpush1.bf16.msra.mxu1 %v4639_v27  ;;  %3355 = vmatprep.subr.bf16.mxu0 %v4644_v28  ;;  %v4711_v27 = vld [vmem:[%s6490_s1 + $0x490] ss:$24 sps:$4 sm:$0xff]   ;;  %v4716_v28 = vld [vmem:[%s6490_s1 + $0x764] ss:$24 sps:$4 sm:$0xff]  }
 0x151   :  { %3396 = vmatprep.subr.bf16.mxu1 %v4647_v29  ;;  %v4719_v29 = vld [vmem:[%s6490_s1 + $0xa64] ss:$24 sps:$4 sm:$0xff]  }
 0x153   :  { %3356 = vmatpush1.bf16.msra.mxu0 %v4642_v31  ;;  %v3054_v31 = vadd.f32 %v5936_v8, %v5738_v49  ;;  %v6146_v49 = vld [vmem:[%s6493_s3] sm:$0x3f]  ;;  %v3560_v8 = vsub.s32 1, %v6116_v25 }
 0x154   :  { %3397 = vmatpush1.bf16.msra.mxu1 %v4645_v32  ;;  %3357 = vmatprep.subr.bf16.mxu0 %v4650_v33  ;;  %v3556_v32 = vsub.s32 0, %v6116_v25  ;;  %v6136_v33 = vld [vmem:[%s6492_s2] sm:$0x3f] }
 0x155   :  { %3398 = vmatprep.subr.bf16.mxu1 %v4653_v22  ;;  %v4714_v22 = vld [vmem:[%s6490_s1 + $0x760] ss:$24 sps:$4 sm:$0xff]  }
 0x157   :  { %3358 = vmatpush1.bf16.msra.mxu0 %v4648_v34  ;;  %v3056_v34 = vadd.f32 %v5948_v12, %v5752_v57  ;;  %v4725_v57 = vld [vmem:[%s6490_s1 + $0xa34] ss:$24 sps:$4 sm:$0xff]   ;;  %v3095_v12 = vadd.f32 %v5940_v9, %v3054_v31  ;;  %v4720_v9 = vld [vmem:[%s6490_s1 + $0x730] ss:$24 sps:$4 sm:$0xff]   ;;  %v4765_v31 = vld [vmem:[%s6490_s1 + $0xbe0] ss:$24 sps:$4 sm:$0xff]  }
 0x158   :  { %3399 = vmatpush1.bf16.msra.mxu1 %v4651_v35  ;;  %3359 = vmatprep.subr.bf16.mxu0 %v4656_v38  ;;  %v4717_v35 = vld [vmem:[%s6490_s1 + $0xa60] ss:$24 sps:$4 sm:$0xff]   ;;  %v4722_v38 = vld [vmem:[%s6490_s1 + $0x734] ss:$24 sps:$4 sm:$0xff]  }
 0x159   :  { %3400 = vmatprep.subr.bf16.mxu1 %v4659_v39  ;;  %v3557_v39 = vrot.slane %v6136_v33, %v3556_v32 }
 0x15b   :  { %3360 = vmatpush1.bf16.msra.mxu0 %v4654_v40 }
 0x15c   :  { %3401 = vmatpush1.bf16.msra.mxu1 %v4657_v41  ;;  %3361 = vmatprep.subr.bf16.mxu0 %v4662_v42  ;;  %v3595_v41 = vrot.slane %v6146_v49, %v3556_v32  ;;  %v4770_v32 = vld [vmem:[%s6490_s1 + $0x8b4] ss:$24 sps:$4 sm:$0xff]  }
 0x15d   :  { %3402 = vmatprep.subr.bf16.mxu1 %v4665_v43  ;;  %v3097_v43 = vadd.f32 %v5950_v13, %v3056_v34  ;;  %v4731_v13 = vld [vmem:[%s6490_s1 + $0xa04] ss:$24 sps:$4 sm:$0xff]   ;;  %v4768_v34 = vld [vmem:[%s6490_s1 + $0x8b0] ss:$24 sps:$4 sm:$0xff]  }
 0x15f   :  { %3362 = vmatpush1.bf16.msra.mxu0 %v4660_v44 }
 0x160   :  { %3403 = vmatpush1.bf16.msra.mxu1 %v4663_v45  ;;  %3363 = vmatprep.subr.bf16.mxu0 %v4668_v46  ;;  %v3561_v45 = vrot.slane %v6136_v33, %v3560_v8  ;;  %v4723_v46 = vld [vmem:[%s6490_s1 + $0xa30] ss:$24 sps:$4 sm:$0xff]  }
 0x161   :  { %3404 = vmatprep.subr.bf16.mxu1 %v4671_v48 }
 0x163   :  { %3364 = vmatpush2.bf16.msra.mxu0 %v4666_v50 }
 0x164   :  { %3405 = vmatpush2.bf16.msra.mxu1 %v4669_v52  ;;  %3365 = vmatprep.subr.bf16.mxu0 %v4674_v53  ;;  %v3599_v53 = vrot.slane %v6146_v49, %v3560_v8  ;;  %v4771_v8 = vld [vmem:[%s6490_s1 + $0xbb0] ss:$24 sps:$4 sm:$0xff]  }
 0x165   :  { %3406 = vmatprep.subr.bf16.mxu1 %v4677_v54 }
 0x167   :  { %3366 = vmatpush2.bf16.msra.mxu0 %v4672_v55 }
 0x168   :  { %3407 = vmatpush2.bf16.msra.mxu1 %v4675_v56  ;;  %3367 = vmatprep.subr.bf16.mxu0 %v4680_v58 }
 0x169   :  { %3408 = vmatprep.subr.bf16.mxu1 %v4683_v59  ;;  %v4726_v59 = vld [vmem:[%s6490_s1 + $0x700] ss:$24 sps:$4 sm:$0xff]  }
 0x16b   :  { %3368 = vmatpush2.bf16.msra.mxu0 %v4678_v60  ;;  %v4729_v60 = vld [vmem:[%s6490_s1 + $0xa00] ss:$24 sps:$4 sm:$0xff]  }
 0x16c   :  { %3409 = vmatpush2.bf16.msra.mxu1 %v4681_v61  ;;  %3369 = vmatprep.subr.bf16.mxu0 %v4686_v62 }
 0x16d   :  { %3410 = vmatprep.subr.bf16.mxu1 %v4689_v63 }
 0x16f   :  { %3370 = vmatpush2.bf16.msra.mxu0 %v4684_v0  ;;  %v4732_v0 = vld [vmem:[%s6490_s1 + $0x6d0] ss:$24 sps:$4 sm:$0xff]  }
 0x170   :  { %3411 = vmatpush2.bf16.msra.mxu1 %v4687_v1  ;;  %3371 = vmatprep.subr.bf16.mxu0 %v4692_v2  ;;  %v4735_v1 = vld [vmem:[%s6490_s1 + $0x9d0] ss:$24 sps:$4 sm:$0xff]   ;;  %v4740_v2 = vld [vmem:[%s6490_s1 + $0x6a4] ss:$24 sps:$4 sm:$0xff]  }
 0x171   :  { %3412 = vmatprep.subr.bf16.mxu1 %v4695_v3  ;;  %v4743_v3 = vld [vmem:[%s6490_s1 + $0x9a4] ss:$24 sps:$4 sm:$0xff]  }
 0x173   :  { %3372 = vmatpush2.bf16.msra.mxu0 %v4690_v4  ;;  %v4738_v4 = vld [vmem:[%s6490_s1 + $0x6a0] ss:$24 sps:$4 sm:$0xff]  }
 0x174   :  { %3413 = vmatpush2.bf16.msra.mxu1 %v4693_v5  ;;  %3373 = vmatprep.subr.bf16.mxu0 %v4698_v10  ;;  %v4741_v5 = vld [vmem:[%s6490_s1 + $0x9a0] ss:$24 sps:$4 sm:$0xff]   ;;  %v4746_v10 = vld [vmem:[%s6490_s1 + $0x674] ss:$24 sps:$4 sm:$0xff]  }
 0x175   :  { %3414 = vmatprep.subr.bf16.mxu1 %v4701_v11  ;;  %v4749_v11 = vld [vmem:[%s6490_s1 + $0x974] ss:$24 sps:$4 sm:$0xff]  }
 0x177   :  { %3374 = vmatpush2.bf16.msra.mxu0 %v4696_v14  ;;  %v4744_v14 = vld [vmem:[%s6490_s1 + $0x670] ss:$24 sps:$4 sm:$0xff]  }
 0x178   :  { %3415 = vmatpush2.bf16.msra.mxu1 %v4699_v15  ;;  %3375 = vmatprep.subr.bf16.mxu0 %v4704_v18  ;;  %v4747_v15 = vld [vmem:[%s6490_s1 + $0x970] ss:$24 sps:$4 sm:$0xff]   ;;  %v4752_v18 = vld [vmem:[%s6490_s1 + $0x644] ss:$24 sps:$4 sm:$0xff]  }
 0x179   :  { %3416 = vmatprep.subr.bf16.mxu1 %v4707_v19  ;;  %v4755_v19 = vld [vmem:[%s6490_s1 + $0x944] ss:$24 sps:$4 sm:$0xff]  }
 0x17b   :  { %3376 = vmatpush2.bf16.msra.mxu0 %v4702_v21  ;;  %v4753_v21 = vld [vmem:[%s6490_s1 + $0x940] ss:$24 sps:$4 sm:$0xff]  }
 0x17c   :  { %3417 = vmatpush2.bf16.msra.mxu1 %v4705_v24  ;;  %3377 = vmatprep.subr.bf16.mxu0 %v4710_v47  ;;  %v4758_v24 = vld [vmem:[%s6490_s1 + $0x614] ss:$24 sps:$4 sm:$0xff]  }
 0x17d   :  { %3418 = vmatprep.subr.bf16.mxu1 %v4713_v51  ;;  %v4761_v47 = vld [vmem:[%s6490_s1 + $0x914] ss:$24 sps:$4 sm:$0xff]   ;;  %v4756_v51 = vld [vmem:[%s6490_s1 + $0x610] ss:$24 sps:$4 sm:$0xff]  }
 0x17f   :  { %3378 = vmatpush2.bf16.msra.mxu0 %v4708_v26  ;;  %v4759_v26 = vld [vmem:[%s6490_s1 + $0x910] ss:$24 sps:$4 sm:$0xff]  }
 0x180   :  { %3419 = vmatpush2.bf16.msra.mxu1 %v4711_v27  ;;  %3429 = vmatprep.subr.bf16.mxu0 %v4716_v28  ;;  %v4764_v27 = vld [vmem:[%s6490_s1 + $0x8e4] ss:$24 sps:$4 sm:$0xff]  }
 0x181   :  { %3470 = vmatprep.subr.bf16.mxu1 %v4719_v29  ;;  %v4767_v28 = vld [vmem:[%s6490_s1 + $0xbe4] ss:$24 sps:$4 sm:$0xff]   ;;  %v4762_v29 = vld [vmem:[%s6490_s1 + $0x8e0] ss:$24 sps:$4 sm:$0xff]  }
 0x182   :  { %v3135_v40 = vpop.f32.mrf.mxu0  ;;  %3380 = vmatmul.mubr.bf16.vlgmr.msra.gmra.mxu0 %v5093_v6 }
 0x183   :  { %3421 = vmatmul.mubr.bf16.vlgmr.msra.gmra.mxu1 %v5095_v7  ;;  %v6163_v42 = vpop.f32.mrf.mxu1  ;;  %v3136_v44 = vadd.f32 %v3135_v40, %v3095_v12  ;;  %3430 = vmatpush1.bf16.msra.mxu0 %v4714_v22  ;;  %v4728_v7 = vld [vmem:[%s6490_s1 + $0x704] ss:$24 sps:$4 sm:$0xff]   ;;  %v4773_v22 = vld [vmem:[%s6490_s1 + $0xbb4] ss:$24 sps:$4 sm:$0xff]   ;;  %v4777_v12 = vld [vmem:[%s6490_s1 + $0xb80] ss:$24 sps:$4 sm:$0xff]  }
 0x184   :  { %3471 = vmatpush1.bf16.msra.mxu1 %v4717_v35  ;;  %v3137_v6 = vpop.f32.mrf.mxu0  ;;  %3431 = vmatprep.subr.bf16.mxu0 %v4722_v38  ;;  %v4776_v35 = vld [vmem:[%s6490_s1 + $0x884] ss:$24 sps:$4 sm:$0xff]   ;;  %v4785_v40 = vld [vmem:[%s6490_s1 + $0xb54] ss:$24 sps:$4 sm:$0xff]  }
 0x185   :  { %3472 = vmatprep.subr.bf16.mxu1 %v4725_v57  ;;  %v6179_v48 = vpop.f32.mrf.mxu1  ;;  %v3584_v50 = vmul.f32 %v3557_v39, %v3136_v44  ;;  %v3138_v52 = vadd.f32 %v3137_v6, %v3097_v43  ;;  %3461 = vmatprep.mubr.bf16.mxu0 %v5189_v36  ;;  %v4734_v36 = vld [vmem:[%s6490_s1 + $0x6d4] ss:$24 sps:$4 sm:$0xff]   ;;  %v4779_v38 = vld [vmem:[%s6490_s1 + $0xb84] ss:$24 sps:$4 sm:$0xff]   ;;  %v4774_v57 = vld [vmem:[%s6490_s1 + $0x880] ss:$24 sps:$4 sm:$0xff]  }
 0x186   :  { %3502 = vmatprep.mubr.bf16.mxu1 %v5193_v37  ;;  %v3139_v54 = vpop.f32.mrf.mxu0  ;;  %v4737_v37 = vld [vmem:[%s6490_s1 + $0x9d4] ss:$24 sps:$4 sm:$0xff]   ;;  %v4783_v43 = vld [vmem:[%s6490_s1 + $0xb50] ss:$24 sps:$4 sm:$0xff]   ;;  %v4788_v44 = vld [vmem:[%s6490_s1 + $0x824] ss:$24 sps:$4 sm:$0xff]  }
 0x187   :  { %v3180_v55 = vpop.f32.mrf.mxu1  ;;  %v3622_v56 = vadd.f32 %v3595_v41, %v3584_v50  ;;  %v3585_v58 = vmul.f32 %v3561_v45, %v3138_v52  ;;  %3432 = vmatpush1.bf16.msra.mxu0 %v4720_v9  ;;  %v4782_v39 = vld [vmem:[%s6490_s1 + $0x854] ss:$24 sps:$4 sm:$0xff]   ;;  %v4780_v41 = vld [vmem:[%s6490_s1 + $0x850] ss:$24 sps:$4 sm:$0xff]   ;;  %v4791_v45 = vld [vmem:[%s6490_s1 + $0xb24] ss:$24 sps:$4 sm:$0xff]  }
 0x188   :  { %3473 = vmatpush1.bf16.msra.mxu1 %v4723_v46  ;;  %v3140_v61 = vpop.f32.mrf.mxu0  ;;  %3433 = vmatprep.subr.bf16.mxu0 %v4728_v7  ;;  %v4786_v9 = vld [vmem:[%s6490_s1 + $0x820] ss:$24 sps:$4 sm:$0xff]   ;;  %v4794_v6 = vld [vmem:[%s6490_s1 + $0x7f4] ss:$24 sps:$4 sm:$0xff]   ;;  %v4795_v50 = vld [vmem:[%s6490_s1 + $0xaf0] ss:$24 sps:$4 sm:$0xff]  }
 0x189   :  { %3474 = vmatprep.subr.bf16.mxu1 %v4731_v13  ;;  %v3181_v62 = vpop.f32.mrf.mxu1  ;;  %3628 = vst [vmem:[%s6494_s4] sm:$0xff] %v3622_v56  ;;  %v3623_v63 = vadd.f32 %v3599_v53, %v3585_v58  ;;  %v4789_v46 = vld [vmem:[%s6490_s1 + $0xb20] ss:$24 sps:$4 sm:$0xff]   ;;  %v4797_v7 = vld [vmem:[%s6490_s1 + $0xaf4] ss:$24 sps:$4 sm:$0xff]   ;;  %v4792_v13 = vld [vmem:[%s6490_s1 + $0x7f0] ss:$24 sps:$4 sm:$0xff]  }
 0x18a   :  { %v4800_v52 = vld [vmem:[%s6490_s1 + $0x7c4] ss:$24 sps:$4 sm:$0xff]   ;;  %v4798_v54 = vld [vmem:[%s6490_s1 + $0x7c0] ss:$24 sps:$4 sm:$0xff]   ;;  %v4806_v56 = vld [vmem:[%s6490_s1 + $0x794] ss:$24 sps:$4 sm:$0xff]  }
 0x18b   :  { %3629 = vst [vmem:[%s6494_s4 + $0x8] sm:$0xff] %v3623_v63  ;;  %3434 = vmatpush1.bf16.msra.mxu0 %v4726_v59  ;;  %v4803_v53 = vld [vmem:[%s6490_s1 + $0xac4] ss:$24 sps:$4 sm:$0xff]   ;;  %v4801_v55 = vld [vmem:[%s6490_s1 + $0xac0] ss:$24 sps:$4 sm:$0xff]  }
 0x18c   :  { %3475 = vmatpush1.bf16.msra.mxu1 %v4729_v60  ;;  %3435 = vmatprep.subr.bf16.mxu0 %v4734_v36  ;;  %v4809_v58 = vld [vmem:[%s6490_s1 + $0xa94] ss:$24 sps:$4 sm:$0xff]   ;;  %v4804_v59 = vld [vmem:[%s6490_s1 + $0x790] ss:$24 sps:$4 sm:$0xff]   ;;  %v4812_v61 = vld [vmem:[%s6490_s1 + $0xd64] ss:$24 sps:$4 sm:$0xff]  }
 0x18d   :  { %3476 = vmatprep.subr.bf16.mxu1 %v4737_v37  ;;  %v4807_v60 = vld [vmem:[%s6490_s1 + $0xa90] ss:$24 sps:$4 sm:$0xff]   ;;  %v4810_v36 = vld [vmem:[%s6490_s1 + $0xd60] ss:$24 sps:$4 sm:$0xff]   ;;  %v4815_v37 = vld [vmem:[%s6490_s1 + $0xd34] ss:$24 sps:$4 sm:$0xff]  }
 0x18f   :  { %3436 = vmatpush1.bf16.msra.mxu0 %v4732_v0  ;;  %v4813_v0 = vld [vmem:[%s6490_s1 + $0xd30] ss:$24 sps:$4 sm:$0xff]  }
 0x190   :  { %3477 = vmatpush1.bf16.msra.mxu1 %v4735_v1  ;;  %3437 = vmatprep.subr.bf16.mxu0 %v4740_v2 }
 0x191   :  { %3478 = vmatprep.subr.bf16.mxu1 %v4743_v3 }
 0x193   :  { %3438 = vmatpush1.bf16.msra.mxu0 %v4738_v4 }
 0x194   :  { %3479 = vmatpush1.bf16.msra.mxu1 %v4741_v5  ;;  %3439 = vmatprep.subr.bf16.mxu0 %v4746_v10 }
 0x195   :  { %3480 = vmatprep.subr.bf16.mxu1 %v4749_v11  ;;  %v4819_v11 = vld [vmem:[%s6490_s1 + $0xcd0] ss:$24 sps:$4 sm:$0xff]  }
 0x197   :  { %3440 = vmatpush1.bf16.msra.mxu0 %v4744_v14  ;;  %v4824_v14 = vld [vmem:[%s6490_s1 + $0xca4] ss:$24 sps:$4 sm:$0xff]  }
 0x198   :  { %3481 = vmatpush1.bf16.msra.mxu1 %v4747_v15  ;;  %3441 = vmatprep.subr.bf16.mxu0 %v4752_v18  ;;  %v4822_v15 = vld [vmem:[%s6490_s1 + $0xca0] ss:$24 sps:$4 sm:$0xff]   ;;  %v4827_v18 = vld [vmem:[%s6490_s1 + $0xc74] ss:$24 sps:$4 sm:$0xff]  }
 0x199   :  { %3482 = vmatprep.subr.bf16.mxu1 %v4755_v19  ;;  %v4825_v19 = vld [vmem:[%s6490_s1 + $0xc70] ss:$24 sps:$4 sm:$0xff]  }
 0x19b   :  { %3442 = vmatpush1.bf16.msra.mxu0 %v4750_v20  ;;  %v4830_v20 = vld [vmem:[%s6490_s1 + $0xc44] ss:$24 sps:$4 sm:$0xff]  }
 0x19c   :  { %3483 = vmatpush1.bf16.msra.mxu1 %v4753_v21  ;;  %3443 = vmatprep.subr.bf16.mxu0 %v4758_v24  ;;  %v4828_v21 = vld [vmem:[%s6490_s1 + $0xc40] ss:$24 sps:$4 sm:$0xff]   ;;  %v4833_v24 = vld [vmem:[%s6490_s1 + $0xc14] ss:$24 sps:$4 sm:$0xff]  }
 0x19d   :  { %3484 = vmatprep.subr.bf16.mxu1 %v4761_v47  ;;  %v4831_v47 = vld [vmem:[%s6490_s1 + $0xc10] ss:$24 sps:$4 sm:$0xff]  }
 0x19f   :  { %3444 = vmatpush1.bf16.msra.mxu0 %v4756_v51  ;;  %v4836_v51 = vld [vmem:[%s6490_s1 + $0xee4] ss:$24 sps:$4 sm:$0xff]  }
 0x1a0   :  { %3485 = vmatpush1.bf16.msra.mxu1 %v4759_v26  ;;  %3445 = vmatprep.subr.bf16.mxu0 %v4764_v27  ;;  %v4834_v26 = vld [vmem:[%s6490_s1 + $0xee0] ss:$24 sps:$4 sm:$0xff]   ;;  %v4839_v27 = vld [vmem:[%s6490_s1 + $0xeb4] ss:$24 sps:$4 sm:$0xff]  }
 0x1a1   :  { %3486 = vmatprep.subr.bf16.mxu1 %v4767_v28  ;;  %v4837_v28 = vld [vmem:[%s6490_s1 + $0xeb0] ss:$24 sps:$4 sm:$0xff]  }
 0x1a3   :  { %3446 = vmatpush2.bf16.msra.mxu0 %v4762_v29  ;;  %v4842_v29 = vld [vmem:[%s6490_s1 + $0xe84] ss:$24 sps:$4 sm:$0xff]  }
 0x1a4   :  { %3487 = vmatpush2.bf16.msra.mxu1 %v4765_v31  ;;  %3447 = vmatprep.subr.bf16.mxu0 %v4770_v32  ;;  %v4840_v31 = vld [vmem:[%s6490_s1 + $0xe80] ss:$24 sps:$4 sm:$0xff]   ;;  %v4845_v32 = vld [vmem:[%s6490_s1 + $0xe54] ss:$24 sps:$4 sm:$0xff]  }
 0x1a5   :  { %3488 = vmatprep.subr.bf16.mxu1 %v4773_v22  ;;  %v4843_v22 = vld [vmem:[%s6490_s1 + $0xe50] ss:$24 sps:$4 sm:$0xff]  }
 0x1a7   :  { %3448 = vmatpush2.bf16.msra.mxu0 %v4768_v34  ;;  %v4848_v34 = vld [vmem:[%s6490_s1 + $0xe24] ss:$24 sps:$4 sm:$0xff]  }
 0x1a8   :  { %3489 = vmatpush2.bf16.msra.mxu1 %v4771_v8  ;;  %3449 = vmatprep.subr.bf16.mxu0 %v4776_v35  ;;  %v4846_v8 = vld [vmem:[%s6490_s1 + $0xe20] ss:$24 sps:$4 sm:$0xff]   ;;  %v4851_v35 = vld [vmem:[%s6490_s1 + $0xdf4] ss:$24 sps:$4 sm:$0xff]  }
 0x1a9   :  { %3490 = vmatprep.subr.bf16.mxu1 %v4779_v38  ;;  %v4849_v38 = vld [vmem:[%s6490_s1 + $0xdf0] ss:$24 sps:$4 sm:$0xff]  }
 0x1ab   :  { %3450 = vmatpush2.bf16.msra.mxu0 %v4774_v57  ;;  %v4854_v57 = vld [vmem:[%s6490_s1 + $0xdc4] ss:$24 sps:$4 sm:$0xff]  }
 0x1ac   :  { %3491 = vmatpush2.bf16.msra.mxu1 %v4777_v12  ;;  %3451 = vmatprep.subr.bf16.mxu0 %v4782_v39  ;;  %v4852_v12 = vld [vmem:[%s6490_s1 + $0xdc0] ss:$24 sps:$4 sm:$0xff]   ;;  %v4857_v39 = vld [vmem:[%s6490_s1 + $0xd94] ss:$24 sps:$4 sm:$0xff]  }
 0x1ad   :  { %3492 = vmatprep.subr.bf16.mxu1 %v4785_v40  ;;  %v4855_v40 = vld [vmem:[%s6490_s1 + $0xd90] ss:$24 sps:$4 sm:$0xff]  }
 0x1af   :  { %3452 = vmatpush2.bf16.msra.mxu0 %v4780_v41 }
 0x1b0   :  { %3493 = vmatpush2.bf16.msra.mxu1 %v4783_v43  ;;  %3453 = vmatprep.subr.bf16.mxu0 %v4788_v44  ;;  %v3564_v44 = vsub.s32 2, %v6116_v25 }
 0x1b1   :  { %3494 = vmatprep.subr.bf16.mxu1 %v4791_v45 }
 0x1b3   :  { %3454 = vmatpush2.bf16.msra.mxu0 %v4786_v9  ;;  %v3568_v9 = vsub.s32 3, %v6116_v25 }
 0x1b4   :  { %3495 = vmatpush2.bf16.msra.mxu1 %v4789_v46  ;;  %3455 = vmatprep.subr.bf16.mxu0 %v4794_v6 }
 0x1b5   :  { %3496 = vmatprep.subr.bf16.mxu1 %v4797_v7 }
 0x1b7   :  { %3456 = vmatpush2.bf16.msra.mxu0 %v4792_v13 }
 0x1b8   :  { %3497 = vmatpush2.bf16.msra.mxu1 %v4795_v50  ;;  %3457 = vmatprep.subr.bf16.mxu0 %v4800_v52  ;;  %v3565_v50 = vrot.slane %v6136_v33, %v3564_v44 }
 0x1b9   :  { %3498 = vmatprep.subr.bf16.mxu1 %v4803_v53 }
 0x1bb   :  { %3458 = vmatpush2.bf16.msra.mxu0 %v4798_v54  ;;  %v3603_v54 = vrot.slane %v6146_v49, %v3564_v44 }
 0x1bc   :  { %3499 = vmatpush2.bf16.msra.mxu1 %v4801_v55  ;;  %3459 = vmatprep.subr.bf16.mxu0 %v4806_v56  ;;  %v3569_v55 = vrot.slane %v6136_v33, %v3568_v9 }
 0x1bd   :  { %3500 = vmatprep.subr.bf16.mxu1 %v4809_v58 }
 0x1bf   :  { %3460 = vmatpush2.bf16.msra.mxu0 %v4804_v59 }
 0x1c0   :  { %3501 = vmatpush2.bf16.msra.mxu1 %v4807_v60  ;;  %3511 = vmatprep.subr.bf16.mxu0 %v4812_v61 }
 0x1c2   :  { %v6361_v62 = vpop.f32.mrf.mxu0  ;;  %3462 = vmatmul.mubr.bf16.vlgmr.msra.gmra.mxu0 %v5313_v16  ;;  %v4818_v16 = vld [vmem:[%s6490_s1 + $0xd04] ss:$24 sps:$4 sm:$0xff]  }
 0x1c3   :  { %v6364_v63 = vpop.f32.mrf.mxu1  ;;  %3503 = vmatmul.mubr.bf16.vlgmr.msra.gmra.mxu1 %v5317_v17  ;;  %3512 = vmatpush1.bf16.msra.mxu0 %v4810_v36  ;;  %v4816_v17 = vld [vmem:[%s6490_s1 + $0xd00] ss:$24 sps:$4 sm:$0xff]   ;;  %v3218_v41 = vadd.f32 %v6361_v62, %v6163_v42 }
 0x1c4   :  { %3543 = vmatprep.mubr.bf16.mxu0 %v5338_v23  ;;  %v6371_v1 = vpop.f32.mrf.mxu0  ;;  %3513 = vmatprep.subr.bf16.mxu0 %v4815_v37  ;;  %v4821_v23 = vld [vmem:[%s6490_s1 + $0xcd4] ss:$24 sps:$4 sm:$0xff]  }
 0x1c5   :  { %v6373_v2 = vpop.f32.mrf.mxu1  ;;  %v3220_v43 = vadd.f32 %v6371_v1, %v6179_v48  ;;  %v3259_v45 = vadd.f32 %v6364_v63, %v3218_v41 }
 0x1c6   :  { %v3221_v3 = vpop.f32.mrf.mxu0 }
 0x1c7   :  { %v3262_v4 = vpop.f32.mrf.mxu1  ;;  %3514 = vmatpush1.bf16.msra.mxu0 %v4813_v0  ;;  %v3261_v7 = vadd.f32 %v6373_v2, %v3220_v43 }
 0x1c8   :  { %v3222_v5 = vpop.f32.mrf.mxu0  ;;  %3515 = vmatprep.subr.bf16.mxu0 %v4818_v16 }
 0x1c9   :  { %v3263_v10 = vpop.f32.mrf.mxu1 }
 0x1cb   :  { %3516 = vmatpush1.bf16.msra.mxu0 %v4816_v17 }
 0x1cc   :  { %3517 = vmatprep.subr.bf16.mxu0 %v4821_v23 }
 0x1cf   :  { %3518 = vmatpush1.bf16.msra.mxu0 %v4819_v11 }
 0x1d0   :  { %3519 = vmatprep.subr.bf16.mxu0 %v4824_v14 }
 0x1d3   :  { %3520 = vmatpush1.bf16.msra.mxu0 %v4822_v15 }
 0x1d4   :  { %3521 = vmatprep.subr.bf16.mxu0 %v4827_v18 }
 0x1d7   :  { %3522 = vmatpush1.bf16.msra.mxu0 %v4825_v19 }
 0x1d8   :  { %3523 = vmatprep.subr.bf16.mxu0 %v4830_v20 }
 0x1db   :  { %3524 = vmatpush1.bf16.msra.mxu0 %v4828_v21 }
 0x1dc   :  { %3525 = vmatprep.subr.bf16.mxu0 %v4833_v24 }
 0x1df   :  { %3526 = vmatpush1.bf16.msra.mxu0 %v4831_v47 }
 0x1e0   :  { %3527 = vmatprep.subr.bf16.mxu0 %v4836_v51  ;;  %v3572_v51 = vsub.s32 4, %v6116_v25 }
 0x1e3   :  { %3528 = vmatpush2.bf16.msra.mxu0 %v4834_v26 }
 0x1e4   :  { %3529 = vmatprep.subr.bf16.mxu0 %v4839_v27  ;;  %v3576_v27 = vsub.s32 5, %v6116_v25 }
 0x1e7   :  { %3530 = vmatpush2.bf16.msra.mxu0 %v4837_v28 }
 0x1e8   :  { %3531 = vmatprep.subr.bf16.mxu0 %v4842_v29  ;;  %v3573_v29 = vrot.slane %v6136_v33, %v3572_v51 }
 0x1eb   :  { %3532 = vmatpush2.bf16.msra.mxu0 %v4840_v31 }
 0x1ec   :  { %3533 = vmatprep.subr.bf16.mxu0 %v4845_v32 }
 0x1ef   :  { %3534 = vmatpush2.bf16.msra.mxu0 %v4843_v22 }
 0x1f0   :  { %3535 = vmatprep.subr.bf16.mxu0 %v4848_v34  ;;  %v3611_v34 = vrot.slane %v6146_v49, %v3572_v51 }
 0x1f3   :  { %3536 = vmatpush2.bf16.msra.mxu0 %v4846_v8  ;;  %v3577_v8 = vrot.slane %v6136_v33, %v3576_v27 }
 0x1f4   :  { %3537 = vmatprep.subr.bf16.mxu0 %v4851_v35 }
 0x1f7   :  { %3538 = vmatpush2.bf16.msra.mxu0 %v4849_v38 }
 0x1f8   :  { %3539 = vmatprep.subr.bf16.mxu0 %v4854_v57 }
 0x1fb   :  { %3540 = vmatpush2.bf16.msra.mxu0 %v4852_v12  ;;  %v3615_v12 = vrot.slane %v6146_v49, %v3576_v27 }
 0x1fc   :  { %3541 = vmatprep.subr.bf16.mxu0 %v4857_v39 }
 0x1ff   :  { %3542 = vmatpush2.bf16.msra.mxu0 %v4855_v40 }
 0x202   :  { %v3299_v46 = vpop.f32.mrf.mxu0  ;;  %3544 = vmatmul.mubr.bf16.vlgmr.msra.gmra.mxu0 %v5526_v30  ;;  %v3607_v30 = vrot.slane %v6146_v49, %v3568_v9 }
 0x203   :  { %v3340_v6 = vpop.f32.mrf.mxu1  ;;  %v3300_v13 = vadd.f32 %v3299_v46, %v3259_v45 }
 0x204   :  { %v3301_v42 = vpop.f32.mrf.mxu0 }
 0x205   :  { %v3342_v52 = vpop.f32.mrf.mxu1  ;;  %v3302_v53 = vadd.f32 %v3301_v42, %v3261_v7  ;;  %v3341_v48 = vadd.f32 %v3340_v6, %v3300_v13 }
 0x206   :  { %v3303_v56 = vpop.f32.mrf.mxu0 }
 0x207   :  { %v3344_v58 = vpop.f32.mrf.mxu1  ;;  %v3586_v59 = vmul.f32 %v3565_v50, %v3341_v48  ;;  %v3343_v60 = vadd.f32 %v3342_v52, %v3302_v53 }
 0x208   :  { %v3304_v61 = vpop.f32.mrf.mxu0 }
 0x209   :  { %v3345_v36 = vpop.f32.mrf.mxu1  ;;  %v3624_v37 = vadd.f32 %v3603_v54, %v3586_v59  ;;  %v3587_v62 = vmul.f32 %v3569_v55, %v3343_v60 }
 0x20b   :  { %3630 = vst [vmem:[%s6494_s4 + $0x10] sm:$0xff] %v3624_v37  ;;  %v3625_v63 = vadd.f32 %v3607_v30, %v3587_v62 }
 0x20d   :  { %3631 = vst [vmem:[%s6494_s4 + $0x18] sm:$0xff] %v3625_v63 }
 0x242   :  { %v3381_v0 = vpop.f32.mrf.mxu0 }
 0x243   :  { %v3422_v1 = vpop.f32.mrf.mxu1 }
 0x244   :  { %v3423_v2 = vadd.f32 %v3422_v1, %v3381_v0  ;;  %v3383_v16 = vpop.f32.mrf.mxu0 }
 0x245   :  { %v3424_v3 = vpop.f32.mrf.mxu1 }
 0x246   :  { %v3425_v4 = vadd.f32 %v3424_v3, %v3383_v16  ;;  %v3385_v17 = vpop.f32.mrf.mxu0 }
 0x247   :  { %v3426_v5 = vpop.f32.mrf.mxu1 }
 0x248   :  { %v3386_v23 = vpop.f32.mrf.mxu0 }
 0x249   :  { %v3427_v10 = vpop.f32.mrf.mxu1 }
 0x282   :  { %v3463_v11 = vpop.f32.mrf.mxu0 }
 0x283   :  { %v3504_v14 = vpop.f32.mrf.mxu1  ;;  %v3464_v47 = vadd.f32 %v3463_v11, %v3423_v2 }
 0x284   :  { %v3465_v15 = vpop.f32.mrf.mxu0 }
 0x285   :  { %v3506_v18 = vpop.f32.mrf.mxu1  ;;  %v3466_v26 = vadd.f32 %v3465_v15, %v3425_v4  ;;  %v3505_v28 = vadd.f32 %v3504_v14, %v3464_v47 }
 0x286   :  { %v3467_v19 = vpop.f32.mrf.mxu0 }
 0x287   :  { %v3508_v20 = vpop.f32.mrf.mxu1  ;;  %v3507_v32 = vadd.f32 %v3506_v18, %v3466_v26 }
 0x288   :  { %v3468_v21 = vpop.f32.mrf.mxu0 }
 0x289   :  { %v3509_v24 = vpop.f32.mrf.mxu1 }
 0x2c2   :  { %v3545_v31 = vpop.f32.mrf.mxu0 }
 0x2c3   :  { %v3546_v22 = vadd.f32 %v3545_v31, %v3505_v28 }
 0x2c4   :  { %v3547_v35 = vpop.f32.mrf.mxu0 }
 0x2c5   :  { %v3588_v38 = vmul.f32 %v3573_v29, %v3546_v22  ;;  %v3548_v57 = vadd.f32 %v3547_v35, %v3507_v32 }
 0x2c6   :  { %v3549_v39 = vpop.f32.mrf.mxu0 }
 0x2c7   :  { %v3626_v40 = vadd.f32 %v3611_v34, %v3588_v38  ;;  %v3589_v41 = vmul.f32 %v3577_v8, %v3548_v57 }
 0x2c8   :  { %v3550_v43 = vpop.f32.mrf.mxu0 }
 0x2c9   :  { %3632 = vst [vmem:[%s6494_s4 + $0x20] sm:$0xff] %v3626_v40  ;;  %v3627_v25 = vadd.f32 %v3615_v12, %v3589_v41 }
 0x2cb   :  { %3633 = vst [vmem:[%s6494_s4 + $0x28] sm:$0xff] %v3627_v25 }

</bundles_post_ra>
